<compile_context>
chip_gen: v6e
topology: v6e:2x2x1
jax: 0.10.0
libtpu: 0.0.40
codegen_flags: <defaults>
</compile_context>

<pallas_src>
import jax
import jax.numpy as jnp
from jax.experimental import pallas as pl
from jax.experimental.pallas import tpu as pltpu

LANE = 128


def _round_up(x, m):
    return ((x + m - 1) // m) * m


# --------------------------------------------------------------------------
# Pallas kernels
# --------------------------------------------------------------------------
def _conv_block_kernel(p_ref, w_ref, b_ref, scale_ref, shift_ref, o_ref):
    # p_ref: (TM, K) bf16 im2col patches;  w_ref: (K, Cout) bf16
    # b/scale/shift: (1, Cout) f32;        o_ref: (TM, Cout) bf16
    y = jnp.dot(p_ref[...], w_ref[...], preferred_element_type=jnp.float32)
    y = y + b_ref[...]                        # conv bias
    y = jnp.where(y >= 0, y, 0.2 * y)         # LeakyReLU(0.2)
    y = y * scale_ref[...] + shift_ref[...]   # folded eval-mode BatchNorm2d(eps=0.8)
    o_ref[...] = y.astype(o_ref.dtype)


def _linear_sigmoid_kernel(x_ref, w_ref, b_ref, o_ref):
    y = jnp.dot(x_ref[...], w_ref[...], preferred_element_type=jnp.float32)
    y = y + b_ref[...]
    o_ref[...] = pl.reciprocal(1.0 + jnp.exp(-y), approx=True)   # Sigmoid


# --------------------------------------------------------------------------
# Kernel wrappers (grid / BlockSpec / VMEM budgeting)
# --------------------------------------------------------------------------
def _run_conv_block(patches, w_mat, bias, scale, shift):
    m, k = patches.shape
    cout = w_mat.shape[1]

    tm = min(512, _round_up(m, 8))
    m_pad = _round_up(m, tm)
    if m_pad != m:
        patches = jnp.pad(patches, ((0, m_pad - m), (0, 0)))

    # VMEM budget (lane-padded tile estimate): double-buffered patch/out tiles,
    # resident weight, f32 intermediate.  Capped well below v7x's 64 MiB VMEM.
    k_t, c_t = _round_up(k, LANE), _round_up(cout, LANE)
    vmem_bytes = (2 * tm * k_t + 2 * k_t * c_t + 2 * tm * c_t) * 2 \
        + tm * c_t * 4 + 8 * c_t * 4
    vmem_limit = int(min(max(2 * vmem_bytes, 16 << 20), 48 << 20))

    cost = pl.CostEstimate(
        flops=2 * m_pad * k * cout,
        transcendentals=0,
        bytes_accessed=(m_pad * k + k * cout + m_pad * cout) * 2,
    )

    out = pl.pallas_call(
        _conv_block_kernel,
        out_shape=jax.ShapeDtypeStruct((m_pad, cout), jnp.bfloat16),
        grid_spec=pltpu.PrefetchScalarGridSpec(
            num_scalar_prefetch=0,
            grid=(m_pad // tm,),
            in_specs=[
                pl.BlockSpec((tm, k), lambda i: (i, 0)),
                pl.BlockSpec((k, cout), lambda i: (0, 0)),
                pl.BlockSpec((1, cout), lambda i: (0, 0)),
                pl.BlockSpec((1, cout), lambda i: (0, 0)),
                pl.BlockSpec((1, cout), lambda i: (0, 0)),
            ],
            out_specs=pl.BlockSpec((tm, cout), lambda i: (i, 0)),
        ),
        compiler_params=pltpu.CompilerParams(
            dimension_semantics=("parallel",),
            vmem_limit_bytes=vmem_limit,
        ),
        cost_estimate=cost,
    )(patches, w_mat, bias, scale, shift)
    return out, m


def _run_linear_sigmoid(flat, w_mat, b_row):
    n, feat = flat.shape
    cols = w_mat.shape[1]

    tn = min(512, _round_up(n, 8))
    n_pad = _round_up(n, tn)
    if n_pad != n:
        flat = jnp.pad(flat, ((0, n_pad - n), (0, 0)))

    vmem_bytes = 2 * tn * feat * 2 + 2 * feat * cols * 2 + 2 * tn * cols * 4
    vmem_limit = int(min(max(2 * vmem_bytes, 16 << 20), 48 << 20))

    return pl.pallas_call(
        _linear_sigmoid_kernel,
        out_shape=jax.ShapeDtypeStruct((n_pad, cols), jnp.float32),
        grid_spec=pltpu.PrefetchScalarGridSpec(
            num_scalar_prefetch=0,
            grid=(n_pad // tn,),
            in_specs=[
                pl.BlockSpec((tn, feat), lambda i: (i, 0)),
                pl.BlockSpec((feat, cols), lambda i: (0, 0)),
                pl.BlockSpec((1, cols), lambda i: (0, 0)),
            ],
            out_specs=pl.BlockSpec((tn, cols), lambda i: (i, 0)),
        ),
        compiler_params=pltpu.CompilerParams(
            dimension_semantics=("parallel",),
            vmem_limit_bytes=vmem_limit,
        ),
    )(flat.astype(jnp.bfloat16), w_mat, b_row)


# --------------------------------------------------------------------------
# Glue (plain JAX): im2col patch extraction (bf16, tap-major, no transpose)
# --------------------------------------------------------------------------
def _im2col(x_nhwc):
    """3x3 conv, stride 2, padding 1 -> (N*Ho*Wo, 9*C) bf16 patch matrix.

    Column order is (tap, channel) with tap = 3*ky + kx, matching the weight
    flattening done in prepare_params().
    """
    n, h, w, c = x_nhwc.shape
    ho, wo = h // 2, w // 2
    xp = jnp.pad(x_nhwc, ((0, 0), (1, 1), (1, 1), (0, 0)))
    taps = [xp[:, ky:ky + 2 * ho:2, kx:kx + 2 * wo:2, :]
            for ky in range(3) for kx in range(3)]
    p = jnp.concatenate(taps, axis=-1)              # (N, Ho, Wo, 9*C)
    return p.reshape(n * ho * wo, 9 * c), (n, ho, wo)


# --------------------------------------------------------------------------
# Parameters: raw (PyTorch-shaped) init + hoisted kernel-ready preprocessing
# --------------------------------------------------------------------------
def init_params(key, channels, img_size):
    assert img_size % 32 == 0, (
        "Linear(128*(img_size//16)^2, 1) only matches the 5 stride-2 conv "
        "blocks when img_size % 32 == 0")
    cfg = [(channels, 16, False), (16, 32, True), (32, 64, True),
           (64, 128, True), (128, 512, True)]
    raw_convs = []
    for cin, cout, norm in cfg:
        key, kw, kb, kg, kbt, km, kv = jax.random.split(key, 7)
        w = 0.05 * jax.random.normal(kw, (cout, cin, 3, 3), jnp.float32)
        b = 0.05 * jax.random.normal(kb, (cout,), jnp.float32)
        if norm:
            eps = 0.8  # nn.BatchNorm2d(out_filters, 0.8) -> eps = 0.8
            gamma = 1.0 + 0.1 * jax.random.normal(kg, (cout,), jnp.float32)
            beta = 0.1 * jax.random.normal(kbt, (cout,), jnp.float32)
            rmean = 0.1 * jax.random.normal(km, (cout,), jnp.float32)
            rvar = 0.5 + jnp.abs(jax.random.normal(kv, (cout,), jnp.float32))
            scale = gamma / jnp.sqrt(rvar + eps)
            shift = beta - rmean * scale
        else:
            scale = jnp.ones((cout,), jnp.float32)
            shift = jnp.zeros((cout,), jnp.float32)
        raw_convs.append(dict(w=w, b=b, scale=scale, shift=shift))

    ds = img_size // 16
    feat = 128 * ds * ds
    key, kw, kb = jax.random.split(key, 3)
    lw = 0.05 * jax.random.normal(kw, (1, feat), jnp.float32)  # torch Linear (out, in)
    lb = 0.05 * jax.random.normal(kb, (1,), jnp.float32)
    return raw_convs, (lw, lb)


def prepare_params(raw_convs, raw_linear, img_size):
    """Hoisted preprocessing: bf16 (9*Cin, Cout) weight matrices (no channel
    padding), folded BN scale/shift rows, and the Linear weight pre-permuted to
    NHWC flatten order so the forward pass never transposes activations."""
    prepared = []
    for p in raw_convs:
        cout, cin = p["w"].shape[0], p["w"].shape[1]
        # (Cout, Cin, 3, 3) -> (ky, kx, Cin, Cout) -> (9*Cin, Cout)
        w_mat = jnp.transpose(p["w"], (2, 3, 1, 0)).reshape(9 * cin, cout)
        prepared.append(dict(
            w=w_mat.astype(jnp.bfloat16),
            b=p["b"].reshape(1, cout).astype(jnp.float32),
            scale=p["scale"].reshape(1, cout).astype(jnp.float32),
            shift=p["shift"].reshape(1, cout).astype(jnp.float32),
        ))

    lw, lb = raw_linear
    s = img_size // 32                     # spatial size after 5 stride-2 convs
    c_last = raw_convs[-1]["w"].shape[0]   # 512
    # torch flattens NCHW as (c, h, w); reorder columns to our NHWC (h, w, c).
    lw_nhwc = jnp.transpose(lw.reshape(1, c_last, s, s),
                            (0, 2, 3, 1)).reshape(1, c_last * s * s)
    lw_mat = jnp.pad(lw_nhwc.T, ((0, 0), (0, LANE - 1)))   # (feat, 128), col 0 real
    lb_row = jnp.pad(lb.reshape(1, 1), ((0, 0), (0, LANE - 1)))
    return prepared, (lw_mat.astype(jnp.bfloat16), lb_row.astype(jnp.float32))


# --------------------------------------------------------------------------
# Forward pass
# --------------------------------------------------------------------------
def discriminator_forward(x_nchw, params):
    conv_params, (lw_mat, lb_row) = params
    n, _, img, img_w = x_nchw.shape
    assert img == img_w and img % 32 == 0

    x = jnp.transpose(x_nchw, (0, 2, 3, 1)).astype(jnp.bfloat16)   # NCHW -> NHWC
    for p in conv_params:
        cout = p["w"].shape[1]
        patches, (nb, ho, wo) = _im2col(x)
        out, m = _run_conv_block(patches, p["w"], p["b"], p["scale"], p["shift"])
        x = out[:m].reshape(nb, ho, wo, cout)

    # Last block has Cout == 512, so the NHWC flatten matches the pre-permuted
    # Linear weight exactly -- no activation transpose needed.
    feat = x.shape[1] * x.shape[2] * x.shape[3]
    flat = x.reshape(n, feat)
    out = _run_linear_sigmoid(flat, lw_mat, lb_row)
    return out[:n, :1]


# --------------------------------------------------------------------------
# Pure-JAX reference (eval-mode semantics) for a correctness check
# --------------------------------------------------------------------------
def reference_forward(x_nchw, raw_convs, raw_linear):
    x = x_nchw.astype(jnp.float32)
    for p in raw_convs:
        x = jax.lax.conv_general_dilated(
            x, p["w"], window_strides=(2, 2), padding=((1, 1), (1, 1)),
            dimension_numbers=("NCHW", "OIHW", "NCHW"))
        x = x + p["b"][None, :, None, None]
        x = jnp.where(x >= 0, x, 0.2 * x)
        x = x * p["scale"][None, :, None, None] + p["shift"][None, :, None, None]
    flat = x.reshape(x.shape[0], -1)
    lw, lb = raw_linear
    return jax.nn.sigmoid(flat @ lw.T + lb)


if __name__ == "__main__":
    key = jax.random.PRNGKey(0)
    kx, kp = jax.random.split(key)

    # img_shape = (channels, img_size, img_size); img_size % 32 == 0 required
    N, C, IMG = 2, 4, 32
    x = jax.random.normal(kx, (N, C, IMG, IMG), jnp.float32)

    raw_convs, raw_linear = init_params(kp, C, IMG)
    params = prepare_params(raw_convs, raw_linear, IMG)

    fwd = jax.jit(discriminator_forward)
    out = jax.block_until_ready(fwd(x, params))

    ref = reference_forward(x, raw_convs, raw_linear)
    assert out.shape == (N, 1), out.shape
    assert bool(jnp.all(jnp.isfinite(out)))
    assert bool(jnp.allclose(out, ref, atol=2e-2, rtol=2e-2)), (out, ref)

    print("KERNEL_OK")
</pallas_src>

<mosaic_0001>
module attributes {stable_mosaic.version = 11 : i64} {
  func.func @_conv_block_kernel(%arg0: i32, %arg1: memref<512x36xbf16, #tpu.memory_space<vmem>>, %arg2: memref<36x16xbf16, #tpu.memory_space<vmem>>, %arg3: memref<1x16xf32, #tpu.memory_space<vmem>>, %arg4: memref<1x16xf32, #tpu.memory_space<vmem>>, %arg5: memref<1x16xf32, #tpu.memory_space<vmem>>, %arg6: memref<512x16xbf16, #tpu.memory_space<vmem>>) attributes {dimension_semantics = [#tpu.dimension_semantics<parallel>], iteration_bounds = array<i64: 1>, scalar_prefetch = 0 : i64, scratch_operands = 0 : i64, tpu.core_type = #tpu.core_type<tc>, window_params = [{transform_indices = @transform_0, window_bounds = array<i64: 512, 36>}, {pipeline_mode = #tpu.pipeline_mode<synchronous>, transform_indices = @transform_1, window_bounds = array<i64: 36, 16>}, {pipeline_mode = #tpu.pipeline_mode<synchronous>, transform_indices = @transform_2, window_bounds = array<i64: 1, 16>}, {pipeline_mode = #tpu.pipeline_mode<synchronous>, transform_indices = @transform_3, window_bounds = array<i64: 1, 16>}, {pipeline_mode = #tpu.pipeline_mode<synchronous>, transform_indices = @transform_4, window_bounds = array<i64: 1, 16>}, {transform_indices = @transform_5, window_bounds = array<i64: 512, 16>}]} {
    %c0 = arith.constant 0 : index
    %c0_0 = arith.constant 0 : index
    %0 = vector.load %arg1[%c0, %c0_0] : memref<512x36xbf16, #tpu.memory_space<vmem>>, vector<512x36xbf16>
    %c0_1 = arith.constant 0 : index
    %c0_2 = arith.constant 0 : index
    %1 = vector.load %arg2[%c0_1, %c0_2] : memref<36x16xbf16, #tpu.memory_space<vmem>>, vector<36x16xbf16>
    %cst = arith.constant dense<0.000000e+00> : vector<512x16xf32>
    %2 = tpu.matmul %0, %1, %cst {dimension_numbers = #tpu.dot_dimension_numbers<[1], [0], [0], [1], [0, 0, 1, 1], [], []>} : vector<512x36xbf16>, vector<36x16xbf16>, vector<512x16xf32> -> vector<512x16xf32>
    %c0_3 = arith.constant 0 : index
    %c0_4 = arith.constant 0 : index
    %3 = vector.load %arg3[%c0_3, %c0_4] : memref<1x16xf32, #tpu.memory_space<vmem>>, vector<1x16xf32>
    %4 = vector.broadcast %3 : vector<1x16xf32> to vector<512x16xf32>
    %5 = arith.addf %2, %4 : vector<512x16xf32>
    %cst_5 = arith.constant 0.000000e+00 : f32
    %6 = vector.broadcast %cst_5 : f32 to vector<512x16xf32>
    %7 = arith.cmpf oge, %5, %6 : vector<512x16xf32>
    %cst_6 = arith.constant 2.000000e-01 : f32
    %8 = vector.broadcast %cst_6 : f32 to vector<512x16xf32>
    %9 = arith.mulf %8, %5 : vector<512x16xf32>
    %10 = arith.select %7, %5, %9 : vector<512x16xi1>, vector<512x16xf32>
    %c0_7 = arith.constant 0 : index
    %c0_8 = arith.constant 0 : index
    %11 = vector.load %arg4[%c0_7, %c0_8] : memref<1x16xf32, #tpu.memory_space<vmem>>, vector<1x16xf32>
    %12 = vector.broadcast %11 : vector<1x16xf32> to vector<512x16xf32>
    %13 = arith.mulf %10, %12 : vector<512x16xf32>
    %c0_9 = arith.constant 0 : index
    %c0_10 = arith.constant 0 : index
    %14 = vector.load %arg5[%c0_9, %c0_10] : memref<1x16xf32, #tpu.memory_space<vmem>>, vector<1x16xf32>
    %15 = vector.broadcast %14 : vector<1x16xf32> to vector<512x16xf32>
    %16 = arith.addf %13, %15 : vector<512x16xf32>
    %17 = arith.truncf %16 : vector<512x16xf32> to vector<512x16xbf16>
    %c0_11 = arith.constant 0 : index
    %c0_12 = arith.constant 0 : index
    %18 = vector.load %arg6[%c0_11, %c0_12] : memref<512x16xbf16, #tpu.memory_space<vmem>>, vector<512x16xbf16>
    tpu.vector_store %arg6[%c0_11, %c0_12], %17 {strides = array<i32>} : memref<512x16xbf16, #tpu.memory_space<vmem>>, vector<512x16xbf16>,
    return
  }
  func.func @transform_0(%arg0: i32) -> (i32, i32) {
    %c0_i32 = arith.constant 0 : i32
    %c0_i32_0 = arith.constant 0 : i32
    return %arg0, %c0_i32 : i32, i32
  }
  func.func @transform_1(%arg0: i32) -> (i32, i32) {
    %c0_i32 = arith.constant 0 : i32
    %c0_i32_0 = arith.constant 0 : i32
    %c0_i32_1 = arith.constant 0 : i32
    return %c0_i32, %c0_i32_0 : i32, i32
  }
  func.func @transform_2(%arg0: i32) -> (i32, i32) {
    %c0_i32 = arith.constant 0 : i32
    %c0_i32_0 = arith.constant 0 : i32
    %c0_i32_1 = arith.constant 0 : i32
    return %c0_i32, %c0_i32_0 : i32, i32
  }
  func.func @transform_3(%arg0: i32) -> (i32, i32) {
    %c0_i32 = arith.constant 0 : i32
    %c0_i32_0 = arith.constant 0 : i32
    %c0_i32_1 = arith.constant 0 : i32
    return %c0_i32, %c0_i32_0 : i32, i32
  }
  func.func @transform_4(%arg0: i32) -> (i32, i32) {
    %c0_i32 = arith.constant 0 : i32
    %c0_i32_0 = arith.constant 0 : i32
    %c0_i32_1 = arith.constant 0 : i32
    return %c0_i32, %c0_i32_0 : i32, i32
  }
  func.func @transform_5(%arg0: i32) -> (i32, i32) {
    %c0_i32 = arith.constant 0 : i32
    %c0_i32_0 = arith.constant 0 : i32
    return %arg0, %c0_i32 : i32, i32
  }
}

module attributes {stable_mosaic.version = 11 : i64} {
  func.func @_conv_block_kernel(%arg0: i32, %arg1: memref<128x144xbf16, #tpu.memory_space<vmem>>, %arg2: memref<144x32xbf16, #tpu.memory_space<vmem>>, %arg3: memref<1x32xf32, #tpu.memory_space<vmem>>, %arg4: memref<1x32xf32, #tpu.memory_space<vmem>>, %arg5: memref<1x32xf32, #tpu.memory_space<vmem>>, %arg6: memref<128x32xbf16, #tpu.memory_space<vmem>>) attributes {dimension_semantics = [#tpu.dimension_semantics<parallel>], iteration_bounds = array<i64: 1>, scalar_prefetch = 0 : i64, scratch_operands = 0 : i64, tpu.core_type = #tpu.core_type<tc>, window_params = [{transform_indices = @transform_0, window_bounds = array<i64: 128, 144>}, {pipeline_mode = #tpu.pipeline_mode<synchronous>, transform_indices = @transform_1, window_bounds = array<i64: 144, 32>}, {pipeline_mode = #tpu.pipeline_mode<synchronous>, transform_indices = @transform_2, window_bounds = array<i64: 1, 32>}, {pipeline_mode = #tpu.pipeline_mode<synchronous>, transform_indices = @transform_3, window_bounds = array<i64: 1, 32>}, {pipeline_mode = #tpu.pipeline_mode<synchronous>, transform_indices = @transform_4, window_bounds = array<i64: 1, 32>}, {transform_indices = @transform_5, window_bounds = array<i64: 128, 32>}]} {
    %c0 = arith.constant 0 : index
    %c0_0 = arith.constant 0 : index
    %0 = vector.load %arg1[%c0, %c0_0] : memref<128x144xbf16, #tpu.memory_space<vmem>>, vector<128x144xbf16>
    %c0_1 = arith.constant 0 : index
    %c0_2 = arith.constant 0 : index
    %1 = vector.load %arg2[%c0_1, %c0_2] : memref<144x32xbf16, #tpu.memory_space<vmem>>, vector<144x32xbf16>
    %cst = arith.constant dense<0.000000e+00> : vector<128x32xf32>
    %2 = tpu.matmul %0, %1, %cst {dimension_numbers = #tpu.dot_dimension_numbers<[1], [0], [0], [1], [0, 0, 1, 1], [], []>} : vector<128x144xbf16>, vector<144x32xbf16>, vector<128x32xf32> -> vector<128x32xf32>
    %c0_3 = arith.constant 0 : index
    %c0_4 = arith.constant 0 : index
    %3 = vector.load %arg3[%c0_3, %c0_4] : memref<1x32xf32, #tpu.memory_space<vmem>>, vector<1x32xf32>
    %4 = vector.broadcast %3 : vector<1x32xf32> to vector<128x32xf32>
    %5 = arith.addf %2, %4 : vector<128x32xf32>
    %cst_5 = arith.constant 0.000000e+00 : f32
    %6 = vector.broadcast %cst_5 : f32 to vector<128x32xf32>
    %7 = arith.cmpf oge, %5, %6 : vector<128x32xf32>
    %cst_6 = arith.constant 2.000000e-01 : f32
    %8 = vector.broadcast %cst_6 : f32 to vector<128x32xf32>
    %9 = arith.mulf %8, %5 : vector<128x32xf32>
    %10 = arith.select %7, %5, %9 : vector<128x32xi1>, vector<128x32xf32>
    %c0_7 = arith.constant 0 : index
    %c0_8 = arith.constant 0 : index
    %11 = vector.load %arg4[%c0_7, %c0_8] : memref<1x32xf32, #tpu.memory_space<vmem>>, vector<1x32xf32>
    %12 = vector.broadcast %11 : vector<1x32xf32> to vector<128x32xf32>
    %13 = arith.mulf %10, %12 : vector<128x32xf32>
    %c0_9 = arith.constant 0 : index
    %c0_10 = arith.constant 0 : index
    %14 = vector.load %arg5[%c0_9, %c0_10] : memref<1x32xf32, #tpu.memory_space<vmem>>, vector<1x32xf32>
    %15 = vector.broadcast %14 : vector<1x32xf32> to vector<128x32xf32>
    %16 = arith.addf %13, %15 : vector<128x32xf32>
    %17 = arith.truncf %16 : vector<128x32xf32> to vector<128x32xbf16>
    %c0_11 = arith.constant 0 : index
    %c0_12 = arith.constant 0 : index
    %18 = vector.load %arg6[%c0_11, %c0_12] : memref<128x32xbf16, #tpu.memory_space<vmem>>, vector<128x32xbf16>
    tpu.vector_store %arg6[%c0_11, %c0_12], %17 {strides = array<i32>} : memref<128x32xbf16, #tpu.memory_space<vmem>>, vector<128x32xbf16>,
    return
  }
  func.func @transform_0(%arg0: i32) -> (i32, i32) {
    %c0_i32 = arith.constant 0 : i32
    %c0_i32_0 = arith.constant 0 : i32
    return %arg0, %c0_i32 : i32, i32
  }
  func.func @transform_1(%arg0: i32) -> (i32, i32) {
    %c0_i32 = arith.constant 0 : i32
    %c0_i32_0 = arith.constant 0 : i32
    %c0_i32_1 = arith.constant 0 : i32
    return %c0_i32, %c0_i32_0 : i32, i32
  }
  func.func @transform_2(%arg0: i32) -> (i32, i32) {
    %c0_i32 = arith.constant 0 : i32
    %c0_i32_0 = arith.constant 0 : i32
    %c0_i32_1 = arith.constant 0 : i32
    return %c0_i32, %c0_i32_0 : i32, i32
  }
  func.func @transform_3(%arg0: i32) -> (i32, i32) {
    %c0_i32 = arith.constant 0 : i32
    %c0_i32_0 = arith.constant 0 : i32
    %c0_i32_1 = arith.constant 0 : i32
    return %c0_i32, %c0_i32_0 : i32, i32
  }
  func.func @transform_4(%arg0: i32) -> (i32, i32) {
    %c0_i32 = arith.constant 0 : i32
    %c0_i32_0 = arith.constant 0 : i32
    %c0_i32_1 = arith.constant 0 : i32
    return %c0_i32, %c0_i32_0 : i32, i32
  }
  func.func @transform_5(%arg0: i32) -> (i32, i32) {
    %c0_i32 = arith.constant 0 : i32
    %c0_i32_0 = arith.constant 0 : i32
    return %arg0, %c0_i32 : i32, i32
  }
}

module attributes {stable_mosaic.version = 11 : i64} {
  func.func @_conv_block_kernel(%arg0: i32, %arg1: memref<32x288xbf16, #tpu.memory_space<vmem>>, %arg2: memref<288x64xbf16, #tpu.memory_space<vmem>>, %arg3: memref<1x64xf32, #tpu.memory_space<vmem>>, %arg4: memref<1x64xf32, #tpu.memory_space<vmem>>, %arg5: memref<1x64xf32, #tpu.memory_space<vmem>>, %arg6: memref<32x64xbf16, #tpu.memory_space<vmem>>) attributes {dimension_semantics = [#tpu.dimension_semantics<parallel>], iteration_bounds = array<i64: 1>, scalar_prefetch = 0 : i64, scratch_operands = 0 : i64, tpu.core_type = #tpu.core_type<tc>, window_params = [{transform_indices = @transform_0, window_bounds = array<i64: 32, 288>}, {pipeline_mode = #tpu.pipeline_mode<synchronous>, transform_indices = @transform_1, window_bounds = array<i64: 288, 64>}, {pipeline_mode = #tpu.pipeline_mode<synchronous>, transform_indices = @transform_2, window_bounds = array<i64: 1, 64>}, {pipeline_mode = #tpu.pipeline_mode<synchronous>, transform_indices = @transform_3, window_bounds = array<i64: 1, 64>}, {pipeline_mode = #tpu.pipeline_mode<synchronous>, transform_indices = @transform_4, window_bounds = array<i64: 1, 64>}, {transform_indices = @transform_5, window_bounds = array<i64: 32, 64>}]} {
    %c0 = arith.constant 0 : index
    %c0_0 = arith.constant 0 : index
    %0 = vector.load %arg1[%c0, %c0_0] : memref<32x288xbf16, #tpu.memory_space<vmem>>, vector<32x288xbf16>
    %c0_1 = arith.constant 0 : index
    %c0_2 = arith.constant 0 : index
    %1 = vector.load %arg2[%c0_1, %c0_2] : memref<288x64xbf16, #tpu.memory_space<vmem>>, vector<288x64xbf16>
    %cst = arith.constant dense<0.000000e+00> : vector<32x64xf32>
    %2 = tpu.matmul %0, %1, %cst {dimension_numbers = #tpu.dot_dimension_numbers<[1], [0], [0], [1], [0, 0, 1, 1], [], []>} : vector<32x288xbf16>, vector<288x64xbf16>, vector<32x64xf32> -> vector<32x64xf32>
    %c0_3 = arith.constant 0 : index
    %c0_4 = arith.constant 0 : index
    %3 = vector.load %arg3[%c0_3, %c0_4] : memref<1x64xf32, #tpu.memory_space<vmem>>, vector<1x64xf32>
    %4 = vector.broadcast %3 : vector<1x64xf32> to vector<32x64xf32>
    %5 = arith.addf %2, %4 : vector<32x64xf32>
    %cst_5 = arith.constant 0.000000e+00 : f32
    %6 = vector.broadcast %cst_5 : f32 to vector<32x64xf32>
    %7 = arith.cmpf oge, %5, %6 : vector<32x64xf32>
    %cst_6 = arith.constant 2.000000e-01 : f32
    %8 = vector.broadcast %cst_6 : f32 to vector<32x64xf32>
    %9 = arith.mulf %8, %5 : vector<32x64xf32>
    %10 = arith.select %7, %5, %9 : vector<32x64xi1>, vector<32x64xf32>
    %c0_7 = arith.constant 0 : index
    %c0_8 = arith.constant 0 : index
    %11 = vector.load %arg4[%c0_7, %c0_8] : memref<1x64xf32, #tpu.memory_space<vmem>>, vector<1x64xf32>
    %12 = vector.broadcast %11 : vector<1x64xf32> to vector<32x64xf32>
    %13 = arith.mulf %10, %12 : vector<32x64xf32>
    %c0_9 = arith.constant 0 : index
    %c0_10 = arith.constant 0 : index
    %14 = vector.load %arg5[%c0_9, %c0_10] : memref<1x64xf32, #tpu.memory_space<vmem>>, vector<1x64xf32>
    %15 = vector.broadcast %14 : vector<1x64xf32> to vector<32x64xf32>
    %16 = arith.addf %13, %15 : vector<32x64xf32>
    %17 = arith.truncf %16 : vector<32x64xf32> to vector<32x64xbf16>
    %c0_11 = arith.constant 0 : index
    %c0_12 = arith.constant 0 : index
    %18 = vector.load %arg6[%c0_11, %c0_12] : memref<32x64xbf16, #tpu.memory_space<vmem>>, vector<32x64xbf16>
    tpu.vector_store %arg6[%c0_11, %c0_12], %17 {strides = array<i32>} : memref<32x64xbf16, #tpu.memory_space<vmem>>, vector<32x64xbf16>,
    return
  }
  func.func @transform_0(%arg0: i32) -> (i32, i32) {
    %c0_i32 = arith.constant 0 : i32
    %c0_i32_0 = arith.constant 0 : i32
    return %arg0, %c0_i32 : i32, i32
  }
  func.func @transform_1(%arg0: i32) -> (i32, i32) {
    %c0_i32 = arith.constant 0 : i32
    %c0_i32_0 = arith.constant 0 : i32
    %c0_i32_1 = arith.constant 0 : i32
    return %c0_i32, %c0_i32_0 : i32, i32
  }
  func.func @transform_2(%arg0: i32) -> (i32, i32) {
    %c0_i32 = arith.constant 0 : i32
    %c0_i32_0 = arith.constant 0 : i32
    %c0_i32_1 = arith.constant 0 : i32
    return %c0_i32, %c0_i32_0 : i32, i32
  }
  func.func @transform_3(%arg0: i32) -> (i32, i32) {
    %c0_i32 = arith.constant 0 : i32
    %c0_i32_0 = arith.constant 0 : i32
    %c0_i32_1 = arith.constant 0 : i32
    return %c0_i32, %c0_i32_0 : i32, i32
  }
  func.func @transform_4(%arg0: i32) -> (i32, i32) {
    %c0_i32 = arith.constant 0 : i32
    %c0_i32_0 = arith.constant 0 : i32
    %c0_i32_1 = arith.constant 0 : i32
    return %c0_i32, %c0_i32_0 : i32, i32
  }
  func.func @transform_5(%arg0: i32) -> (i32, i32) {
    %c0_i32 = arith.constant 0 : i32
    %c0_i32_0 = arith.constant 0 : i32
    return %arg0, %c0_i32 : i32, i32
  }
}

module attributes {stable_mosaic.version = 11 : i64} {
  func.func @_conv_block_kernel(%arg0: i32, %arg1: memref<8x576xbf16, #tpu.memory_space<vmem>>, %arg2: memref<576x128xbf16, #tpu.memory_space<vmem>>, %arg3: memref<1x128xf32, #tpu.memory_space<vmem>>, %arg4: memref<1x128xf32, #tpu.memory_space<vmem>>, %arg5: memref<1x128xf32, #tpu.memory_space<vmem>>, %arg6: memref<8x128xbf16, #tpu.memory_space<vmem>>) attributes {dimension_semantics = [#tpu.dimension_semantics<parallel>], iteration_bounds = array<i64: 1>, scalar_prefetch = 0 : i64, scratch_operands = 0 : i64, tpu.core_type = #tpu.core_type<tc>, window_params = [{transform_indices = @transform_0, window_bounds = array<i64: 8, 576>}, {pipeline_mode = #tpu.pipeline_mode<synchronous>, transform_indices = @transform_1, window_bounds = array<i64: 576, 128>}, {pipeline_mode = #tpu.pipeline_mode<synchronous>, transform_indices = @transform_2, window_bounds = array<i64: 1, 128>}, {pipeline_mode = #tpu.pipeline_mode<synchronous>, transform_indices = @transform_3, window_bounds = array<i64: 1, 128>}, {pipeline_mode = #tpu.pipeline_mode<synchronous>, transform_indices = @transform_4, window_bounds = array<i64: 1, 128>}, {transform_indices = @transform_5, window_bounds = array<i64: 8, 128>}]} {
    %c0 = arith.constant 0 : index
    %c0_0 = arith.constant 0 : index
    %0 = vector.load %arg1[%c0, %c0_0] : memref<8x576xbf16, #tpu.memory_space<vmem>>, vector<8x576xbf16>
    %c0_1 = arith.constant 0 : index
    %c0_2 = arith.constant 0 : index
    %1 = vector.load %arg2[%c0_1, %c0_2] : memref<576x128xbf16, #tpu.memory_space<vmem>>, vector<576x128xbf16>
    %cst = arith.constant dense<0.000000e+00> : vector<8x128xf32>
    %2 = tpu.matmul %0, %1, %cst {dimension_numbers = #tpu.dot_dimension_numbers<[1], [0], [0], [1], [0, 0, 1, 1], [], []>} : vector<8x576xbf16>, vector<576x128xbf16>, vector<8x128xf32> -> vector<8x128xf32>
    %c0_3 = arith.constant 0 : index
    %c0_4 = arith.constant 0 : index
    %3 = vector.load %arg3[%c0_3, %c0_4] : memref<1x128xf32, #tpu.memory_space<vmem>>, vector<1x128xf32>
    %4 = vector.broadcast %3 : vector<1x128xf32> to vector<8x128xf32>
    %5 = arith.addf %2, %4 : vector<8x128xf32>
    %cst_5 = arith.constant 0.000000e+00 : f32
    %6 = vector.broadcast %cst_5 : f32 to vector<8x128xf32>
    %7 = arith.cmpf oge, %5, %6 : vector<8x128xf32>
    %cst_6 = arith.constant 2.000000e-01 : f32
    %8 = vector.broadcast %cst_6 : f32 to vector<8x128xf32>
    %9 = arith.mulf %8, %5 : vector<8x128xf32>
    %10 = arith.select %7, %5, %9 : vector<8x128xi1>, vector<8x128xf32>
    %c0_7 = arith.constant 0 : index
    %c0_8 = arith.constant 0 : index
    %11 = vector.load %arg4[%c0_7, %c0_8] : memref<1x128xf32, #tpu.memory_space<vmem>>, vector<1x128xf32>
    %12 = vector.broadcast %11 : vector<1x128xf32> to vector<8x128xf32>
    %13 = arith.mulf %10, %12 : vector<8x128xf32>
    %c0_9 = arith.constant 0 : index
    %c0_10 = arith.constant 0 : index
    %14 = vector.load %arg5[%c0_9, %c0_10] : memref<1x128xf32, #tpu.memory_space<vmem>>, vector<1x128xf32>
    %15 = vector.broadcast %14 : vector<1x128xf32> to vector<8x128xf32>
    %16 = arith.addf %13, %15 : vector<8x128xf32>
    %17 = arith.truncf %16 : vector<8x128xf32> to vector<8x128xbf16>
    %c0_11 = arith.constant 0 : index
    %c0_12 = arith.constant 0 : index
    %18 = vector.load %arg6[%c0_11, %c0_12] : memref<8x128xbf16, #tpu.memory_space<vmem>>, vector<8x128xbf16>
    tpu.vector_store %arg6[%c0_11, %c0_12], %17 {strides = array<i32>} : memref<8x128xbf16, #tpu.memory_space<vmem>>, vector<8x128xbf16>,
    return
  }
  func.func @transform_0(%arg0: i32) -> (i32, i32) {
    %c0_i32 = arith.constant 0 : i32
    %c0_i32_0 = arith.constant 0 : i32
    return %arg0, %c0_i32 : i32, i32
  }
  func.func @transform_1(%arg0: i32) -> (i32, i32) {
    %c0_i32 = arith.constant 0 : i32
    %c0_i32_0 = arith.constant 0 : i32
    %c0_i32_1 = arith.constant 0 : i32
    return %c0_i32, %c0_i32_0 : i32, i32
  }
  func.func @transform_2(%arg0: i32) -> (i32, i32) {
    %c0_i32 = arith.constant 0 : i32
    %c0_i32_0 = arith.constant 0 : i32
    %c0_i32_1 = arith.constant 0 : i32
    return %c0_i32, %c0_i32_0 : i32, i32
  }
  func.func @transform_3(%arg0: i32) -> (i32, i32) {
    %c0_i32 = arith.constant 0 : i32
    %c0_i32_0 = arith.constant 0 : i32
    %c0_i32_1 = arith.constant 0 : i32
    return %c0_i32, %c0_i32_0 : i32, i32
  }
  func.func @transform_4(%arg0: i32) -> (i32, i32) {
    %c0_i32 = arith.constant 0 : i32
    %c0_i32_0 = arith.constant 0 : i32
    %c0_i32_1 = arith.constant 0 : i32
    return %c0_i32, %c0_i32_0 : i32, i32
  }
  func.func @transform_5(%arg0: i32) -> (i32, i32) {
    %c0_i32 = arith.constant 0 : i32
    %c0_i32_0 = arith.constant 0 : i32
    return %arg0, %c0_i32 : i32, i32
  }
}

module attributes {stable_mosaic.version = 11 : i64} {
  func.func @_conv_block_kernel(%arg0: i32, %arg1: memref<8x1152xbf16, #tpu.memory_space<vmem>>, %arg2: memref<1152x512xbf16, #tpu.memory_space<vmem>>, %arg3: memref<1x512xf32, #tpu.memory_space<vmem>>, %arg4: memref<1x512xf32, #tpu.memory_space<vmem>>, %arg5: memref<1x512xf32, #tpu.memory_space<vmem>>, %arg6: memref<8x512xbf16, #tpu.memory_space<vmem>>) attributes {dimension_semantics = [#tpu.dimension_semantics<parallel>], iteration_bounds = array<i64: 1>, scalar_prefetch = 0 : i64, scratch_operands = 0 : i64, tpu.core_type = #tpu.core_type<tc>, window_params = [{transform_indices = @transform_0, window_bounds = array<i64: 8, 1152>}, {pipeline_mode = #tpu.pipeline_mode<synchronous>, transform_indices = @transform_1, window_bounds = array<i64: 1152, 512>}, {pipeline_mode = #tpu.pipeline_mode<synchronous>, transform_indices = @transform_2, window_bounds = array<i64: 1, 512>}, {pipeline_mode = #tpu.pipeline_mode<synchronous>, transform_indices = @transform_3, window_bounds = array<i64: 1, 512>}, {pipeline_mode = #tpu.pipeline_mode<synchronous>, transform_indices = @transform_4, window_bounds = array<i64: 1, 512>}, {transform_indices = @transform_5, window_bounds = array<i64: 8, 512>}]} {
    %c0 = arith.constant 0 : index
    %c0_0 = arith.constant 0 : index
    %0 = vector.load %arg1[%c0, %c0_0] : memref<8x1152xbf16, #tpu.memory_space<vmem>>, vector<8x1152xbf16>
    %c0_1 = arith.constant 0 : index
    %c0_2 = arith.constant 0 : index
    %1 = vector.load %arg2[%c0_1, %c0_2] : memref<1152x512xbf16, #tpu.memory_space<vmem>>, vector<1152x512xbf16>
    %cst = arith.constant dense<0.000000e+00> : vector<8x512xf32>
    %2 = tpu.matmul %0, %1, %cst {dimension_numbers = #tpu.dot_dimension_numbers<[1], [0], [0], [1], [0, 0, 1, 1], [], []>} : vector<8x1152xbf16>, vector<1152x512xbf16>, vector<8x512xf32> -> vector<8x512xf32>
    %c0_3 = arith.constant 0 : index
    %c0_4 = arith.constant 0 : index
    %3 = vector.load %arg3[%c0_3, %c0_4] : memref<1x512xf32, #tpu.memory_space<vmem>>, vector<1x512xf32>
    %4 = vector.broadcast %3 : vector<1x512xf32> to vector<8x512xf32>
    %5 = arith.addf %2, %4 : vector<8x512xf32>
    %cst_5 = arith.constant 0.000000e+00 : f32
    %6 = vector.broadcast %cst_5 : f32 to vector<8x512xf32>
    %7 = arith.cmpf oge, %5, %6 : vector<8x512xf32>
    %cst_6 = arith.constant 2.000000e-01 : f32
    %8 = vector.broadcast %cst_6 : f32 to vector<8x512xf32>
    %9 = arith.mulf %8, %5 : vector<8x512xf32>
    %10 = arith.select %7, %5, %9 : vector<8x512xi1>, vector<8x512xf32>
    %c0_7 = arith.constant 0 : index
    %c0_8 = arith.constant 0 : index
    %11 = vector.load %arg4[%c0_7, %c0_8] : memref<1x512xf32, #tpu.memory_space<vmem>>, vector<1x512xf32>
    %12 = vector.broadcast %11 : vector<1x512xf32> to vector<8x512xf32>
    %13 = arith.mulf %10, %12 : vector<8x512xf32>
    %c0_9 = arith.constant 0 : index
    %c0_10 = arith.constant 0 : index
    %14 = vector.load %arg5[%c0_9, %c0_10] : memref<1x512xf32, #tpu.memory_space<vmem>>, vector<1x512xf32>
    %15 = vector.broadcast %14 : vector<1x512xf32> to vector<8x512xf32>
    %16 = arith.addf %13, %15 : vector<8x512xf32>
    %17 = arith.truncf %16 : vector<8x512xf32> to vector<8x512xbf16>
    %c0_11 = arith.constant 0 : index
    %c0_12 = arith.constant 0 : index
    %18 = vector.load %arg6[%c0_11, %c0_12] : memref<8x512xbf16, #tpu.memory_space<vmem>>, vector<8x512xbf16>
    tpu.vector_store %arg6[%c0_11, %c0_12], %17 {strides = array<i32>} : memref<8x512xbf16, #tpu.memory_space<vmem>>, vector<8x512xbf16>,
    return
  }
  func.func @transform_0(%arg0: i32) -> (i32, i32) {
    %c0_i32 = arith.constant 0 : i32
    %c0_i32_0 = arith.constant 0 : i32
    return %arg0, %c0_i32 : i32, i32
  }
  func.func @transform_1(%arg0: i32) -> (i32, i32) {
    %c0_i32 = arith.constant 0 : i32
    %c0_i32_0 = arith.constant 0 : i32
    %c0_i32_1 = arith.constant 0 : i32
    return %c0_i32, %c0_i32_0 : i32, i32
  }
  func.func @transform_2(%arg0: i32) -> (i32, i32) {
    %c0_i32 = arith.constant 0 : i32
    %c0_i32_0 = arith.constant 0 : i32
    %c0_i32_1 = arith.constant 0 : i32
    return %c0_i32, %c0_i32_0 : i32, i32
  }
  func.func @transform_3(%arg0: i32) -> (i32, i32) {
    %c0_i32 = arith.constant 0 : i32
    %c0_i32_0 = arith.constant 0 : i32
    %c0_i32_1 = arith.constant 0 : i32
    return %c0_i32, %c0_i32_0 : i32, i32
  }
  func.func @transform_4(%arg0: i32) -> (i32, i32) {
    %c0_i32 = arith.constant 0 : i32
    %c0_i32_0 = arith.constant 0 : i32
    %c0_i32_1 = arith.constant 0 : i32
    return %c0_i32, %c0_i32_0 : i32, i32
  }
  func.func @transform_5(%arg0: i32) -> (i32, i32) {
    %c0_i32 = arith.constant 0 : i32
    %c0_i32_0 = arith.constant 0 : i32
    return %arg0, %c0_i32 : i32, i32
  }
}

module attributes {stable_mosaic.version = 11 : i64} {
  func.func @_linear_sigmoid_kernel(%arg0: i32, %arg1: memref<8x512xbf16, #tpu.memory_space<vmem>>, %arg2: memref<512x128xbf16, #tpu.memory_space<vmem>>, %arg3: memref<1x128xf32, #tpu.memory_space<vmem>>, %arg4: memref<8x128xf32, #tpu.memory_space<vmem>>) attributes {dimension_semantics = [#tpu.dimension_semantics<parallel>], iteration_bounds = array<i64: 1>, scalar_prefetch = 0 : i64, scratch_operands = 0 : i64, tpu.core_type = #tpu.core_type<tc>, window_params = [{transform_indices = @transform_0, window_bounds = array<i64: 8, 512>}, {pipeline_mode = #tpu.pipeline_mode<synchronous>, transform_indices = @transform_1, window_bounds = array<i64: 512, 128>}, {pipeline_mode = #tpu.pipeline_mode<synchronous>, transform_indices = @transform_2, window_bounds = array<i64: 1, 128>}, {transform_indices = @transform_3, window_bounds = array<i64: 8, 128>}]} {
    %c0 = arith.constant 0 : index
    %c0_0 = arith.constant 0 : index
    %0 = vector.load %arg1[%c0, %c0_0] : memref<8x512xbf16, #tpu.memory_space<vmem>>, vector<8x512xbf16>
    %c0_1 = arith.constant 0 : index
    %c0_2 = arith.constant 0 : index
    %1 = vector.load %arg2[%c0_1, %c0_2] : memref<512x128xbf16, #tpu.memory_space<vmem>>, vector<512x128xbf16>
    %cst = arith.constant dense<0.000000e+00> : vector<8x128xf32>
    %2 = tpu.matmul %0, %1, %cst {dimension_numbers = #tpu.dot_dimension_numbers<[1], [0], [0], [1], [0, 0, 1, 1], [], []>} : vector<8x512xbf16>, vector<512x128xbf16>, vector<8x128xf32> -> vector<8x128xf32>
    %c0_3 = arith.constant 0 : index
    %c0_4 = arith.constant 0 : index
    %3 = vector.load %arg3[%c0_3, %c0_4] : memref<1x128xf32, #tpu.memory_space<vmem>>, vector<1x128xf32>
    %4 = vector.broadcast %3 : vector<1x128xf32> to vector<8x128xf32>
    %5 = arith.addf %2, %4 : vector<8x128xf32>
    %cst_5 = arith.constant 0.000000e+00 : f32
    %6 = vector.broadcast %cst_5 : f32 to vector<8x128xf32>
    %7 = arith.subf %6, %5 : vector<8x128xf32>
    %8 = math.exp %7 : vector<8x128xf32>
    %cst_6 = arith.constant 1.000000e+00 : f32
    %9 = vector.broadcast %cst_6 : f32 to vector<8x128xf32>
    %10 = arith.addf %9, %8 : vector<8x128xf32>
    %11 = tpu.reciprocal %10 {approx = true} : vector<8x128xf32> -> vector<8x128xf32>
    %c0_7 = arith.constant 0 : index
    %c0_8 = arith.constant 0 : index
    %12 = vector.load %arg4[%c0_7, %c0_8] : memref<8x128xf32, #tpu.memory_space<vmem>>, vector<8x128xf32>
    tpu.vector_store %arg4[%c0_7, %c0_8], %11 {strides = array<i32>} : memref<8x128xf32, #tpu.memory_space<vmem>>, vector<8x128xf32>,
    return
  }
  func.func @transform_0(%arg0: i32) -> (i32, i32) {
    %c0_i32 = arith.constant 0 : i32
    %c0_i32_0 = arith.constant 0 : i32
    return %arg0, %c0_i32 : i32, i32
  }
  func.func @transform_1(%arg0: i32) -> (i32, i32) {
    %c0_i32 = arith.constant 0 : i32
    %c0_i32_0 = arith.constant 0 : i32
    %c0_i32_1 = arith.constant 0 : i32
    return %c0_i32, %c0_i32_0 : i32, i32
  }
  func.func @transform_2(%arg0: i32) -> (i32, i32) {
    %c0_i32 = arith.constant 0 : i32
    %c0_i32_0 = arith.constant 0 : i32
    %c0_i32_1 = arith.constant 0 : i32
    return %c0_i32, %c0_i32_0 : i32, i32
  }
  func.func @transform_3(%arg0: i32) -> (i32, i32) {
    %c0_i32 = arith.constant 0 : i32
    %c0_i32_0 = arith.constant 0 : i32
    return %arg0, %c0_i32 : i32, i32
  }
}

</mosaic_0001>

<bundles_post_ra>
// kernel: discriminator_forward.6
= control target key start
LH: loop header
LB: loop body
LE: loop exit
PB: predicated region body
PF: predicated region fallthrough
CT: control target
= control target key end

     0   :  { %vm369_vm0 = vcmask 1041408   ;;  %vm272_vm1 = vcmask 293888   ;;  %vm1252_vm4 = vcmask 125952   ;;  %s2328_s1 = inlined_call_operand.vmem [shape: bf16[36,16], index: 1, kind: input, shape index: {}]   ;;  %s2329_s0 = inlined_call_operand.vmem [shape: bf16[512,36], index: 0, kind: input, shape index: {}]   ;;  %s2330_s2 = inlined_call_operand.vmem [shape: f32[1,16], index: 2, kind: input, shape index: {}]   ;;  %s2331_s3 = inlined_call_operand.vmem [shape: f32[1,16], index: 3, kind: input, shape index: {}]   ;;  %s2332_s4 = inlined_call_operand.vmem [shape: f32[1,16], index: 4, kind: input, shape index: {}]   ;;  %s2333_s5 = inlined_call_operand.vmem [shape: bf16[512,16], index: 5, kind: output, shape index: {}]  }
   0x1   :  { %v1632_v0 = vld [vmem:[%s2328_s1 + $0x10] ss:$0 sps:$4 sm:$0x33]   ;;  %v1633_v1 = vld [vmem:[%s2328_s1 + $0x8] sm:$0xff]   ;;  %v1634_v3 = vld [vmem:[%s2328_s1] sm:$0xff]  }
   0x2   :  { %1630 = vmatprep.subr.msk.bf16.mxu0 %vm369_vm0, %v1632_v0  ;;  %1631 = vmatprep.subr.msk.bf16.mxu1 %vm369_vm0, %v1632_v0  ;;  %v371_v2 = vsel %vm369_vm0, %v1632_v0, 0  ;;  %v1635_v4 = vld [vmem:[%s2329_s0] sm:$0xff]   ;;  %v1637_v6 = vld [vmem:[%s2329_s0 + $0x8] sm:$0xff]   ;;  %v1639_v8 = vld [vmem:[%s2329_s0 + $0x10] sm:$0xff]  }
   0x3   :  { %1555 = vmatpush3.bf16.msra.mxu0 %v371_v2  ;;  %1627 = vmatpush3.bf16.msra.mxu1 %v371_v2  ;;  %v1636_v5 = vld [vmem:[%s2329_s0 + $0x80] sm:$0xff]   ;;  %v1638_v7 = vld [vmem:[%s2329_s0 + $0x88] sm:$0xff]   ;;  %v1640_v9 = vld [vmem:[%s2329_s0 + $0x90] sm:$0xff]  }
   0x4   :  { %1556 = vmatprep.subr.bf16.mxu0 %v1633_v1  ;;  %1625 = vmatprep.subr.bf16.mxu1 %v1633_v1  ;;  %v1641_v10 = vld [vmem:[%s2329_s0 + $0x18] sm:$0xff]   ;;  %v1643_v12 = vld [vmem:[%s2329_s0 + $0x20] sm:$0xff]   ;;  %v1645_v14 = vld [vmem:[%s2329_s0 + $0x28] sm:$0xff]  }
   0x5   :  { %1560 = vmatprep.mubr.msk.bf16.mxu0 %vm272_vm1, %v1635_v4  ;;  %1592 = vmatprep.mubr.msk.bf16.mxu1 %vm272_vm1, %v1636_v5  ;;  %v1642_v11 = vld [vmem:[%s2329_s0 + $0x98] sm:$0xff]   ;;  %v1644_v13 = vld [vmem:[%s2329_s0 + $0xa0] sm:$0xff]   ;;  %v1646_v15 = vld [vmem:[%s2329_s0 + $0xa8] sm:$0xff]  }
   0x6   :  { %v1647_v16 = vld [vmem:[%s2329_s0 + $0x30] sm:$0xff]   ;;  %v1649_v18 = vld [vmem:[%s2329_s0 + $0x38] sm:$0xff]   ;;  %v1651_v20 = vld [vmem:[%s2329_s0 + $0x40] sm:$0xff]  }
   0x7   :  { %1557 = vmatpush3.bf16.msra.mxu0 %v1633_v1  ;;  %1628 = vmatpush3.bf16.msra.mxu1 %v1633_v1  ;;  %v1648_v17 = vld [vmem:[%s2329_s0 + $0xb0] sm:$0xff]   ;;  %v1650_v19 = vld [vmem:[%s2329_s0 + $0xb8] sm:$0xff]   ;;  %v1652_v21 = vld [vmem:[%s2329_s0 + $0xc0] sm:$0xff]  }
   0x8   :  { %1558 = vmatprep.subr.bf16.mxu0 %v1634_v3  ;;  %1626 = vmatprep.subr.bf16.mxu1 %v1634_v3  ;;  %v1653_v22 = vld [vmem:[%s2329_s0 + $0x48] sm:$0xff]   ;;  %v1655_v24 = vld [vmem:[%s2329_s0 + $0x50] sm:$0xff]   ;;  %v1657_v26 = vld [vmem:[%s2329_s0 + $0x58] sm:$0xff]  }
   0x9   :  { %v1654_v23 = vld [vmem:[%s2329_s0 + $0xc8] sm:$0xff]   ;;  %v1656_v25 = vld [vmem:[%s2329_s0 + $0xd0] sm:$0xff]   ;;  %v1658_v27 = vld [vmem:[%s2329_s0 + $0xd8] sm:$0xff]  }
   0xa   :  { %v1659_v28 = vld [vmem:[%s2329_s0 + $0x60] sm:$0xff]   ;;  %v1661_v30 = vld [vmem:[%s2329_s0 + $0x68] sm:$0xff]   ;;  %v1663_v32 = vld [vmem:[%s2329_s0 + $0x70] sm:$0xff]  }
   0xb   :  { %1559 = vmatpush3.bf16.msra.mxu0 %v1634_v3  ;;  %1629 = vmatpush3.bf16.msra.mxu1 %v1634_v3  ;;  %v1660_v29 = vld [vmem:[%s2329_s0 + $0xe0] sm:$0xff]   ;;  %v1662_v31 = vld [vmem:[%s2329_s0 + $0xe8] sm:$0xff]   ;;  %v1664_v33 = vld [vmem:[%s2329_s0 + $0xf0] sm:$0xff]  }
   0xc   :  { %v1665_v34 = vld [vmem:[%s2329_s0 + $0x78] sm:$0xff]   ;;  %v1840_v36 = vld [vmem:[%s2330_s2] ss:$0 sm:$0xff] }
   0xd   :  { %v1666_v35 = vld [vmem:[%s2329_s0 + $0xf8] sm:$0xff]   ;;  %v1847_v41 = vld [vmem:[%s2331_s3] ss:$0 sm:$0xff] }
   0xe   :  { %1561 = vmatmul.mubr.msk.bf16.vlgmr.msra.gmra.mxu0 %vm272_vm1, %v1637_v6  ;;  %1593 = vmatmul.mubr.msk.bf16.vlgmr.msra.gmra.mxu1 %vm272_vm1, %v1638_v7  ;;  %v1854_v51 = vld [vmem:[%s2332_s4] ss:$0 sm:$0xff] }
   0xf   :  { %1564 = vmatprep.mubr.msk.bf16.mxu0 %vm272_vm1, %v1639_v8  ;;  %1596 = vmatprep.mubr.msk.bf16.mxu1 %vm272_vm1, %v1640_v9 }
  0x16   :  { %1565 = vmatmul.mubr.msk.bf16.gmra.mxu0 %vm272_vm1, %v1641_v10  ;;  %1597 = vmatmul.mubr.msk.bf16.gmra.mxu1 %vm272_vm1, %v1642_v11 }
  0x17   :  { %1568 = vmatprep.mubr.msk.bf16.mxu0 %vm272_vm1, %v1643_v12  ;;  %1600 = vmatprep.mubr.msk.bf16.mxu1 %vm272_vm1, %v1644_v13 }
  0x1e   :  { %1569 = vmatmul.mubr.msk.bf16.gmra.mxu0 %vm272_vm1, %v1645_v14  ;;  %1601 = vmatmul.mubr.msk.bf16.gmra.mxu1 %vm272_vm1, %v1646_v15 }
  0x1f   :  { %1572 = vmatprep.mubr.msk.bf16.mxu0 %vm272_vm1, %v1647_v16  ;;  %1604 = vmatprep.mubr.msk.bf16.mxu1 %vm272_vm1, %v1648_v17 }
  0x26   :  { %1573 = vmatmul.mubr.msk.bf16.gmra.mxu0 %vm272_vm1, %v1649_v18  ;;  %1605 = vmatmul.mubr.msk.bf16.gmra.mxu1 %vm272_vm1, %v1650_v19 }
  0x27   :  { %1576 = vmatprep.mubr.msk.bf16.mxu0 %vm272_vm1, %v1651_v20  ;;  %1608 = vmatprep.mubr.msk.bf16.mxu1 %vm272_vm1, %v1652_v21 }
  0x2e   :  { %1577 = vmatmul.mubr.msk.bf16.gmra.mxu0 %vm272_vm1, %v1653_v22  ;;  %1609 = vmatmul.mubr.msk.bf16.gmra.mxu1 %vm272_vm1, %v1654_v23 }
  0x2f   :  { %1580 = vmatprep.mubr.msk.bf16.mxu0 %vm272_vm1, %v1655_v24  ;;  %1612 = vmatprep.mubr.msk.bf16.mxu1 %vm272_vm1, %v1656_v25 }
  0x36   :  { %1581 = vmatmul.mubr.msk.bf16.gmra.mxu0 %vm272_vm1, %v1657_v26  ;;  %1613 = vmatmul.mubr.msk.bf16.gmra.mxu1 %vm272_vm1, %v1658_v27 }
  0x37   :  { %1584 = vmatprep.mubr.msk.bf16.mxu0 %vm272_vm1, %v1659_v28  ;;  %1616 = vmatprep.mubr.msk.bf16.mxu1 %vm272_vm1, %v1660_v29 }
  0x3e   :  { %1585 = vmatmul.mubr.msk.bf16.gmra.mxu0 %vm272_vm1, %v1661_v30  ;;  %1617 = vmatmul.mubr.msk.bf16.gmra.mxu1 %vm272_vm1, %v1662_v31 }
  0x3f   :  { %1588 = vmatprep.mubr.msk.bf16.mxu0 %vm272_vm1, %v1663_v32  ;;  %1620 = vmatprep.mubr.msk.bf16.mxu1 %vm272_vm1, %v1664_v33 }
  0x46   :  { %1589 = vmatmul.mubr.msk.bf16.gmra.mxu0 %vm272_vm1, %v1665_v34  ;;  %1621 = vmatmul.mubr.msk.bf16.gmra.mxu1 %vm272_vm1, %v1666_v35 }
  0xce   :  { %v1562_v37 = vpop.f32.mrf.mxu0  ;;  %v1594_v38 = vpop.f32.mrf.mxu1 }
  0xcf   :  { %v416_v39 = vadd.f32 %v1562_v37, %v1840_v36  ;;  %v544_v40 = vadd.f32 %v1594_v38, %v1840_v36 }
  0xd0   :  { %v407_v42 = vpop.f32.mrf.mxu0  ;;  %v535_v43 = vpop.f32.mrf.mxu1 }
  0xd1   :  { %vm664_vm2 = vcmp.ge.f32.partialorder %v416_v39, 0.0  ;;  %v728_v44 = vmul.f32 0.2, %v416_v39  ;;  %vm696_vm3 = vcmp.ge.f32.partialorder %v544_v40, 0.0  ;;  %v760_v45 = vmul.f32 0.2, %v544_v40 }
  0xd2   :  { %v408_v46 = vadd.f32 %v1840_v36, %v407_v42  ;;  %v536_v47 = vadd.f32 %v1840_v36, %v535_v43  ;;  %v1563_v48 = vpop.f32.mrf.mxu0  ;;  %v1595_v49 = vpop.f32.mrf.mxu1 }
  0xd3   :  { %v792_v50 = vsel %vm664_vm2, %v416_v39, %v728_v44  ;;  %v824_v52 = vsel %vm696_vm3, %v544_v40, %v760_v45  ;;  %v419_v53 = vadd.f32 %v1563_v48, %v1840_v36  ;;  %v547_v54 = vadd.f32 %v1595_v49, %v1840_v36 }
  0xd4   :  { %v863_v55 = vmul.f32 %v1847_v41, %v792_v50  ;;  %v895_v56 = vmul.f32 %v1847_v41, %v824_v52  ;;  %vm662_vm5 = vcmp.ge.f32.partialorder %v408_v46, 0.0  ;;  %v726_v57 = vmul.f32 0.2, %v408_v46  ;;  %v410_v58 = vpop.f32.mrf.mxu0  ;;  %v538_v59 = vpop.f32.mrf.mxu1 }
  0xd5   :  { %vm694_vm6 = vcmp.ge.f32.partialorder %v536_v47, 0.0  ;;  %v758_v60 = vmul.f32 0.2, %v536_v47  ;;  %vm665_vm7 = vcmp.ge.f32.partialorder %v419_v53, 0.0  ;;  %v729_v61 = vmul.f32 0.2, %v419_v53 }
  0xd6   :  { %v934_v62 = vadd.f32 %v1854_v51, %v863_v55  ;;  %v966_v63 = vadd.f32 %v1854_v51, %v895_v56  ;;  %v790_v0 = vsel %vm662_vm5, %v408_v46, %v726_v57  ;;  %vm697_vm8 = vcmp.ge.f32.partialorder %v547_v54, 0.0  ;;  %v1566_v1 = vpop.f32.mrf.mxu0  ;;  %v1598_v2 = vpop.f32.mrf.mxu1 }
  0xd7   :  { %v861_v3 = vmul.f32 %v1847_v41, %v790_v0  ;;  %v822_v4 = vsel %vm694_vm6, %v536_v47, %v758_v60  ;;  %v793_v5 = vsel %vm665_vm7, %v419_v53, %v729_v61  ;;  %v761_v6 = vmul.f32 0.2, %v547_v54 }
  0xd8   :  { %v1457_v7 = vpack.c.bf16 %v934_v62, %v934_v62  ;;  %v1489_v8 = vpack.c.bf16 %v966_v63, %v966_v63  ;;  %v893_v9 = vmul.f32 %v1847_v41, %v822_v4  ;;  %v864_v10 = vmul.f32 %v1847_v41, %v793_v5  ;;  %v423_v11 = vpop.f32.mrf.mxu0  ;;  %v551_v12 = vpop.f32.mrf.mxu1 }
  0xd9   :  { %v932_v13 = vadd.f32 %v1854_v51, %v861_v3  ;;  %v825_v14 = vsel %vm697_vm8, %v547_v54, %v761_v6  ;;  %v411_v15 = vadd.f32 %v1840_v36, %v410_v58  ;;  %v539_v16 = vadd.f32 %v1840_v36, %v538_v59 }
  0xda   :  { %1255 = vst.msk [vmem:[%s2333_s5 + $0x8] sm:$0xf] %vm1252_vm4, %v1457_v7  ;;  %1287 = vst.msk [vmem:[%s2333_s5 + $0x88] sm:$0xf] %vm1252_vm4, %v1489_v8  ;;  %v964_v17 = vadd.f32 %v1854_v51, %v893_v9  ;;  %v935_v18 = vadd.f32 %v1854_v51, %v864_v10  ;;  %v896_v19 = vmul.f32 %v1847_v41, %v825_v14  ;;  %v1567_v21 = vpop.f32.mrf.mxu0  ;;  %v1599_v22 = vpop.f32.mrf.mxu1 }
  0xdb   :  { %v432_v20 = vadd.f32 %v1566_v1, %v1840_v36  ;;  %v1455_v23 = vpack.c.bf16 %v932_v13, %v932_v13  ;;  %vm663_vm9 = vcmp.ge.f32.partialorder %v411_v15, 0.0  ;;  %v727_v24 = vmul.f32 0.2, %v411_v15 }
  0xdc   :  { %vm695_vm10 = vcmp.ge.f32.partialorder %v539_v16, 0.0  ;;  %v1487_v25 = vpack.c.bf16 %v964_v17, %v964_v17  ;;  %v1458_v26 = vpack.c.bf16 %v935_v18, %v935_v18  ;;  %v967_v27 = vadd.f32 %v1854_v51, %v896_v19  ;;  %v426_v29 = vpop.f32.mrf.mxu0  ;;  %v554_v30 = vpop.f32.mrf.mxu1 }
  0xdd   :  { %v759_v28 = vmul.f32 0.2, %v539_v16  ;;  %1253 = vst.msk [vmem:[%s2333_s5] sm:$0xf] %vm1252_vm4, %v1455_v23  ;;  %v791_v31 = vsel %vm663_vm9, %v411_v15, %v727_v24  ;;  %vm668_vm11 = vcmp.ge.f32.partialorder %v432_v20, 0.0  ;;  %v560_v33 = vadd.f32 %v1598_v2, %v1840_v36 }
  0xde   :  { %v732_v32 = vmul.f32 0.2, %v432_v20  ;;  %1285 = vst.msk [vmem:[%s2333_s5 + $0x80] sm:$0xf] %vm1252_vm4, %v1487_v25  ;;  %1256 = vst.msk [vmem:[%s2333_s5 + $0xc] sm:$0xf] %vm1252_vm4, %v1458_v26  ;;  %v1490_v34 = vpack.c.bf16 %v967_v27, %v967_v27  ;;  %v862_v35 = vmul.f32 %v1847_v41, %v791_v31  ;;  %v424_v38 = vadd.f32 %v1840_v36, %v423_v11  ;;  %v1570_v39 = vpop.f32.mrf.mxu0  ;;  %v1602_v40 = vpop.f32.mrf.mxu1 }
  0xdf   :  { %v823_v37 = vsel %vm695_vm10, %v539_v16, %v759_v28  ;;  %vm700_vm12 = vcmp.ge.f32.partialorder %v560_v33, 0.0  ;;  %v764_v44 = vmul.f32 0.2, %v560_v33  ;;  %v552_v53 = vadd.f32 %v1840_v36, %v551_v12 }
  0xe0   :  { %v894_v42 = vmul.f32 %v1847_v41, %v823_v37  ;;  %v796_v43 = vsel %vm668_vm11, %v432_v20, %v732_v32  ;;  %1288 = vst.msk [vmem:[%s2333_s5 + $0x8c] sm:$0xf] %vm1252_vm4, %v1490_v34  ;;  %v933_v45 = vadd.f32 %v1854_v51, %v862_v35  ;;  %vm666_vm13 = vcmp.ge.f32.partialorder %v424_v38, 0.0  ;;  %v1904_v48 = vpop.f32.mrf.mxu0  ;;  %v1906_v49 = vpop.f32.mrf.mxu1 }
  0xe1   :  { %v867_v46 = vmul.f32 %v1847_v41, %v796_v43  ;;  %v730_v47 = vmul.f32 0.2, %v424_v38  ;;  %v828_v52 = vsel %vm700_vm12, %v560_v33, %v764_v44  ;;  %v435_v54 = vadd.f32 %v1567_v21, %v1840_v36 }
  0xe2   :  { %v965_v50 = vadd.f32 %v1854_v51, %v894_v42  ;;  %v1456_v55 = vpack.c.bf16 %v933_v45, %v933_v45  ;;  %v899_v57 = vmul.f32 %v1847_v41, %v828_v52  ;;  %v1571_v59 = vpop.f32.mrf.mxu0  ;;  %v1913_v60 = vpop.f32.mrf.mxu1  ;;  %vm698_vm14 = vcmp.ge.f32.partialorder %v552_v53, 0.0 }
  0xe3   :  { %v938_v56 = vadd.f32 %v1854_v51, %v867_v46  ;;  %v794_v58 = vsel %vm666_vm13, %v424_v38, %v730_v47  ;;  %v762_v63 = vmul.f32 0.2, %v552_v53  ;;  %vm669_vm15 = vcmp.ge.f32.partialorder %v435_v54, 0.0 }
  0xe4   :  { %v1488_v61 = vpack.c.bf16 %v965_v50, %v965_v50  ;;  %v865_v62 = vmul.f32 %v1847_v41, %v794_v58  ;;  %1254 = vst.msk [vmem:[%s2333_s5 + $0x4] sm:$0xf] %vm1252_vm4, %v1456_v55  ;;  %v970_v1 = vadd.f32 %v1854_v51, %v899_v57  ;;  %v733_v2 = vmul.f32 0.2, %v435_v54  ;;  %v442_v11 = vpop.f32.mrf.mxu0  ;;  %v1934_v12 = vpop.f32.mrf.mxu1 }
  0xe5   :  { %v1461_v0 = vpack.c.bf16 %v938_v56, %v938_v56  ;;  %v826_v4 = vsel %vm698_vm14, %v552_v53, %v762_v63  ;;  %v563_v5 = vadd.f32 %v1599_v22, %v1840_v36  ;;  %v427_v6 = vadd.f32 %v1840_v36, %v426_v29 }
  0xe6   :  { %1286 = vst.msk [vmem:[%s2333_s5 + $0x84] sm:$0xf] %vm1252_vm4, %v1488_v61  ;;  %v936_v3 = vadd.f32 %v1854_v51, %v865_v62  ;;  %v1493_v7 = vpack.c.bf16 %v970_v1, %v970_v1  ;;  %v897_v8 = vmul.f32 %v1847_v41, %v826_v4  ;;  %v797_v9 = vsel %vm669_vm15, %v435_v54, %v733_v2  ;;  %v1574_v26 = vpop.f32.mrf.mxu0  ;;  %v1950_v27 = vpop.f32.mrf.mxu1 }
  0xe7   :  { %1259 = vst.msk [vmem:[%s2333_s5 + $0x18] sm:$0xf] %vm1252_vm4, %v1461_v0  ;;  %v555_v10 = vadd.f32 %v1840_v36, %v554_v30  ;;  %v868_v14 = vmul.f32 %v1847_v41, %v797_v9  ;;  %vm701_vm0 = vcmp.ge.f32.partialorder %v563_v5, 0.0  ;;  %v765_v15 = vmul.f32 0.2, %v563_v5 }
  0xe8   :  { %v1459_v13 = vpack.c.bf16 %v936_v3, %v936_v3  ;;  %1291 = vst.msk [vmem:[%s2333_s5 + $0x98] sm:$0xf] %vm1252_vm4, %v1493_v7  ;;  %v968_v16 = vadd.f32 %v1854_v51, %v897_v8  ;;  %vm667_vm1 = vcmp.ge.f32.partialorder %v427_v6, 0.0  ;;  %v731_v17 = vmul.f32 0.2, %v427_v6  ;;  %v1970_v44 = vpop.f32.mrf.mxu0  ;;  %v1972_v45 = vpop.f32.mrf.mxu1 }
  0xe9   :  { %vm699_vm2 = vcmp.ge.f32.partialorder %v555_v10, 0.0  ;;  %v939_v18 = vadd.f32 %v1854_v51, %v868_v14  ;;  %v829_v19 = vsel %vm701_vm0, %v563_v5, %v765_v15  ;;  %v763_v20 = vmul.f32 0.2, %v555_v10 }
  0xea   :  { %1257 = vst.msk [vmem:[%s2333_s5 + $0x10] sm:$0xf] %vm1252_vm4, %v1459_v13  ;;  %v448_v21 = vadd.f32 %v1570_v39, %v1840_v36  ;;  %v1491_v22 = vpack.c.bf16 %v968_v16, %v968_v16  ;;  %v900_v23 = vmul.f32 %v1847_v41, %v829_v19  ;;  %v795_v24 = vsel %vm667_vm1, %v427_v6, %v731_v17  ;;  %v1993_v61 = vpop.f32.mrf.mxu0  ;;  %v1995_v62 = vpop.f32.mrf.mxu1 }
  0xeb   :  { %v576_v25 = vadd.f32 %v1602_v40, %v1840_v36  ;;  %v1462_v28 = vpack.c.bf16 %v939_v18, %v939_v18  ;;  %v866_v29 = vmul.f32 %v1847_v41, %v795_v24  ;;  %v827_v30 = vsel %vm699_vm2, %v555_v10, %v763_v20 }
  0xec   :  { %vm672_vm3 = vcmp.ge.f32.partialorder %v448_v21, 0.0  ;;  %1289 = vst.msk [vmem:[%s2333_s5 + $0x90] sm:$0xf] %vm1252_vm4, %v1491_v22  ;;  %v971_v31 = vadd.f32 %v1854_v51, %v900_v23  ;;  %v898_v32 = vmul.f32 %v1847_v41, %v827_v30  ;;  %v736_v33 = vmul.f32 0.2, %v448_v21  ;;  %v458_v13 = vpop.f32.mrf.mxu0  ;;  %v2014_v14 = vpop.f32.mrf.mxu1 }
  0xed   :  { %vm704_vm5 = vcmp.ge.f32.partialorder %v576_v25, 0.0  ;;  %1260 = vst.msk [vmem:[%s2333_s5 + $0x1c] sm:$0xf] %vm1252_vm4, %v1462_v28  ;;  %v937_v34 = vadd.f32 %v1854_v51, %v866_v29  ;;  %v768_v35 = vmul.f32 0.2, %v576_v25  ;;  %v440_v37 = vadd.f32 %v1840_v36, %v1904_v48 }
  0xee   :  { %v568_v38 = vadd.f32 %v1840_v36, %v1906_v49  ;;  %v1494_v39 = vpack.c.bf16 %v971_v31, %v971_v31  ;;  %v969_v40 = vadd.f32 %v1854_v51, %v898_v32  ;;  %v800_v42 = vsel %vm672_vm3, %v448_v21, %v736_v33  ;;  %v2034_v28 = vpop.f32.mrf.mxu1 }
  0xef   :  { %v451_v43 = vadd.f32 %v1571_v59, %v1840_v36  ;;  %v1460_v46 = vpack.c.bf16 %v937_v34, %v937_v34  ;;  %v871_v47 = vmul.f32 %v1847_v41, %v800_v42  ;;  %v832_v50 = vsel %vm704_vm5, %v576_v25, %v768_v35 }
  0xf0   :  { %vm670_vm6 = vcmp.ge.f32.partialorder %v440_v37, 0.0  ;;  %1292 = vst.msk [vmem:[%s2333_s5 + $0x9c] sm:$0xf] %vm1252_vm4, %v1494_v39  ;;  %v1492_v48 = vpack.c.bf16 %v969_v40, %v969_v40  ;;  %v903_v49 = vmul.f32 %v1847_v41, %v832_v50  ;;  %v734_v52 = vmul.f32 0.2, %v440_v37 }
  0xf1   :  { %vm702_vm7 = vcmp.ge.f32.partialorder %v568_v38, 0.0  ;;  %1258 = vst.msk [vmem:[%s2333_s5 + $0x14] sm:$0xf] %vm1252_vm4, %v1460_v46  ;;  %v942_v53 = vadd.f32 %v1854_v51, %v871_v47  ;;  %v766_v54 = vmul.f32 0.2, %v568_v38  ;;  %vm673_vm8 = vcmp.ge.f32.partialorder %v451_v43, 0.0  ;;  %v2053_v46 = vpop.f32.mrf.mxu1 }
  0xf2   :  { %v737_v55 = vmul.f32 0.2, %v451_v43  ;;  %1290 = vst.msk [vmem:[%s2333_s5 + $0x94] sm:$0xf] %vm1252_vm4, %v1492_v48  ;;  %v974_v56 = vadd.f32 %v1854_v51, %v903_v49  ;;  %v798_v57 = vsel %vm670_vm6, %v440_v37, %v734_v52  ;;  %v579_v58 = vadd.f32 %v1913_v60, %v1840_v36 }
  0xf3   :  { %v443_v59 = vadd.f32 %v1840_v36, %v442_v11  ;;  %v1465_v63 = vpack.c.bf16 %v942_v53, %v942_v53  ;;  %v869_v0 = vmul.f32 %v1847_v41, %v798_v57  ;;  %v830_v1 = vsel %vm702_vm7, %v568_v38, %v766_v54 }
  0xf4   :  { %v801_v2 = vsel %vm673_vm8, %v451_v43, %v737_v55  ;;  %v1497_v3 = vpack.c.bf16 %v974_v56, %v974_v56  ;;  %v901_v4 = vmul.f32 %v1847_v41, %v830_v1  ;;  %vm705_vm9 = vcmp.ge.f32.partialorder %v579_v58, 0.0 }
  0xf5   :  { %v872_v5 = vmul.f32 %v1847_v41, %v801_v2  ;;  %1263 = vst.msk [vmem:[%s2333_s5 + $0x28] sm:$0xf] %vm1252_vm4, %v1465_v63  ;;  %v940_v60 = vadd.f32 %v1854_v51, %v869_v0  ;;  %v769_v6 = vmul.f32 0.2, %v579_v58  ;;  %vm671_vm10 = vcmp.ge.f32.partialorder %v443_v59, 0.0  ;;  %v1611_v0 = vpop.f32.mrf.mxu1 }
  0xf6   :  { %v735_v7 = vmul.f32 0.2, %v443_v59  ;;  %1295 = vst.msk [vmem:[%s2333_s5 + $0xa8] sm:$0xf] %vm1252_vm4, %v1497_v3  ;;  %v972_v8 = vadd.f32 %v1854_v51, %v901_v4  ;;  %v571_v10 = vadd.f32 %v1840_v36, %v1934_v12  ;;  %v464_v11 = vadd.f32 %v1574_v26, %v1840_v36 }
  0xf7   :  { %v943_v9 = vadd.f32 %v1854_v51, %v872_v5  ;;  %v1463_v15 = vpack.c.bf16 %v940_v60, %v940_v60  ;;  %v833_v16 = vsel %vm705_vm9, %v579_v58, %v769_v6  ;;  %v592_v18 = vadd.f32 %v1950_v27, %v1840_v36  ;;  %v1578_v27 = vpop.f32.mrf.mxu0 }
  0xf8   :  { %v799_v17 = vsel %vm671_vm10, %v443_v59, %v735_v7  ;;  %v1495_v19 = vpack.c.bf16 %v972_v8, %v972_v8  ;;  %v904_v21 = vmul.f32 %v1847_v41, %v833_v16  ;;  %vm703_vm11 = vcmp.ge.f32.partialorder %v571_v10, 0.0  ;;  %v602_v16 = vpop.f32.mrf.mxu1 }
  0xf9   :  { %v1466_v20 = vpack.c.bf16 %v943_v9, %v943_v9  ;;  %v870_v22 = vmul.f32 %v1847_v41, %v799_v17  ;;  %1261 = vst.msk [vmem:[%s2333_s5 + $0x20] sm:$0xf] %vm1252_vm4, %v1463_v15  ;;  %v767_v12 = vmul.f32 0.2, %v571_v10  ;;  %vm676_vm12 = vcmp.ge.f32.partialorder %v464_v11, 0.0 }
  0xfa   :  { %v740_v23 = vmul.f32 0.2, %v464_v11  ;;  %1293 = vst.msk [vmem:[%s2333_s5 + $0xa0] sm:$0xf] %vm1252_vm4, %v1495_v19  ;;  %v975_v24 = vadd.f32 %v1854_v51, %v904_v21  ;;  %vm708_vm13 = vcmp.ge.f32.partialorder %v592_v18, 0.0  ;;  %v456_v31 = vadd.f32 %v1840_v36, %v1970_v44 }
  0xfb   :  { %1264 = vst.msk [vmem:[%s2333_s5 + $0x2c] sm:$0xf] %vm1252_vm4, %v1466_v20  ;;  %v941_v25 = vadd.f32 %v1854_v51, %v870_v22  ;;  %v772_v26 = vmul.f32 0.2, %v592_v18  ;;  %v831_v29 = vsel %vm703_vm11, %v571_v10, %v767_v12  ;;  %v584_v32 = vadd.f32 %v1840_v36, %v1972_v45  ;;  %v471_v45 = vpop.f32.mrf.mxu0 }
  0xfc   :  { %v804_v30 = vsel %vm676_vm12, %v464_v11, %v740_v23  ;;  %v1498_v33 = vpack.c.bf16 %v975_v24, %v975_v24  ;;  %v902_v35 = vmul.f32 %v1847_v41, %v831_v29  ;;  %vm674_vm14 = vcmp.ge.f32.partialorder %v456_v31, 0.0 }
  0xfd   :  { %v1464_v34 = vpack.c.bf16 %v941_v25, %v941_v25  ;;  %v875_v37 = vmul.f32 %v1847_v41, %v804_v30  ;;  %v836_v38 = vsel %vm708_vm13, %v592_v18, %v772_v26  ;;  %v738_v39 = vmul.f32 0.2, %v456_v31  ;;  %v1579_v63 = vpop.f32.mrf.mxu0  ;;  %v1614_v30 = vpop.f32.mrf.mxu1 }
  0xfe   :  { %vm706_vm15 = vcmp.ge.f32.partialorder %v584_v32, 0.0  ;;  %1296 = vst.msk [vmem:[%s2333_s5 + $0xac] sm:$0xf] %vm1252_vm4, %v1498_v33  ;;  %v973_v40 = vadd.f32 %v1854_v51, %v902_v35  ;;  %v907_v43 = vmul.f32 %v1847_v41, %v836_v38  ;;  %v770_v44 = vmul.f32 0.2, %v584_v32 }
  0xff   :  { %1262 = vst.msk [vmem:[%s2333_s5 + $0x24] sm:$0xf] %vm1252_vm4, %v1464_v34  ;;  %v946_v42 = vadd.f32 %v1854_v51, %v875_v37  ;;  %v802_v47 = vsel %vm674_vm14, %v456_v31, %v738_v39  ;;  %v467_v50 = vadd.f32 %v1993_v61, %v1840_v36  ;;  %v595_v48 = vadd.f32 %v1995_v62, %v1840_v36  ;;  %v474_v15 = vpop.f32.mrf.mxu0 }
 0x100   :  { %v459_v49 = vadd.f32 %v1840_v36, %v458_v13  ;;  %v1496_v52 = vpack.c.bf16 %v973_v40, %v973_v40  ;;  %v978_v54 = vadd.f32 %v1854_v51, %v907_v43  ;;  %v873_v55 = vmul.f32 %v1847_v41, %v802_v47 }
 0x101   :  { %v1469_v53 = vpack.c.bf16 %v946_v42, %v946_v42  ;;  %v834_v56 = vsel %vm706_vm15, %v584_v32, %v770_v44  ;;  %vm677_vm0 = vcmp.ge.f32.partialorder %v467_v50, 0.0  ;;  %v741_v57 = vmul.f32 0.2, %v467_v50  ;;  %v1582_v29 = vpop.f32.mrf.mxu0 }
 0x102   :  { %vm709_vm1 = vcmp.ge.f32.partialorder %v595_v48, 0.0  ;;  %1294 = vst.msk [vmem:[%s2333_s5 + $0xa4] sm:$0xf] %vm1252_vm4, %v1496_v52  ;;  %v1501_v58 = vpack.c.bf16 %v978_v54, %v978_v54  ;;  %v944_v59 = vadd.f32 %v1854_v51, %v873_v55  ;;  %v905_v61 = vmul.f32 %v1847_v41, %v834_v56 }
 0x103   :  { %1267 = vst.msk [vmem:[%s2333_s5 + $0x38] sm:$0xf] %vm1252_vm4, %v1469_v53  ;;  %v773_v62 = vmul.f32 0.2, %v595_v48  ;;  %v805_v1 = vsel %vm677_vm0, %v467_v50, %v741_v57  ;;  %vm675_vm2 = vcmp.ge.f32.partialorder %v459_v49, 0.0  ;;  %v587_v3 = vadd.f32 %v1840_v36, %v2014_v14  ;;  %v487_v47 = vpop.f32.mrf.mxu0  ;;  %v615_v50 = vpop.f32.mrf.mxu1 }
 0x104   :  { %v739_v2 = vmul.f32 0.2, %v459_v49  ;;  %1299 = vst.msk [vmem:[%s2333_s5 + $0xb8] sm:$0xf] %vm1252_vm4, %v1501_v58  ;;  %v1467_v4 = vpack.c.bf16 %v944_v59, %v944_v59  ;;  %v976_v5 = vadd.f32 %v1854_v51, %v905_v61  ;;  %v876_v60 = vmul.f32 %v1847_v41, %v805_v1 }
 0x105   :  { %v837_v6 = vsel %vm709_vm1, %v595_v48, %v773_v62  ;;  %vm707_vm3 = vcmp.ge.f32.partialorder %v587_v3, 0.0  ;;  %v771_v9 = vmul.f32 0.2, %v587_v3  ;;  %v480_v14 = vadd.f32 %v1578_v27, %v1840_v36  ;;  %v1615_v1 = vpop.f32.mrf.mxu1 }
 0x106   :  { %v908_v7 = vmul.f32 %v1847_v41, %v837_v6  ;;  %v803_v8 = vsel %vm675_vm2, %v459_v49, %v739_v2  ;;  %1265 = vst.msk [vmem:[%s2333_s5 + $0x30] sm:$0xf] %vm1252_vm4, %v1467_v4  ;;  %v1499_v10 = vpack.c.bf16 %v976_v5, %v976_v5  ;;  %v947_v11 = vadd.f32 %v1854_v51, %v876_v60 }
 0x107   :  { %v874_v13 = vmul.f32 %v1847_v41, %v803_v8  ;;  %v835_v18 = vsel %vm707_vm3, %v587_v3, %v771_v9  ;;  %v608_v19 = vadd.f32 %v2034_v28, %v1840_v36  ;;  %v472_v20 = vadd.f32 %v1840_v36, %v471_v45 }
 0x108   :  { %v979_v17 = vadd.f32 %v1854_v51, %v908_v7  ;;  %1297 = vst.msk [vmem:[%s2333_s5 + $0xb0] sm:$0xf] %vm1252_vm4, %v1499_v10  ;;  %v1470_v21 = vpack.c.bf16 %v947_v11, %v947_v11  ;;  %v906_v12 = vmul.f32 %v1847_v41, %v835_v18  ;;  %vm680_vm5 = vcmp.ge.f32.partialorder %v480_v14, 0.0 }
 0x109   :  { %v945_v22 = vadd.f32 %v1854_v51, %v874_v13  ;;  %v744_v24 = vmul.f32 0.2, %v480_v14  ;;  %vm712_vm6 = vcmp.ge.f32.partialorder %v608_v19, 0.0  ;;  %v776_v25 = vmul.f32 0.2, %v608_v19 }
 0x10a   :  { %v1502_v23 = vpack.c.bf16 %v979_v17, %v979_v17  ;;  %1268 = vst.msk [vmem:[%s2333_s5 + $0x3c] sm:$0xf] %vm1252_vm4, %v1470_v21  ;;  %v977_v27 = vadd.f32 %v1854_v51, %v906_v12  ;;  %vm678_vm7 = vcmp.ge.f32.partialorder %v472_v20, 0.0  ;;  %v742_v28 = vmul.f32 0.2, %v472_v20  ;;  %v618_v17 = vpop.f32.mrf.mxu1 }
 0x10b   :  { %v1468_v26 = vpack.c.bf16 %v945_v22, %v945_v22  ;;  %v808_v31 = vsel %vm680_vm5, %v480_v14, %v744_v24  ;;  %v840_v32 = vsel %vm712_vm6, %v608_v19, %v776_v25  ;;  %v600_v33 = vadd.f32 %v1840_v36, %v2053_v46 }
 0x10c   :  { %1300 = vst.msk [vmem:[%s2333_s5 + $0xbc] sm:$0xf] %vm1252_vm4, %v1502_v23  ;;  %v483_v34 = vadd.f32 %v1579_v63, %v1840_v36  ;;  %v1500_v35 = vpack.c.bf16 %v977_v27, %v977_v27  ;;  %v879_v37 = vmul.f32 %v1847_v41, %v808_v31  ;;  %v911_v38 = vmul.f32 %v1847_v41, %v840_v32  ;;  %v1618_v32 = vpop.f32.mrf.mxu1 }
 0x10d   :  { %1266 = vst.msk [vmem:[%s2333_s5 + $0x34] sm:$0xf] %vm1252_vm4, %v1468_v26  ;;  %v806_v39 = vsel %vm678_vm7, %v472_v20, %v742_v28  ;;  %vm710_vm8 = vcmp.ge.f32.partialorder %v600_v33, 0.0  ;;  %v774_v42 = vmul.f32 0.2, %v600_v33  ;;  %v611_v46 = vadd.f32 %v1611_v0, %v1840_v36  ;;  %v1583_v0 = vpop.f32.mrf.mxu0 }
 0x10e   :  { %v877_v40 = vmul.f32 %v1847_v41, %v806_v39  ;;  %vm681_vm9 = vcmp.ge.f32.partialorder %v483_v34, 0.0  ;;  %1298 = vst.msk [vmem:[%s2333_s5 + $0xb4] sm:$0xf] %vm1252_vm4, %v1500_v35  ;;  %v950_v43 = vadd.f32 %v1854_v51, %v879_v37  ;;  %v982_v44 = vadd.f32 %v1854_v51, %v911_v38 }
 0x10f   :  { %v745_v45 = vmul.f32 0.2, %v483_v34  ;;  %v838_v49 = vsel %vm710_vm8, %v600_v33, %v774_v42  ;;  %v475_v52 = vadd.f32 %v1840_v36, %v474_v15  ;;  %v603_v53 = vadd.f32 %v1840_v36, %v602_v16  ;;  %v490_v16 = vpop.f32.mrf.mxu0 }
 0x110   :  { %v948_v48 = vadd.f32 %v1854_v51, %v877_v40  ;;  %v1473_v54 = vpack.c.bf16 %v950_v43, %v950_v43  ;;  %v1505_v55 = vpack.c.bf16 %v982_v44, %v982_v44  ;;  %v909_v56 = vmul.f32 %v1847_v41, %v838_v49  ;;  %v631_v49 = vpop.f32.mrf.mxu1 }
 0x111   :  { %v809_v57 = vsel %vm681_vm9, %v483_v34, %v745_v45  ;;  %vm713_vm10 = vcmp.ge.f32.partialorder %v611_v46, 0.0  ;;  %v777_v61 = vmul.f32 0.2, %v611_v46  ;;  %vm679_vm11 = vcmp.ge.f32.partialorder %v475_v52, 0.0  ;;  %v1586_v31 = vpop.f32.mrf.mxu0 }
 0x112   :  { %v1471_v58 = vpack.c.bf16 %v948_v48, %v948_v48  ;;  %v880_v59 = vmul.f32 %v1847_v41, %v809_v57  ;;  %1271 = vst.msk [vmem:[%s2333_s5 + $0x48] sm:$0xf] %vm1252_vm4, %v1473_v54  ;;  %1303 = vst.msk [vmem:[%s2333_s5 + $0xc8] sm:$0xf] %vm1252_vm4, %v1505_v55  ;;  %v980_v62 = vadd.f32 %v1854_v51, %v909_v56  ;;  %v743_v63 = vmul.f32 0.2, %v475_v52 }
 0x113   :  { %vm711_vm12 = vcmp.ge.f32.partialorder %v603_v53, 0.0  ;;  %v841_v3 = vsel %vm713_vm10, %v611_v46, %v777_v61  ;;  %v775_v4 = vmul.f32 0.2, %v603_v53  ;;  %v496_v5 = vadd.f32 %v1582_v29, %v1840_v36  ;;  %v503_v48 = vpop.f32.mrf.mxu0 }
 0x114   :  { %1269 = vst.msk [vmem:[%s2333_s5 + $0x40] sm:$0xf] %vm1252_vm4, %v1471_v58  ;;  %v951_v2 = vadd.f32 %v1854_v51, %v880_v59  ;;  %v1503_v60 = vpack.c.bf16 %v980_v62, %v980_v62  ;;  %v912_v6 = vmul.f32 %v1847_v41, %v841_v3  ;;  %v807_v7 = vsel %vm679_vm11, %v475_v52, %v743_v63 }
 0x115   :  { %v624_v8 = vadd.f32 %v1614_v30, %v1840_v36  ;;  %v878_v10 = vmul.f32 %v1847_v41, %v807_v7  ;;  %v839_v11 = vsel %vm711_vm12, %v603_v53, %v775_v4  ;;  %vm684_vm13 = vcmp.ge.f32.partialorder %v496_v5, 0.0  ;;  %v1587_v4 = vpop.f32.mrf.mxu0 }
 0x116   :  { %v1474_v9 = vpack.c.bf16 %v951_v2, %v951_v2  ;;  %1301 = vst.msk [vmem:[%s2333_s5 + $0xc0] sm:$0xf] %vm1252_vm4, %v1503_v60  ;;  %v983_v13 = vadd.f32 %v1854_v51, %v912_v6  ;;  %v910_v14 = vmul.f32 %v1847_v41, %v839_v11  ;;  %v748_v15 = vmul.f32 0.2, %v496_v5 }
 0x117   :  { %vm716_vm14 = vcmp.ge.f32.partialorder %v624_v8, 0.0  ;;  %v949_v18 = vadd.f32 %v1854_v51, %v878_v10  ;;  %v780_v19 = vmul.f32 0.2, %v624_v8  ;;  %v488_v20 = vadd.f32 %v1840_v36, %v487_v47 }
 0x118   :  { %1272 = vst.msk [vmem:[%s2333_s5 + $0x4c] sm:$0xf] %vm1252_vm4, %v1474_v9  ;;  %v616_v21 = vadd.f32 %v1840_v36, %v615_v50  ;;  %v1506_v22 = vpack.c.bf16 %v983_v13, %v983_v13  ;;  %v981_v12 = vadd.f32 %v1854_v51, %v910_v14  ;;  %v812_v23 = vsel %vm684_vm13, %v496_v5, %v748_v15  ;;  %v1619_v5 = vpop.f32.mrf.mxu1 }
 0x119   :  { %v499_v24 = vadd.f32 %v1583_v0, %v1840_v36  ;;  %v1472_v25 = vpack.c.bf16 %v949_v18, %v949_v18  ;;  %v883_v26 = vmul.f32 %v1847_v41, %v812_v23  ;;  %v844_v27 = vsel %vm716_vm14, %v624_v8, %v780_v19  ;;  %v506_v19 = vpop.f32.mrf.mxu0 }
 0x11a   :  { %vm682_vm15 = vcmp.ge.f32.partialorder %v488_v20, 0.0  ;;  %1304 = vst.msk [vmem:[%s2333_s5 + $0xcc] sm:$0xf] %vm1252_vm4, %v1506_v22  ;;  %v1504_v28 = vpack.c.bf16 %v981_v12, %v981_v12  ;;  %v915_v29 = vmul.f32 %v1847_v41, %v844_v27  ;;  %v746_v30 = vmul.f32 0.2, %v488_v20 }
 0x11b   :  { %vm714_vm0 = vcmp.ge.f32.partialorder %v616_v21, 0.0  ;;  %1270 = vst.msk [vmem:[%s2333_s5 + $0x44] sm:$0xf] %vm1252_vm4, %v1472_v25  ;;  %v954_v33 = vadd.f32 %v1854_v51, %v883_v26  ;;  %v778_v34 = vmul.f32 0.2, %v616_v21  ;;  %vm685_vm1 = vcmp.ge.f32.partialorder %v499_v24, 0.0 }
 0x11c   :  { %v749_v35 = vmul.f32 0.2, %v499_v24  ;;  %1302 = vst.msk [vmem:[%s2333_s5 + $0xc4] sm:$0xf] %vm1252_vm4, %v1504_v28  ;;  %v986_v37 = vadd.f32 %v1854_v51, %v915_v29  ;;  %v810_v38 = vsel %vm682_vm15, %v488_v20, %v746_v30  ;;  %v627_v39 = vadd.f32 %v1615_v1, %v1840_v36  ;;  %v634_v20 = vpop.f32.mrf.mxu1 }
 0x11d   :  { %v491_v40 = vadd.f32 %v1840_v36, %v490_v16  ;;  %v1477_v42 = vpack.c.bf16 %v954_v33, %v954_v33  ;;  %v881_v43 = vmul.f32 %v1847_v41, %v810_v38  ;;  %v842_v44 = vsel %vm714_vm0, %v616_v21, %v778_v34  ;;  %v1590_v34 = vpop.f32.mrf.mxu0 }
 0x11e   :  { %v813_v45 = vsel %vm685_vm1, %v499_v24, %v749_v35  ;;  %v1509_v46 = vpack.c.bf16 %v986_v37, %v986_v37  ;;  %v913_v47 = vmul.f32 %v1847_v41, %v842_v44  ;;  %vm717_vm2 = vcmp.ge.f32.partialorder %v627_v39, 0.0  ;;  %v1622_v35 = vpop.f32.mrf.mxu1 }
 0x11f   :  { %v884_v50 = vmul.f32 %v1847_v41, %v813_v45  ;;  %1275 = vst.msk [vmem:[%s2333_s5 + $0x58] sm:$0xf] %vm1252_vm4, %v1477_v42  ;;  %v952_v52 = vadd.f32 %v1854_v51, %v881_v43  ;;  %v781_v53 = vmul.f32 0.2, %v627_v39  ;;  %vm683_vm3 = vcmp.ge.f32.partialorder %v491_v40, 0.0 }
 0x120   :  { %v747_v54 = vmul.f32 0.2, %v491_v40  ;;  %1307 = vst.msk [vmem:[%s2333_s5 + $0xd8] sm:$0xf] %vm1252_vm4, %v1509_v46  ;;  %v984_v55 = vadd.f32 %v1854_v51, %v913_v47  ;;  %v619_v57 = vadd.f32 %v1840_v36, %v618_v17  ;;  %v512_v58 = vadd.f32 %v1586_v31, %v1840_v36 }
 0x121   :  { %v955_v56 = vadd.f32 %v1854_v51, %v884_v50  ;;  %v1475_v59 = vpack.c.bf16 %v952_v52, %v952_v52  ;;  %v845_v61 = vsel %vm717_vm2, %v627_v39, %v781_v53  ;;  %v640_v63 = vadd.f32 %v1618_v32, %v1840_v36  ;;  %v519_v52 = vpop.f32.mrf.mxu0  ;;  %v647_v53 = vpop.f32.mrf.mxu1 }
 0x122   :  { %v811_v62 = vsel %vm683_vm3, %v491_v40, %v747_v54  ;;  %v1507_v0 = vpack.c.bf16 %v984_v55, %v984_v55  ;;  %v916_v2 = vmul.f32 %v1847_v41, %v845_v61  ;;  %vm715_vm5 = vcmp.ge.f32.partialorder %v619_v57, 0.0 }
 0x123   :  { %v1478_v1 = vpack.c.bf16 %v955_v56, %v955_v56  ;;  %v882_v3 = vmul.f32 %v1847_v41, %v811_v62  ;;  %1273 = vst.msk [vmem:[%s2333_s5 + $0x50] sm:$0xf] %vm1252_vm4, %v1475_v59  ;;  %v779_v60 = vmul.f32 0.2, %v619_v57  ;;  %vm688_vm6 = vcmp.ge.f32.partialorder %v512_v58, 0.0 }
 0x124   :  { %v752_v6 = vmul.f32 0.2, %v512_v58  ;;  %1305 = vst.msk [vmem:[%s2333_s5 + $0xd0] sm:$0xf] %vm1252_vm4, %v1507_v0  ;;  %v987_v7 = vadd.f32 %v1854_v51, %v916_v2  ;;  %vm720_vm7 = vcmp.ge.f32.partialorder %v640_v63, 0.0  ;;  %v504_v13 = vadd.f32 %v1840_v36, %v503_v48 }
 0x125   :  { %1276 = vst.msk [vmem:[%s2333_s5 + $0x5c] sm:$0xf] %vm1252_vm4, %v1478_v1  ;;  %v953_v8 = vadd.f32 %v1854_v51, %v882_v3  ;;  %v784_v9 = vmul.f32 0.2, %v640_v63  ;;  %v843_v10 = vsel %vm715_vm5, %v619_v57, %v779_v60  ;;  %v632_v14 = vadd.f32 %v1840_v36, %v631_v49  ;;  %v1623_v60 = vpop.f32.mrf.mxu1 }
 0x126   :  { %v816_v11 = vsel %vm688_vm6, %v512_v58, %v752_v6  ;;  %v1510_v15 = vpack.c.bf16 %v987_v7, %v987_v7  ;;  %v914_v17 = vmul.f32 %v1847_v41, %v843_v10  ;;  %vm686_vm8 = vcmp.ge.f32.partialorder %v504_v13, 0.0 }
 0x127   :  { %v1476_v16 = vpack.c.bf16 %v953_v8, %v953_v8  ;;  %v887_v18 = vmul.f32 %v1847_v41, %v816_v11  ;;  %v848_v21 = vsel %vm720_vm7, %v640_v63, %v784_v9  ;;  %v750_v22 = vmul.f32 0.2, %v504_v13 }
 0x128   :  { %vm718_vm9 = vcmp.ge.f32.partialorder %v632_v14, 0.0  ;;  %1308 = vst.msk [vmem:[%s2333_s5 + $0xdc] sm:$0xf] %vm1252_vm4, %v1510_v15  ;;  %v985_v12 = vadd.f32 %v1854_v51, %v914_v17  ;;  %v919_v24 = vmul.f32 %v1847_v41, %v848_v21  ;;  %v782_v25 = vmul.f32 0.2, %v632_v14  ;;  %v650_v21 = vpop.f32.mrf.mxu1 }
 0x129   :  { %1274 = vst.msk [vmem:[%s2333_s5 + $0x54] sm:$0xf] %vm1252_vm4, %v1476_v16  ;;  %v958_v23 = vadd.f32 %v1854_v51, %v887_v18  ;;  %v814_v26 = vsel %vm686_vm8, %v504_v13, %v750_v22  ;;  %v515_v27 = vadd.f32 %v1587_v4, %v1840_v36  ;;  %v643_v28 = vadd.f32 %v1619_v5, %v1840_v36  ;;  %v1591_v5 = vpop.f32.mrf.mxu0  ;;  %v1667_v13 = vld [vmem:[%s2330_s2] ss:$0 sm:$0xff] }
 0x12a   :  { %v507_v29 = vadd.f32 %v1840_v36, %v506_v19  ;;  %v1508_v30 = vpack.c.bf16 %v985_v12, %v985_v12  ;;  %v990_v32 = vadd.f32 %v1854_v51, %v919_v24  ;;  %v885_v33 = vmul.f32 %v1847_v41, %v814_v26  ;;  %v1668_v16 = vld [vmem:[%s2331_s3] ss:$0 sm:$0xff] }
 0x12b   :  { %v1481_v31 = vpack.c.bf16 %v958_v23, %v958_v23  ;;  %v846_v37 = vsel %vm718_vm9, %v632_v14, %v782_v25  ;;  %vm689_vm10 = vcmp.ge.f32.partialorder %v515_v27, 0.0  ;;  %v753_v38 = vmul.f32 0.2, %v515_v27  ;;  %v1669_v23 = vld [vmem:[%s2332_s4] ss:$0 sm:$0xff] }
 0x12c   :  { %vm721_vm11 = vcmp.ge.f32.partialorder %v643_v28, 0.0  ;;  %1306 = vst.msk [vmem:[%s2333_s5 + $0xd4] sm:$0xf] %vm1252_vm4, %v1508_v30  ;;  %v1513_v39 = vpack.c.bf16 %v990_v32, %v990_v32  ;;  %v956_v40 = vadd.f32 %v1854_v51, %v885_v33  ;;  %v917_v42 = vmul.f32 %v1847_v41, %v846_v37 }
 0x12d   :  { %1279 = vst.msk [vmem:[%s2333_s5 + $0x68] sm:$0xf] %vm1252_vm4, %v1481_v31  ;;  %v785_v43 = vmul.f32 0.2, %v643_v28  ;;  %v817_v44 = vsel %vm689_vm10, %v515_v27, %v753_v38  ;;  %vm687_vm12 = vcmp.ge.f32.partialorder %v507_v29, 0.0  ;;  %v635_v46 = vadd.f32 %v1840_v36, %v634_v20  ;;  %v522_v20 = vpop.f32.mrf.mxu0 }
 0x12e   :  { %v751_v45 = vmul.f32 0.2, %v507_v29  ;;  %1311 = vst.msk [vmem:[%s2333_s5 + $0xe8] sm:$0xf] %vm1252_vm4, %v1513_v39  ;;  %v1479_v47 = vpack.c.bf16 %v956_v40, %v956_v40  ;;  %v988_v50 = vadd.f32 %v1854_v51, %v917_v42  ;;  %v888_v48 = vmul.f32 %v1847_v41, %v817_v44 }
 0x12f   :  { %v849_v49 = vsel %vm721_vm11, %v643_v28, %v785_v43  ;;  %vm719_vm13 = vcmp.ge.f32.partialorder %v635_v46, 0.0  ;;  %v783_v56 = vmul.f32 0.2, %v635_v46  ;;  %v528_v61 = vadd.f32 %v1590_v34, %v1840_v36 }
 0x130   :  { %v920_v54 = vmul.f32 %v1847_v41, %v849_v49  ;;  %v815_v55 = vsel %vm687_vm12, %v507_v29, %v751_v45  ;;  %1277 = vst.msk [vmem:[%s2333_s5 + $0x60] sm:$0xf] %vm1252_vm4, %v1479_v47  ;;  %v1511_v57 = vpack.c.bf16 %v988_v50, %v988_v50  ;;  %v959_v58 = vadd.f32 %v1854_v51, %v888_v48 }
 0x131   :  { %v886_v59 = vmul.f32 %v1847_v41, %v815_v55  ;;  %v847_v63 = vsel %vm719_vm13, %v635_v46, %v783_v56  ;;  %v656_v0 = vadd.f32 %v1622_v35, %v1840_v36  ;;  %v520_v1 = vadd.f32 %v1840_v36, %v519_v52 }
 0x132   :  { %v991_v62 = vadd.f32 %v1854_v51, %v920_v54  ;;  %1309 = vst.msk [vmem:[%s2333_s5 + $0xe0] sm:$0xf] %vm1252_vm4, %v1511_v57  ;;  %v1482_v2 = vpack.c.bf16 %v959_v58, %v959_v58  ;;  %v918_v4 = vmul.f32 %v1847_v41, %v847_v63  ;;  %vm692_vm14 = vcmp.ge.f32.partialorder %v528_v61, 0.0 }
 0x133   :  { %v957_v3 = vadd.f32 %v1854_v51, %v886_v59  ;;  %v756_v7 = vmul.f32 0.2, %v528_v61  ;;  %vm724_vm15 = vcmp.ge.f32.partialorder %v656_v0, 0.0  ;;  %v788_v8 = vmul.f32 0.2, %v656_v0 }
 0x134   :  { %v1514_v6 = vpack.c.bf16 %v991_v62, %v991_v62  ;;  %1280 = vst.msk [vmem:[%s2333_s5 + $0x6c] sm:$0xf] %vm1252_vm4, %v1482_v2  ;;  %v989_v9 = vadd.f32 %v1854_v51, %v918_v4  ;;  %vm690_vm0 = vcmp.ge.f32.partialorder %v520_v1, 0.0  ;;  %v754_v10 = vmul.f32 0.2, %v520_v1 }
 0x135   :  { %v1480_v36 = vpack.c.bf16 %v957_v3, %v957_v3  ;;  %v820_v41 = vsel %vm692_vm14, %v528_v61, %v756_v7  ;;  %v852_v11 = vsel %vm724_vm15, %v656_v0, %v788_v8  ;;  %v648_v14 = vadd.f32 %v1667_v13, %v647_v53 }
 0x136   :  { %1312 = vst.msk [vmem:[%s2333_s5 + $0xec] sm:$0xf] %vm1252_vm4, %v1514_v6  ;;  %v531_v15 = vadd.f32 %v1667_v13, %v1591_v5  ;;  %v1512_v51 = vpack.c.bf16 %v989_v9, %v989_v9  ;;  %v891_v17 = vmul.f32 %v1668_v16, %v820_v41  ;;  %v923_v18 = vmul.f32 %v1668_v16, %v852_v11 }
 0x137   :  { %1278 = vst.msk [vmem:[%s2333_s5 + $0x64] sm:$0xf] %vm1252_vm4, %v1480_v36  ;;  %v818_v19 = vsel %vm690_vm0, %v520_v1, %v754_v10  ;;  %vm722_vm1 = vcmp.ge.f32.partialorder %v648_v14, 0.0  ;;  %v786_v12 = vmul.f32 0.2, %v648_v14  ;;  %v659_v27 = vadd.f32 %v1667_v13, %v1623_v60 }
 0x138   :  { %v889_v22 = vmul.f32 %v1668_v16, %v818_v19  ;;  %vm693_vm2 = vcmp.ge.f32.partialorder %v531_v15, 0.0  ;;  %1310 = vst.msk [vmem:[%s2333_s5 + $0xe4] sm:$0xf] %vm1252_vm4, %v1512_v51  ;;  %v962_v24 = vadd.f32 %v1669_v23, %v891_v17  ;;  %v994_v25 = vadd.f32 %v1669_v23, %v923_v18 }
 0x139   :  { %v757_v26 = vmul.f32 0.2, %v531_v15  ;;  %v850_v29 = vsel %vm722_vm1, %v648_v14, %v786_v12  ;;  %v523_v30 = vadd.f32 %v1667_v13, %v522_v20  ;;  %v651_v31 = vadd.f32 %v1667_v13, %v650_v21 }
 0x13a   :  { %v960_v28 = vadd.f32 %v1669_v23, %v889_v22  ;;  %v1485_v32 = vpack.c.bf16 %v962_v24, %v962_v24  ;;  %v1517_v33 = vpack.c.bf16 %v994_v25, %v994_v25  ;;  %v921_v34 = vmul.f32 %v1668_v16, %v850_v29 }
 0x13b   :  { %v821_v35 = vsel %vm693_vm2, %v531_v15, %v757_v26  ;;  %vm725_vm3 = vcmp.ge.f32.partialorder %v659_v27, 0.0  ;;  %v789_v39 = vmul.f32 0.2, %v659_v27  ;;  %vm691_vm5 = vcmp.ge.f32.partialorder %v523_v30, 0.0 }
 0x13c   :  { %v1483_v37 = vpack.c.bf16 %v960_v28, %v960_v28  ;;  %v892_v38 = vmul.f32 %v1668_v16, %v821_v35  ;;  %1283 = vst.msk [vmem:[%s2333_s5 + $0x78] sm:$0xf] %vm1252_vm4, %v1485_v32  ;;  %1315 = vst.msk [vmem:[%s2333_s5 + $0xf8] sm:$0xf] %vm1252_vm4, %v1517_v33  ;;  %v992_v40 = vadd.f32 %v1669_v23, %v921_v34  ;;  %v755_v42 = vmul.f32 0.2, %v523_v30 }
 0x13d   :  { %vm723_vm6 = vcmp.ge.f32.partialorder %v651_v31, 0.0  ;;  %v853_v44 = vsel %vm725_vm3, %v659_v27, %v789_v39  ;;  %v787_v45 = vmul.f32 0.2, %v651_v31 }
 0x13e   :  { %1281 = vst.msk [vmem:[%s2333_s5 + $0x70] sm:$0xf] %vm1252_vm4, %v1483_v37  ;;  %v963_v43 = vadd.f32 %v1669_v23, %v892_v38  ;;  %v1515_v46 = vpack.c.bf16 %v992_v40, %v992_v40  ;;  %v924_v47 = vmul.f32 %v1668_v16, %v853_v44  ;;  %v819_v50 = vsel %vm691_vm5, %v523_v30, %v755_v42 }
 0x13f   :  { %v890_v49 = vmul.f32 %v1668_v16, %v819_v50  ;;  %v851_v52 = vsel %vm723_vm6, %v651_v31, %v787_v45 }
 0x140   :  { %v1486_v48 = vpack.c.bf16 %v963_v43, %v963_v43  ;;  %1313 = vst.msk [vmem:[%s2333_s5 + $0xf0] sm:$0xf] %vm1252_vm4, %v1515_v46  ;;  %v995_v53 = vadd.f32 %v1669_v23, %v924_v47  ;;  %v922_v54 = vmul.f32 %v1668_v16, %v851_v52 }
 0x141   :  { %v961_v55 = vadd.f32 %v1669_v23, %v890_v49 }
 0x142   :  { %1284 = vst.msk [vmem:[%s2333_s5 + $0x7c] sm:$0xf] %vm1252_vm4, %v1486_v48  ;;  %v1518_v56 = vpack.c.bf16 %v995_v53, %v995_v53  ;;  %v993_v57 = vadd.f32 %v1669_v23, %v922_v54 }
 0x143   :  { %v1484_v58 = vpack.c.bf16 %v961_v55, %v961_v55 }
 0x144   :  { %1316 = vst.msk [vmem:[%s2333_s5 + $0xfc] sm:$0xf] %vm1252_vm4, %v1518_v56  ;;  %v1516_v59 = vpack.c.bf16 %v993_v57, %v993_v57 }
 0x145   :  { %1282 = vst.msk [vmem:[%s2333_s5 + $0x74] sm:$0xf] %vm1252_vm4, %v1484_v58 }
 0x146   :  { %1314 = vst.msk [vmem:[%s2333_s5 + $0xf4] sm:$0xf] %vm1252_vm4, %v1516_v59 }

// kernel: discriminator_forward.7
= control target key start
LH: loop header
LB: loop body
LE: loop exit
PB: predicated region body
PF: predicated region fallthrough
CT: control target
= control target key end

     0   :  { %v609_v0 = vmov 0   ;;  %vm188_vm0 = vcmask 130048   ;;  %vm468_vm5 = vcmask 257024   ;;  %s850_s1 = inlined_call_operand.vmem [shape: bf16[144,32], index: 1, kind: input, shape index: {}]   ;;  %s851_s0 = inlined_call_operand.vmem [shape: bf16[128,144], index: 0, kind: input, shape index: {}]   ;;  %s852_s2 = inlined_call_operand.vmem [shape: f32[1,32], index: 2, kind: input, shape index: {}]   ;;  %s853_s3 = inlined_call_operand.vmem [shape: f32[1,32], index: 3, kind: input, shape index: {}]   ;;  %s854_s4 = inlined_call_operand.vmem [shape: f32[1,32], index: 4, kind: input, shape index: {}]   ;;  %s855_s5 = inlined_call_operand.vmem [shape: bf16[128,32], index: 5, kind: output, shape index: {}]  }
   0x1   :  { %213 = vmatprep.subr.bf16.mxu0 %v609_v0  ;;  %557 = vmatprep.subr.bf16.mxu1 %v609_v0  ;;  %v576_v1 = vld [vmem:[%s850_s1 + $0x38] sm:$0xff]   ;;  %v577_v2 = vld [vmem:[%s850_s1 + $0x30] sm:$0xff]   ;;  %v578_v3 = vld [vmem:[%s850_s1 + $0x28] sm:$0xff]  }
   0x2   :  { %214 = vmatpush1.bf16.msra.mxu0 %v576_v1  ;;  %566 = vmatpush1.bf16.msra.mxu1 %v576_v1  ;;  %v579_v4 = vld [vmem:[%s850_s1 + $0x20] sm:$0xff]   ;;  %v580_v7 = vld [vmem:[%s850_s1 + $0x18] sm:$0xff]   ;;  %v581_v8 = vld [vmem:[%s850_s1 + $0x10] sm:$0xff]  }
   0x3   :  { %215 = vmatprep.subr.bf16.mxu0 %v609_v0  ;;  %558 = vmatprep.subr.bf16.mxu1 %v609_v0  ;;  %v587_v5 = vld [vmem:[%s851_s0 + $0x4] ss:$8 sps:$4 sm:$0xff]   ;;  %v585_v12 = vld [vmem:[%s851_s0] ss:$8 sps:$4 sm:$0xff]   ;;  %v591_v14 = vld [vmem:[%s851_s0 + $0x14] ss:$8 sps:$4 sm:$0xff]  }
   0x4   :  { %v590_v6 = vld [vmem:[%s851_s0 + $0x44] ss:$8 sps:$4 sm:$0xff]   ;;  %515 = vmatprep.mubr.msk.bf16.mxu0 %vm188_vm0, %v587_v5  ;;  %v588_v13 = vld [vmem:[%s851_s0 + $0x40] ss:$8 sps:$4 sm:$0xff]   ;;  %v593_v15 = vld [vmem:[%s851_s0 + $0x54] ss:$8 sps:$4 sm:$0xff]  }
   0x5   :  { %519 = vmatprep.mubr.msk.bf16.mxu1 %vm188_vm0, %v590_v6  ;;  %v582_v9 = vld [vmem:[%s850_s1 + $0x8] sm:$0xff]   ;;  %v583_v10 = vld [vmem:[%s850_s1] sm:$0xff]   ;;  %v595_v16 = vld [vmem:[%s851_s0 + $0x10] ss:$8 sps:$4 sm:$0xff]  }
   0x6   :  { %216 = vmatpush1.bf16.msra.mxu0 %v577_v2  ;;  %567 = vmatpush1.bf16.msra.mxu1 %v577_v2  ;;  %v584_v11 = vld [vmem:[%s850_s1 + $0x40] sm:$0xff]   ;;  %v596_v17 = vld [vmem:[%s851_s0 + $0x50] ss:$8 sps:$4 sm:$0xff]   ;;  %v603_v22 = vld [vmem:[%s851_s0 + $0x34] ss:$8 sps:$4 sm:$0xff]  }
   0x7   :  { %217 = vmatprep.subr.bf16.mxu0 %v609_v0  ;;  %559 = vmatprep.subr.bf16.mxu1 %v609_v0  ;;  %v597_v18 = vld [vmem:[%s851_s0 + $0x24] ss:$8 sps:$4 sm:$0xff]   ;;  %v601_v20 = vld [vmem:[%s851_s0 + $0x20] ss:$8 sps:$4 sm:$0xff]   ;;  %v605_v23 = vld [vmem:[%s851_s0 + $0x74] ss:$8 sps:$4 sm:$0xff]  }
   0x8   :  { %v599_v19 = vld [vmem:[%s851_s0 + $0x64] ss:$8 sps:$4 sm:$0xff]   ;;  %v602_v21 = vld [vmem:[%s851_s0 + $0x60] ss:$8 sps:$4 sm:$0xff]   ;;  %v607_v24 = vld [vmem:[%s851_s0 + $0x30] ss:$8 sps:$4 sm:$0xff]  }
   0x9   :  { %v608_v25 = vld [vmem:[%s851_s0 + $0x70] ss:$8 sps:$4 sm:$0xff]   ;;  %v726_v26 = vld [vmem:[%s852_s2] ss:$0 sm:$0xff] }
   0xa   :  { %218 = vmatpush1.bf16.msra.mxu0 %v578_v3  ;;  %568 = vmatpush1.bf16.msra.mxu1 %v578_v3  ;;  %v733_v31 = vld [vmem:[%s853_s3] ss:$0 sm:$0xff] }
   0xb   :  { %219 = vmatprep.subr.bf16.mxu0 %v609_v0  ;;  %560 = vmatprep.subr.bf16.mxu1 %v609_v0  ;;  %v738_v39 = vld [vmem:[%s854_s4] ss:$0 sm:$0xff] }
   0xe   :  { %220 = vmatpush1.bf16.msra.mxu0 %v579_v4  ;;  %569 = vmatpush1.bf16.msra.mxu1 %v579_v4 }
   0xf   :  { %221 = vmatprep.subr.bf16.mxu0 %v609_v0  ;;  %561 = vmatprep.subr.bf16.mxu1 %v609_v0 }
  0x12   :  { %222 = vmatpush1.bf16.msra.mxu0 %v580_v7  ;;  %570 = vmatpush1.bf16.msra.mxu1 %v580_v7 }
  0x13   :  { %223 = vmatprep.subr.bf16.mxu0 %v609_v0  ;;  %562 = vmatprep.subr.bf16.mxu1 %v609_v0 }
  0x16   :  { %224 = vmatpush1.bf16.msra.mxu0 %v581_v8  ;;  %571 = vmatpush1.bf16.msra.mxu1 %v581_v8 }
  0x17   :  { %225 = vmatprep.subr.bf16.mxu0 %v609_v0  ;;  %563 = vmatprep.subr.bf16.mxu1 %v609_v0 }
  0x1a   :  { %226 = vmatpush1.bf16.msra.mxu0 %v582_v9  ;;  %572 = vmatpush1.bf16.msra.mxu1 %v582_v9 }
  0x1b   :  { %227 = vmatprep.subr.bf16.mxu0 %v609_v0  ;;  %564 = vmatprep.subr.bf16.mxu1 %v609_v0 }
  0x1e   :  { %228 = vmatpush1.bf16.msra.mxu0 %v583_v10  ;;  %573 = vmatpush1.bf16.msra.mxu1 %v583_v10 }
  0x1f   :  { %243 = vmatprep.subr.bf16.mxu0 %v609_v0  ;;  %565 = vmatprep.subr.bf16.mxu1 %v609_v0 }
  0x22   :  { %244 = vmatpush2.bf16.msra.mxu0 %v584_v11  ;;  %574 = vmatpush2.bf16.msra.mxu1 %v584_v11 }
  0x25   :  { %246 = vmatmul.mubr.bf16.vlgmr.msra.gmra.mxu0 %v585_v12  ;;  %278 = vmatmul.mubr.bf16.vlgmr.msra.gmra.mxu1 %v588_v13 }
  0x26   :  { %516 = vmatprep.mubr.msk.bf16.mxu0 %vm188_vm0, %v591_v14  ;;  %520 = vmatprep.mubr.msk.bf16.mxu1 %vm188_vm0, %v593_v15 }
  0x2d   :  { %254 = vmatmul.mubr.bf16.gmra.mxu0 %v595_v16  ;;  %286 = vmatmul.mubr.bf16.gmra.mxu1 %v596_v17 }
  0x2e   :  { %517 = vmatprep.mubr.msk.bf16.mxu0 %vm188_vm0, %v597_v18  ;;  %521 = vmatprep.mubr.msk.bf16.mxu1 %vm188_vm0, %v599_v19 }
  0x35   :  { %262 = vmatmul.mubr.bf16.gmra.mxu0 %v601_v20  ;;  %294 = vmatmul.mubr.bf16.gmra.mxu1 %v602_v21 }
  0x36   :  { %518 = vmatprep.mubr.msk.bf16.mxu0 %vm188_vm0, %v603_v22  ;;  %522 = vmatprep.mubr.msk.bf16.mxu1 %vm188_vm0, %v605_v23 }
  0x3d   :  { %270 = vmatmul.mubr.bf16.gmra.mxu0 %v607_v24  ;;  %302 = vmatmul.mubr.bf16.gmra.mxu1 %v608_v25 }
  0xe5   :  { %v247_v27 = vpop.f32.mrf.mxu0  ;;  %v279_v28 = vpop.f32.mrf.mxu1 }
  0xe6   :  { %v248_v29 = vadd.f32 %v726_v26, %v247_v27  ;;  %v280_v30 = vadd.f32 %v726_v26, %v279_v28 }
  0xe7   :  { %v249_v32 = vpop.f32.mrf.mxu0  ;;  %v281_v33 = vpop.f32.mrf.mxu1 }
  0xe8   :  { %vm310_vm1 = vcmp.ge.f32.partialorder %v248_v29, 0.0  ;;  %v326_v34 = vmul.f32 0.2, %v248_v29  ;;  %vm318_vm2 = vcmp.ge.f32.partialorder %v280_v30, 0.0  ;;  %v334_v35 = vmul.f32 0.2, %v280_v30 }
  0xe9   :  { %v250_v36 = vpop.f32.mrf.mxu0  ;;  %v282_v37 = vpop.f32.mrf.mxu1 }
  0xea   :  { %v342_v38 = vsel %vm310_vm1, %v248_v29, %v326_v34  ;;  %v350_v40 = vsel %vm318_vm2, %v280_v30, %v334_v35  ;;  %v251_v41 = vadd.f32 %v726_v26, %v250_v36  ;;  %v283_v42 = vadd.f32 %v726_v26, %v282_v37 }
  0xeb   :  { %v365_v43 = vmul.f32 %v733_v31, %v342_v38  ;;  %v373_v44 = vmul.f32 %v733_v31, %v350_v40  ;;  %v252_v45 = vpop.f32.mrf.mxu0  ;;  %v284_v46 = vpop.f32.mrf.mxu1 }
  0xec   :  { %vm311_vm3 = vcmp.ge.f32.partialorder %v251_v41, 0.0  ;;  %v327_v47 = vmul.f32 0.2, %v251_v41  ;;  %vm319_vm4 = vcmp.ge.f32.partialorder %v283_v42, 0.0  ;;  %v335_v48 = vmul.f32 0.2, %v283_v42 }
  0xed   :  { %v388_v49 = vadd.f32 %v738_v39, %v365_v43  ;;  %v396_v50 = vadd.f32 %v738_v39, %v373_v44  ;;  %v255_v51 = vpop.f32.mrf.mxu0  ;;  %v287_v52 = vpop.f32.mrf.mxu1 }
  0xee   :  { %v343_v53 = vsel %vm311_vm3, %v251_v41, %v327_v47  ;;  %v351_v54 = vsel %vm319_vm4, %v283_v42, %v335_v48  ;;  %v256_v55 = vadd.f32 %v726_v26, %v255_v51  ;;  %v288_v56 = vadd.f32 %v726_v26, %v287_v52 }
  0xef   :  { %v541_v57 = vpack.c.bf16 %v388_v49, %v388_v49  ;;  %v549_v58 = vpack.c.bf16 %v396_v50, %v396_v50  ;;  %v366_v59 = vmul.f32 %v733_v31, %v343_v53  ;;  %v374_v60 = vmul.f32 %v733_v31, %v351_v54  ;;  %v257_v61 = vpop.f32.mrf.mxu0  ;;  %v289_v62 = vpop.f32.mrf.mxu1 }
  0xf0   :  { %vm312_vm6 = vcmp.ge.f32.partialorder %v256_v55, 0.0  ;;  %v328_v63 = vmul.f32 0.2, %v256_v55  ;;  %vm320_vm7 = vcmp.ge.f32.partialorder %v288_v56, 0.0  ;;  %v336_v0 = vmul.f32 0.2, %v288_v56 }
  0xf1   :  { %469 = vst.msk [vmem:[%s855_s5] sm:$0xf] %vm468_vm5, %v541_v57  ;;  %477 = vst.msk [vmem:[%s855_s5 + $0x20] sm:$0xf] %vm468_vm5, %v549_v58  ;;  %v389_v1 = vadd.f32 %v738_v39, %v366_v59  ;;  %v397_v2 = vadd.f32 %v738_v39, %v374_v60  ;;  %v258_v3 = vpop.f32.mrf.mxu0  ;;  %v290_v4 = vpop.f32.mrf.mxu1 }
  0xf2   :  { %v344_v5 = vsel %vm312_vm6, %v256_v55, %v328_v63  ;;  %v352_v6 = vsel %vm320_vm7, %v288_v56, %v336_v0  ;;  %v259_v7 = vadd.f32 %v726_v26, %v258_v3  ;;  %v291_v8 = vadd.f32 %v726_v26, %v290_v4 }
  0xf3   :  { %v542_v9 = vpack.c.bf16 %v389_v1, %v389_v1  ;;  %v550_v10 = vpack.c.bf16 %v397_v2, %v397_v2  ;;  %v367_v11 = vmul.f32 %v733_v31, %v344_v5  ;;  %v375_v12 = vmul.f32 %v733_v31, %v352_v6  ;;  %v260_v13 = vpop.f32.mrf.mxu0  ;;  %v292_v14 = vpop.f32.mrf.mxu1 }
  0xf4   :  { %vm313_vm8 = vcmp.ge.f32.partialorder %v259_v7, 0.0  ;;  %v329_v15 = vmul.f32 0.2, %v259_v7  ;;  %vm321_vm9 = vcmp.ge.f32.partialorder %v291_v8, 0.0  ;;  %v337_v16 = vmul.f32 0.2, %v291_v8 }
  0xf5   :  { %470 = vst.msk [vmem:[%s855_s5 + $0x4] sm:$0xf] %vm468_vm5, %v542_v9  ;;  %478 = vst.msk [vmem:[%s855_s5 + $0x24] sm:$0xf] %vm468_vm5, %v550_v10  ;;  %v390_v17 = vadd.f32 %v738_v39, %v367_v11  ;;  %v398_v18 = vadd.f32 %v738_v39, %v375_v12  ;;  %v263_v19 = vpop.f32.mrf.mxu0  ;;  %v295_v20 = vpop.f32.mrf.mxu1 }
  0xf6   :  { %v345_v21 = vsel %vm313_vm8, %v259_v7, %v329_v15  ;;  %v353_v22 = vsel %vm321_vm9, %v291_v8, %v337_v16  ;;  %v264_v23 = vadd.f32 %v726_v26, %v263_v19  ;;  %v296_v24 = vadd.f32 %v726_v26, %v295_v20 }
  0xf7   :  { %v543_v25 = vpack.c.bf16 %v390_v17, %v390_v17  ;;  %v551_v27 = vpack.c.bf16 %v398_v18, %v398_v18  ;;  %v368_v28 = vmul.f32 %v733_v31, %v345_v21  ;;  %v376_v29 = vmul.f32 %v733_v31, %v353_v22  ;;  %v265_v30 = vpop.f32.mrf.mxu0  ;;  %v297_v32 = vpop.f32.mrf.mxu1 }
  0xf8   :  { %vm314_vm10 = vcmp.ge.f32.partialorder %v264_v23, 0.0  ;;  %v330_v33 = vmul.f32 0.2, %v264_v23  ;;  %vm322_vm11 = vcmp.ge.f32.partialorder %v296_v24, 0.0  ;;  %v338_v34 = vmul.f32 0.2, %v296_v24 }
  0xf9   :  { %471 = vst.msk [vmem:[%s855_s5 + $0x8] sm:$0xf] %vm468_vm5, %v543_v25  ;;  %479 = vst.msk [vmem:[%s855_s5 + $0x28] sm:$0xf] %vm468_vm5, %v551_v27  ;;  %v391_v35 = vadd.f32 %v738_v39, %v368_v28  ;;  %v399_v36 = vadd.f32 %v738_v39, %v376_v29  ;;  %v266_v37 = vpop.f32.mrf.mxu0  ;;  %v298_v38 = vpop.f32.mrf.mxu1 }
  0xfa   :  { %v346_v40 = vsel %vm314_vm10, %v264_v23, %v330_v33  ;;  %v354_v41 = vsel %vm322_vm11, %v296_v24, %v338_v34  ;;  %v267_v42 = vadd.f32 %v726_v26, %v266_v37  ;;  %v299_v43 = vadd.f32 %v726_v26, %v298_v38 }
  0xfb   :  { %v544_v44 = vpack.c.bf16 %v391_v35, %v391_v35  ;;  %v552_v45 = vpack.c.bf16 %v399_v36, %v399_v36  ;;  %v369_v46 = vmul.f32 %v733_v31, %v346_v40  ;;  %v377_v47 = vmul.f32 %v733_v31, %v354_v41  ;;  %v268_v48 = vpop.f32.mrf.mxu0  ;;  %v300_v49 = vpop.f32.mrf.mxu1 }
  0xfc   :  { %vm315_vm12 = vcmp.ge.f32.partialorder %v267_v42, 0.0  ;;  %v331_v50 = vmul.f32 0.2, %v267_v42  ;;  %vm323_vm13 = vcmp.ge.f32.partialorder %v299_v43, 0.0  ;;  %v339_v51 = vmul.f32 0.2, %v299_v43 }
  0xfd   :  { %472 = vst.msk [vmem:[%s855_s5 + $0xc] sm:$0xf] %vm468_vm5, %v544_v44  ;;  %480 = vst.msk [vmem:[%s855_s5 + $0x2c] sm:$0xf] %vm468_vm5, %v552_v45  ;;  %v392_v52 = vadd.f32 %v738_v39, %v369_v46  ;;  %v400_v53 = vadd.f32 %v738_v39, %v377_v47  ;;  %v271_v54 = vpop.f32.mrf.mxu0  ;;  %v303_v55 = vpop.f32.mrf.mxu1 }
  0xfe   :  { %v347_v56 = vsel %vm315_vm12, %v267_v42, %v331_v50  ;;  %v355_v57 = vsel %vm323_vm13, %v299_v43, %v339_v51  ;;  %v272_v58 = vadd.f32 %v726_v26, %v271_v54  ;;  %v304_v59 = vadd.f32 %v726_v26, %v303_v55 }
  0xff   :  { %v545_v60 = vpack.c.bf16 %v392_v52, %v392_v52  ;;  %v553_v61 = vpack.c.bf16 %v400_v53, %v400_v53  ;;  %v370_v62 = vmul.f32 %v733_v31, %v347_v56  ;;  %v378_v63 = vmul.f32 %v733_v31, %v355_v57  ;;  %v273_v0 = vpop.f32.mrf.mxu0  ;;  %v305_v1 = vpop.f32.mrf.mxu1 }
 0x100   :  { %vm316_vm14 = vcmp.ge.f32.partialorder %v272_v58, 0.0  ;;  %v332_v2 = vmul.f32 0.2, %v272_v58  ;;  %vm324_vm15 = vcmp.ge.f32.partialorder %v304_v59, 0.0  ;;  %v340_v3 = vmul.f32 0.2, %v304_v59 }
 0x101   :  { %473 = vst.msk [vmem:[%s855_s5 + $0x10] sm:$0xf] %vm468_vm5, %v545_v60  ;;  %481 = vst.msk [vmem:[%s855_s5 + $0x30] sm:$0xf] %vm468_vm5, %v553_v61  ;;  %v393_v4 = vadd.f32 %v738_v39, %v370_v62  ;;  %v401_v5 = vadd.f32 %v738_v39, %v378_v63  ;;  %v274_v6 = vpop.f32.mrf.mxu0  ;;  %v306_v7 = vpop.f32.mrf.mxu1 }
 0x102   :  { %v348_v8 = vsel %vm316_vm14, %v272_v58, %v332_v2  ;;  %v356_v9 = vsel %vm324_vm15, %v304_v59, %v340_v3  ;;  %v275_v10 = vadd.f32 %v726_v26, %v274_v6  ;;  %v307_v11 = vadd.f32 %v726_v26, %v306_v7 }
 0x103   :  { %v546_v12 = vpack.c.bf16 %v393_v4, %v393_v4  ;;  %v554_v13 = vpack.c.bf16 %v401_v5, %v401_v5  ;;  %v371_v14 = vmul.f32 %v733_v31, %v348_v8  ;;  %v379_v15 = vmul.f32 %v733_v31, %v356_v9  ;;  %v276_v16 = vpop.f32.mrf.mxu0  ;;  %v308_v17 = vpop.f32.mrf.mxu1 }
 0x104   :  { %vm317_vm0 = vcmp.ge.f32.partialorder %v275_v10, 0.0  ;;  %v333_v18 = vmul.f32 0.2, %v275_v10  ;;  %vm325_vm1 = vcmp.ge.f32.partialorder %v307_v11, 0.0  ;;  %v341_v19 = vmul.f32 0.2, %v307_v11 }
 0x105   :  { %474 = vst.msk [vmem:[%s855_s5 + $0x14] sm:$0xf] %vm468_vm5, %v546_v12  ;;  %482 = vst.msk [vmem:[%s855_s5 + $0x34] sm:$0xf] %vm468_vm5, %v554_v13  ;;  %v394_v26 = vadd.f32 %v738_v39, %v371_v14  ;;  %v402_v20 = vadd.f32 %v738_v39, %v379_v15 }
 0x106   :  { %v349_v21 = vsel %vm317_vm0, %v275_v10, %v333_v18  ;;  %v357_v22 = vsel %vm325_vm1, %v307_v11, %v341_v19 }
 0x107   :  { %v547_v23 = vpack.c.bf16 %v394_v26, %v394_v26  ;;  %v555_v24 = vpack.c.bf16 %v402_v20, %v402_v20  ;;  %v372_v25 = vmul.f32 %v733_v31, %v349_v21  ;;  %v380_v27 = vmul.f32 %v733_v31, %v357_v22 }
 0x109   :  { %475 = vst.msk [vmem:[%s855_s5 + $0x18] sm:$0xf] %vm468_vm5, %v547_v23  ;;  %483 = vst.msk [vmem:[%s855_s5 + $0x38] sm:$0xf] %vm468_vm5, %v555_v24  ;;  %v395_v28 = vadd.f32 %v738_v39, %v372_v25  ;;  %v403_v29 = vadd.f32 %v738_v39, %v380_v27 }
 0x10b   :  { %v548_v30 = vpack.c.bf16 %v395_v28, %v395_v28  ;;  %v556_v32 = vpack.c.bf16 %v403_v29, %v403_v29 }
 0x10d   :  { %476 = vst.msk [vmem:[%s855_s5 + $0x1c] sm:$0xf] %vm468_vm5, %v548_v30  ;;  %484 = vst.msk [vmem:[%s855_s5 + $0x3c] sm:$0xf] %vm468_vm5, %v556_v32 }

// kernel: discriminator_forward.8
= control target key start
LH: loop header
LB: loop body
LE: loop exit
PB: predicated region body
PF: predicated region fallthrough
CT: control target
= control target key end

     0   :  { %vm210_vm0 = vcmask 261120   ;;  %vm365_vm3 = vcmask 519168   ;;  %s604_s1 = inlined_call_operand.vmem [shape: bf16[288,64], index: 1, kind: input, shape index: {}]   ;;  %s605_s0 = inlined_call_operand.vmem [shape: bf16[32,288], index: 0, kind: input, shape index: {}]   ;;  %s606_s2 = inlined_call_operand.vmem [shape: f32[1,64], index: 2, kind: input, shape index: {}]   ;;  %s607_s3 = inlined_call_operand.vmem [shape: f32[1,64], index: 3, kind: input, shape index: {}]   ;;  %s608_s4 = inlined_call_operand.vmem [shape: f32[1,64], index: 4, kind: input, shape index: {}]   ;;  %s609_s5 = inlined_call_operand.vmem [shape: bf16[32,64], index: 5, kind: output, shape index: {}]  }
   0x1   :  { %v451_v0 = vld [vmem:[%s604_s1 + $0x78] sm:$0xff]   ;;  %v453_v2 = vld [vmem:[%s604_s1 + $0x70] sm:$0xff]   ;;  %v455_v4 = vld [vmem:[%s604_s1 + $0x68] sm:$0xff]  }
   0x2   :  { %v452_v1 = vld [vmem:[%s604_s1 + $0x38] sm:$0xff]   ;;  %411 = vmatprep.subr.bf16.mxu0 %v451_v0  ;;  %v454_v3 = vld [vmem:[%s604_s1 + $0x30] sm:$0xff]   ;;  %v456_v5 = vld [vmem:[%s604_s1 + $0x28] sm:$0xff]  }
   0x3   :  { %412 = vmatpush3.bf16.msra.mxu0 %v452_v1  ;;  %v457_v6 = vld [vmem:[%s604_s1 + $0x60] sm:$0xff]   ;;  %v459_v8 = vld [vmem:[%s604_s1 + $0x58] sm:$0xff]   ;;  %v466_v10 = vld [vmem:[%s604_s1 + $0x88] sm:$0xff]  }
   0x4   :  { %413 = vmatprep.subr.bf16.mxu0 %v453_v2  ;;  %v458_v7 = vld [vmem:[%s604_s1 + $0x20] sm:$0xff]   ;;  %v460_v9 = vld [vmem:[%s604_s1 + $0x18] sm:$0xff]   ;;  %v461_v11 = vld [vmem:[%s604_s1 + $0x50] sm:$0xff]   ;;  %443 = vmatprep.subr.bf16.mxu1 %v466_v10 }
   0x5   :  { %v462_v12 = vld [vmem:[%s604_s1 + $0x10] sm:$0xff]   ;;  %v463_v13 = vld [vmem:[%s604_s1 + $0x48] sm:$0xff]   ;;  %444 = vmatpush3.bf16.msra.mxu1 %v466_v10  ;;  %v471_v15 = vld [vmem:[%s604_s1 + $0x80] sm:$0xff]  }
   0x6   :  { %v470_v14 = vld [vmem:[%s605_s0 + $0x4] ss:$12 sps:$4 sm:$0xff]   ;;  %v472_v16 = vld [vmem:[%s605_s0 + $0x8] ss:$12 sps:$4 sm:$0xff]   ;;  %445 = vmatprep.subr.bf16.mxu1 %v471_v15  ;;  %v473_v17 = vld [vmem:[%s605_s0 + $0x20] ss:$12 sps:$4 sm:$0xff]  }
   0x7   :  { %414 = vmatpush3.bf16.msra.mxu0 %v454_v3  ;;  %249 = vmatprep.mubr.bf16.mxu0 %v470_v14  ;;  %v464_v18 = vld [vmem:[%s604_s1 + $0x8] sm:$0xff]   ;;  %v465_v19 = vld [vmem:[%s604_s1 + $0x40] sm:$0xff]  }
   0x8   :  { %415 = vmatprep.subr.bf16.mxu0 %v455_v4  ;;  %447 = vmatprep.mubr.msk.bf16.mxu1 %vm210_vm0, %v472_v16  ;;  %v467_v20 = vld [vmem:[%s604_s1] sm:$0xff]   ;;  %v474_v22 = vld [vmem:[%s605_s0 + $0x1c] ss:$12 sps:$4 sm:$0xff]  }
   0x9   :  { %446 = vmatpush3.bf16.msra.mxu1 %v471_v15  ;;  %v468_v21 = vld [vmem:[%s605_s0] ss:$12 sps:$4 sm:$0xff]   ;;  %v476_v23 = vld [vmem:[%s605_s0 + $0x18] ss:$12 sps:$4 sm:$0xff]  }
   0xa   :  { %v374_v28 = vld [vmem:[%s606_s2] ss:$0 sm:$0xff] }
   0xb   :  { %416 = vmatpush3.bf16.msra.mxu0 %v456_v5  ;;  %v401_v39 = vld [vmem:[%s607_s3] ss:$0 sm:$0xff] }
   0xc   :  { %417 = vmatprep.subr.bf16.mxu0 %v457_v6  ;;  %448 = vmatmul.mubr.msk.bf16.vlgmr.msra.gmra.mxu1 %vm210_vm0, %v473_v17  ;;  %v402_v43 = vld [vmem:[%s608_s4] ss:$0 sm:$0xff] }
   0xf   :  { %418 = vmatpush3.bf16.msra.mxu0 %v458_v7 }
  0x10   :  { %419 = vmatprep.subr.bf16.mxu0 %v459_v8 }
  0x13   :  { %420 = vmatpush3.bf16.msra.mxu0 %v460_v9 }
  0x14   :  { %421 = vmatprep.subr.bf16.mxu0 %v461_v11 }
  0x17   :  { %422 = vmatpush3.bf16.msra.mxu0 %v462_v12 }
  0x18   :  { %423 = vmatprep.subr.bf16.mxu0 %v463_v13 }
  0x1b   :  { %424 = vmatpush3.bf16.msra.mxu0 %v464_v18 }
  0x1c   :  { %425 = vmatprep.subr.bf16.mxu0 %v465_v19 }
  0x1f   :  { %426 = vmatpush3.bf16.msra.mxu0 %v467_v20 }
  0x22   :  { %250 = vmatmul.mubr.bf16.vlgmr.msra.gmra.mxu0 %v468_v21 }
  0x23   :  { %257 = vmatprep.mubr.bf16.mxu0 %v474_v22 }
  0x2a   :  { %258 = vmatmul.mubr.bf16.gmra.mxu0 %v476_v23 }
  0xcc   :  { %v449_v24 = vpop.f32.mrf.mxu1 }
  0xce   :  { %v300_v26 = vpop.f32.mrf.mxu1 }
  0xd0   :  { %v450_v31 = vpop.f32.mrf.mxu1 }
  0xd2   :  { %v303_v37 = vpop.f32.mrf.mxu1 }
  0xe2   :  { %v427_v25 = vpop.f32.mrf.mxu0 }
  0xe4   :  { %v428_v27 = vpop.f32.mrf.mxu0 }
  0xe5   :  { %v429_v29 = vadd.f32 %v428_v27, %v427_v25 }
  0xe6   :  { %v430_v30 = vpop.f32.mrf.mxu0 }
  0xe7   :  { %v252_v32 = vadd.f32 %v429_v29, %v374_v28 }
  0xe8   :  { %v431_v33 = vpop.f32.mrf.mxu0 }
  0xe9   :  { %v432_v34 = vadd.f32 %v431_v33, %v430_v30  ;;  %v301_v35 = vadd.f32 %v300_v26, %v252_v32 }
  0xea   :  { %v433_v36 = vpop.f32.mrf.mxu0 }
  0xeb   :  { %vm315_vm1 = vcmp.ge.f32.partialorder %v301_v35, 0.0  ;;  %v319_v38 = vmul.f32 0.2, %v301_v35  ;;  %v255_v40 = vadd.f32 %v432_v34, %v374_v28 }
  0xec   :  { %v434_v41 = vpop.f32.mrf.mxu0 }
  0xed   :  { %v323_v42 = vsel %vm315_vm1, %v301_v35, %v319_v38  ;;  %v435_v44 = vadd.f32 %v434_v41, %v433_v36  ;;  %v304_v45 = vadd.f32 %v303_v37, %v255_v40 }
  0xee   :  { %v334_v46 = vmul.f32 %v401_v39, %v323_v42  ;;  %v436_v47 = vpop.f32.mrf.mxu0 }
  0xef   :  { %v260_v48 = vadd.f32 %v435_v44, %v374_v28  ;;  %vm316_vm2 = vcmp.ge.f32.partialorder %v304_v45, 0.0  ;;  %v320_v49 = vmul.f32 0.2, %v304_v45 }
  0xf0   :  { %v345_v50 = vadd.f32 %v402_v43, %v334_v46  ;;  %v437_v51 = vpop.f32.mrf.mxu0 }
  0xf1   :  { %v309_v52 = vadd.f32 %v449_v24, %v260_v48  ;;  %v324_v53 = vsel %vm316_vm2, %v304_v45, %v320_v49  ;;  %v438_v54 = vadd.f32 %v437_v51, %v436_v47 }
  0xf2   :  { %v407_v55 = vpack.c.bf16 %v345_v50, %v345_v50  ;;  %v335_v56 = vmul.f32 %v401_v39, %v324_v53 }
  0xf3   :  { %vm317_vm4 = vcmp.ge.f32.partialorder %v309_v52, 0.0  ;;  %v321_v57 = vmul.f32 0.2, %v309_v52  ;;  %v263_v58 = vadd.f32 %v438_v54, %v374_v28 }
  0xf4   :  { %366 = vst.msk [vmem:[%s609_s5] sm:$0xf] %vm365_vm3, %v407_v55  ;;  %v346_v59 = vadd.f32 %v402_v43, %v335_v56 }
  0xf5   :  { %v325_v60 = vsel %vm317_vm4, %v309_v52, %v321_v57  ;;  %v312_v61 = vadd.f32 %v450_v31, %v263_v58 }
  0xf6   :  { %v336_v62 = vmul.f32 %v401_v39, %v325_v60  ;;  %v408_v63 = vpack.c.bf16 %v346_v59, %v346_v59 }
  0xf7   :  { %vm318_vm5 = vcmp.ge.f32.partialorder %v312_v61, 0.0  ;;  %v322_v0 = vmul.f32 0.2, %v312_v61 }
  0xf8   :  { %v347_v1 = vadd.f32 %v402_v43, %v336_v62  ;;  %367 = vst.msk [vmem:[%s609_s5 + $0x4] sm:$0xf] %vm365_vm3, %v408_v63 }
  0xf9   :  { %v326_v2 = vsel %vm318_vm5, %v312_v61, %v322_v0 }
  0xfa   :  { %v409_v3 = vpack.c.bf16 %v347_v1, %v347_v1  ;;  %v337_v4 = vmul.f32 %v401_v39, %v326_v2 }
  0xfc   :  { %368 = vst.msk [vmem:[%s609_s5 + $0x8] sm:$0xf] %vm365_vm3, %v409_v3  ;;  %v348_v5 = vadd.f32 %v402_v43, %v337_v4 }
  0xfe   :  { %v410_v6 = vpack.c.bf16 %v348_v5, %v348_v5 }
 0x100   :  { %369 = vst.msk [vmem:[%s609_s5 + $0xc] sm:$0xf] %vm365_vm3, %v410_v6 }

// kernel: discriminator_forward.9
= control target key start
LH: loop header
LB: loop body
LE: loop exit
PB: predicated region body
PF: predicated region fallthrough
CT: control target
= control target key end

     0   :  { %v634_v35 = vmov 0.0   ;;  %vm635_vm0 = vmmov 0   ;;  %vm336_vm1 = vcmask 523264   ;;  %s795_s1 = inlined_call_operand.vmem [shape: bf16[576,128], index: 1, kind: input, shape index: {}]   ;;  %s796_s0 = inlined_call_operand.vmem [shape: bf16[8,576], index: 0, kind: input, shape index: {}]   ;;  %s797_s2 = inlined_call_operand.vmem [shape: f32[1,128], index: 2, kind: input, shape index: {}]   ;;  %s798_s3 = inlined_call_operand.vmem [shape: f32[1,128], index: 3, kind: input, shape index: {}]   ;;  %s799_s4 = inlined_call_operand.vmem [shape: f32[1,128], index: 4, kind: input, shape index: {}]   ;;  %s800_s5 = inlined_call_operand.vmem [shape: bf16[8,128], index: 5, kind: output, shape index: {}]  }
   0x1   :  { %v593_v0 = vld [vmem:[%s795_s1 + $0x78] sm:$0xff]   ;;  %v597_v4 = vld [vmem:[%s795_s1 + $0x70] sm:$0xff]   ;;  %v601_v8 = vld [vmem:[%s795_s1 + $0x68] sm:$0xff]  }
   0x2   :  { %v594_v1 = vld [vmem:[%s795_s1 + $0x38] sm:$0xff]   ;;  %530 = vmatprep.subr.bf16.mxu0 %v593_v0  ;;  %v598_v5 = vld [vmem:[%s795_s1 + $0x30] sm:$0xff]   ;;  %v602_v9 = vld [vmem:[%s795_s1 + $0x28] sm:$0xff]  }
   0x3   :  { %v595_v2 = vld [vmem:[%s795_s1 + $0xf8] sm:$0xff]   ;;  %531 = vmatpush3.bf16.msra.mxu0 %v594_v1  ;;  %v599_v6 = vld [vmem:[%s795_s1 + $0xf0] sm:$0xff]   ;;  %v603_v10 = vld [vmem:[%s795_s1 + $0xe8] sm:$0xff]  }
   0x4   :  { %v596_v3 = vld [vmem:[%s795_s1 + $0xb8] sm:$0xff]   ;;  %552 = vmatprep.subr.bf16.mxu1 %v595_v2  ;;  %532 = vmatprep.subr.bf16.mxu0 %v597_v4  ;;  %v600_v7 = vld [vmem:[%s795_s1 + $0xb0] sm:$0xff]   ;;  %v604_v11 = vld [vmem:[%s795_s1 + $0xa8] sm:$0xff]  }
   0x5   :  { %553 = vmatpush3.bf16.msra.mxu1 %v596_v3  ;;  %v605_v12 = vld [vmem:[%s795_s1 + $0x60] sm:$0xff]   ;;  %v609_v16 = vld [vmem:[%s795_s1 + $0x58] sm:$0xff]   ;;  %v613_v20 = vld [vmem:[%s795_s1 + $0x50] sm:$0xff]  }
   0x6   :  { %554 = vmatprep.subr.bf16.mxu1 %v599_v6  ;;  %v606_v13 = vld [vmem:[%s795_s1 + $0x20] sm:$0xff]   ;;  %v610_v17 = vld [vmem:[%s795_s1 + $0x18] sm:$0xff]   ;;  %v614_v21 = vld [vmem:[%s795_s1 + $0x10] sm:$0xff]  }
   0x7   :  { %533 = vmatpush3.bf16.msra.mxu0 %v598_v5  ;;  %v607_v14 = vld [vmem:[%s795_s1 + $0xe0] sm:$0xff]   ;;  %v611_v18 = vld [vmem:[%s795_s1 + $0xd8] sm:$0xff]   ;;  %v615_v22 = vld [vmem:[%s795_s1 + $0xd0] sm:$0xff]  }
   0x8   :  { %534 = vmatprep.subr.bf16.mxu0 %v601_v8  ;;  %v608_v15 = vld [vmem:[%s795_s1 + $0xa0] sm:$0xff]   ;;  %v612_v19 = vld [vmem:[%s795_s1 + $0x98] sm:$0xff]   ;;  %v616_v23 = vld [vmem:[%s795_s1 + $0x90] sm:$0xff]  }
   0x9   :  { %555 = vmatpush3.bf16.msra.mxu1 %v600_v7  ;;  %v617_v24 = vld [vmem:[%s795_s1 + $0x48] sm:$0xff]   ;;  %v621_v28 = vld [vmem:[%s795_s1 + $0x40] sm:$0xff]   ;;  %v630_v39 = vld [vmem:[%s795_s1 + $0x118] sm:$0xff]  }
   0xa   :  { %556 = vmatprep.subr.bf16.mxu1 %v603_v10  ;;  %v618_v25 = vld [vmem:[%s795_s1 + $0x8] sm:$0xff]   ;;  %v622_v29 = vld [vmem:[%s795_s1] sm:$0xff]   ;;  %v631_v40 = vld [vmem:[%s795_s1 + $0x110] sm:$0xff]  }
   0xb   :  { %535 = vmatpush3.bf16.msra.mxu0 %v602_v9  ;;  %v619_v26 = vld [vmem:[%s795_s1 + $0xc8] sm:$0xff]   ;;  %v623_v30 = vld [vmem:[%s795_s1 + $0xc0] sm:$0xff]   ;;  %v626_v43 = vld [vmem:[%s796_s0 + $0x10] ss:$0 sps:$4 sm:$0xff]  }
   0xc   :  { %536 = vmatprep.subr.bf16.mxu0 %v605_v12  ;;  %v620_v27 = vld [vmem:[%s795_s1 + $0x88] sm:$0xff]   ;;  %v21_v31 = vld [vmem:[%s796_s0] sm:$0xff] }
   0xd   :  { %557 = vmatpush3.bf16.msra.mxu1 %v604_v11  ;;  %v486_v32 = vcombine.low %v21_v31, %v21_v31  ;;  %v487_v33 = vcombine.high %v21_v31, %v21_v31  ;;  %v627_v34 = vld [vmem:[%s795_s1 + $0x80] sm:$0xff]   ;;  %v22_v36 = vld [vmem:[%s796_s0 + $0x8] sm:$0xff] }
   0xe   :  { %558 = vmatprep.subr.bf16.mxu1 %v607_v14  ;;  %v488_v37 = vcombine.low %v22_v36, %v22_v36  ;;  %v489_v38 = vcombine.high %v22_v36, %v22_v36  ;;  %v632_v41 = vld [vmem:[%s795_s1 + $0x108] sm:$0xff]   ;;  %v633_v42 = vld [vmem:[%s795_s1 + $0x100] sm:$0xff]  }
   0xf   :  { %537 = vmatpush3.bf16.msra.mxu0 %v606_v13  ;;  %372 = vmatprep.mubr.bf16.mxu0 %v487_v33  ;;  %v485_v52 = vld [vmem:[%s797_s2] ss:$0 sm:$0xff] }
  0x10   :  { %538 = vmatprep.subr.bf16.mxu0 %v609_v16  ;;  %412 = vmatprep.mubr.bf16.mxu1 %v489_v38  ;;  %v528_v61 = vld [vmem:[%s798_s3] ss:$0 sm:$0xff] }
  0x11   :  { %559 = vmatpush3.bf16.msra.mxu1 %v608_v15  ;;  %v529_v0 = vld [vmem:[%s799_s4] ss:$0 sm:$0xff] }
  0x12   :  { %560 = vmatprep.subr.bf16.mxu1 %v611_v18 }
  0x13   :  { %539 = vmatpush3.bf16.msra.mxu0 %v610_v17 }
  0x14   :  { %540 = vmatprep.subr.bf16.mxu0 %v613_v20 }
  0x15   :  { %561 = vmatpush3.bf16.msra.mxu1 %v612_v19 }
  0x16   :  { %562 = vmatprep.subr.bf16.mxu1 %v615_v22 }
  0x17   :  { %541 = vmatpush3.bf16.msra.mxu0 %v614_v21 }
  0x18   :  { %542 = vmatprep.subr.bf16.mxu0 %v617_v24 }
  0x19   :  { %563 = vmatpush3.bf16.msra.mxu1 %v616_v23 }
  0x1a   :  { %564 = vmatprep.subr.bf16.mxu1 %v619_v26 }
  0x1b   :  { %543 = vmatpush3.bf16.msra.mxu0 %v618_v25 }
  0x1c   :  { %544 = vmatprep.subr.bf16.mxu0 %v621_v28 }
  0x1d   :  { %565 = vmatpush3.bf16.msra.mxu1 %v620_v27 }
  0x1e   :  { %566 = vmatprep.subr.bf16.mxu1 %v623_v30 }
  0x1f   :  { %545 = vmatpush3.bf16.msra.mxu0 %v622_v29 }
  0x20   :  { %579 = vmatprep.subr.bf16.mxu0 %v634_v35 }
  0x21   :  { %567 = vmatpush3.bf16.msra.mxu1 %v627_v34 }
  0x22   :  { %373 = vmatmul.mubr.bf16.vlgmr.msra.gmra.mxu0 %v486_v32 }
  0x23   :  { %580 = vmatpush3.bf16.msra.mxu0 %v630_v39  ;;  %587 = vmatprep.mubr.msk.bf16.mxu0 %vm635_vm0, %v634_v35 }
  0x24   :  { %413 = vmatmul.mubr.bf16.vlgmr.msra.gmra.mxu1 %v488_v37  ;;  %581 = vmatprep.subr.bf16.mxu0 %v634_v35 }
  0x27   :  { %582 = vmatpush3.bf16.msra.mxu0 %v631_v40 }
  0x28   :  { %583 = vmatprep.subr.bf16.mxu0 %v634_v35 }
  0x2b   :  { %584 = vmatpush3.bf16.msra.mxu0 %v632_v41 }
  0x2c   :  { %585 = vmatprep.subr.bf16.mxu0 %v634_v35 }
  0x2f   :  { %586 = vmatpush3.bf16.msra.mxu0 %v633_v42 }
  0x32   :  { %588 = vmatmul.mubr.msk.bf16.vlgmr.msra.gmra.mxu0 %vm336_vm1, %v626_v43 }
  0xe2   :  { %v546_v44 = vpop.f32.mrf.mxu0 }
  0xe4   :  { %v547_v45 = vpop.f32.mrf.mxu0  ;;  %v568_v46 = vpop.f32.mrf.mxu1 }
  0xe5   :  { %v548_v51 = vadd.f32 %v547_v45, %v546_v44 }
  0xe6   :  { %v549_v47 = vpop.f32.mrf.mxu0  ;;  %v569_v48 = vpop.f32.mrf.mxu1 }
  0xe7   :  { %v375_v54 = vadd.f32 %v548_v51, %v485_v52  ;;  %v570_v55 = vadd.f32 %v569_v48, %v568_v46 }
  0xe8   :  { %v550_v49 = vpop.f32.mrf.mxu0  ;;  %v571_v50 = vpop.f32.mrf.mxu1 }
  0xe9   :  { %v415_v56 = vadd.f32 %v570_v55, %v375_v54 }
  0xea   :  { %v572_v53 = vpop.f32.mrf.mxu1 }
  0xf2   :  { %v454_v57 = vpop.f32.mrf.mxu0 }
  0xf3   :  { %v455_v58 = vadd.f32 %v454_v57, %v415_v56 }
  0xf4   :  { %v589_v59 = vpop.f32.mrf.mxu0 }
  0xf5   :  { %vm460_vm2 = vcmp.ge.f32.partialorder %v455_v58, 0.0  ;;  %v461_v60 = vmul.f32 0.2, %v455_v58 }
  0xf6   :  { %v457_v62 = vpop.f32.mrf.mxu0 }
  0xf7   :  { %v462_v63 = vsel %vm460_vm2, %v455_v58, %v461_v60 }
  0xf8   :  { %v470_v1 = vmul.f32 %v528_v61, %v462_v63  ;;  %v590_v2 = vpop.f32.mrf.mxu0 }
  0xfa   :  { %v478_v3 = vadd.f32 %v529_v0, %v470_v1 }
  0xfc   :  { %v479_v4 = vpack.c.bf16 %v478_v3, %v478_v3 }
  0xfe   :  { %480 = vst [vmem:[%s800_s5] sm:$0xf] %v479_v4 }

// kernel: discriminator_forward.11
= control target key start
LH: loop header
LB: loop body
LE: loop exit
PB: predicated region body
PF: predicated region fallthrough
CT: control target
= control target key end

     0   :  { %s633_s1 = inlined_call_operand.vmem [shape: bf16[512,128], index: 1, kind: input, shape index: {}]   ;;  %s634_s0 = inlined_call_operand.vmem [shape: bf16[8,512], index: 0, kind: input, shape index: {}]   ;;  %s635_s2 = inlined_call_operand.vmem [shape: f32[1,128], index: 2, kind: input, shape index: {}]   ;;  %s636_s3 = inlined_call_operand.vmem [shape: f32[8,128], index: 3, kind: output, shape index: {}]  }
   0x1   :  { %v465_v0 = vld [vmem:[%s633_s1 + $0x78] sm:$0xff]   ;;  %v469_v4 = vld [vmem:[%s633_s1 + $0x70] sm:$0xff]   ;;  %v473_v8 = vld [vmem:[%s633_s1 + $0x68] sm:$0xff]  }
   0x2   :  { %v466_v1 = vld [vmem:[%s633_s1 + $0xf8] sm:$0xff]   ;;  %421 = vmatprep.subr.bf16.mxu0 %v465_v0  ;;  %v470_v5 = vld [vmem:[%s633_s1 + $0xf0] sm:$0xff]   ;;  %v474_v9 = vld [vmem:[%s633_s1 + $0xe8] sm:$0xff]  }
   0x3   :  { %v467_v2 = vld [vmem:[%s633_s1 + $0x38] sm:$0xff]   ;;  %443 = vmatprep.subr.bf16.mxu1 %v466_v1  ;;  %v471_v6 = vld [vmem:[%s633_s1 + $0x30] sm:$0xff]   ;;  %v475_v10 = vld [vmem:[%s633_s1 + $0x28] sm:$0xff]  }
   0x4   :  { %v468_v3 = vld [vmem:[%s633_s1 + $0xb8] sm:$0xff]   ;;  %422 = vmatpush3.bf16.msra.mxu0 %v467_v2  ;;  %v472_v7 = vld [vmem:[%s633_s1 + $0xb0] sm:$0xff]   ;;  %v476_v11 = vld [vmem:[%s633_s1 + $0xa8] sm:$0xff]  }
   0x5   :  { %444 = vmatpush3.bf16.msra.mxu1 %v468_v3  ;;  %423 = vmatprep.subr.bf16.mxu0 %v469_v4  ;;  %v477_v12 = vld [vmem:[%s633_s1 + $0x60] sm:$0xff]   ;;  %v481_v16 = vld [vmem:[%s633_s1 + $0x58] sm:$0xff]   ;;  %v485_v20 = vld [vmem:[%s633_s1 + $0x50] sm:$0xff]  }
   0x6   :  { %445 = vmatprep.subr.bf16.mxu1 %v470_v5  ;;  %v478_v13 = vld [vmem:[%s633_s1 + $0xe0] sm:$0xff]   ;;  %v482_v17 = vld [vmem:[%s633_s1 + $0xd8] sm:$0xff]   ;;  %v486_v21 = vld [vmem:[%s633_s1 + $0xd0] sm:$0xff]  }
   0x7   :  { %v479_v14 = vld [vmem:[%s633_s1 + $0x20] sm:$0xff]   ;;  %v483_v18 = vld [vmem:[%s633_s1 + $0x18] sm:$0xff]   ;;  %v487_v22 = vld [vmem:[%s633_s1 + $0x10] sm:$0xff]  }
   0x8   :  { %424 = vmatpush3.bf16.msra.mxu0 %v471_v6  ;;  %v480_v15 = vld [vmem:[%s633_s1 + $0xa0] sm:$0xff]   ;;  %v484_v19 = vld [vmem:[%s633_s1 + $0x98] sm:$0xff]   ;;  %v488_v23 = vld [vmem:[%s633_s1 + $0x90] sm:$0xff]  }
   0x9   :  { %446 = vmatpush3.bf16.msra.mxu1 %v472_v7  ;;  %425 = vmatprep.subr.bf16.mxu0 %v473_v8  ;;  %v489_v24 = vld [vmem:[%s633_s1 + $0x48] sm:$0xff]   ;;  %v493_v28 = vld [vmem:[%s633_s1 + $0x40] sm:$0xff]  }
   0xa   :  { %447 = vmatprep.subr.bf16.mxu1 %v474_v9  ;;  %v490_v25 = vld [vmem:[%s633_s1 + $0xc8] sm:$0xff]   ;;  %v494_v29 = vld [vmem:[%s633_s1 + $0xc0] sm:$0xff]  }
   0xb   :  { %v491_v26 = vld [vmem:[%s633_s1 + $0x8] sm:$0xff]   ;;  %v495_v30 = vld [vmem:[%s633_s1] sm:$0xff]  }
   0xc   :  { %426 = vmatpush3.bf16.msra.mxu0 %v475_v10  ;;  %v492_v27 = vld [vmem:[%s633_s1 + $0x88] sm:$0xff]   ;;  %v496_v31 = vld [vmem:[%s633_s1 + $0x80] sm:$0xff]  }
   0xd   :  { %448 = vmatpush3.bf16.msra.mxu1 %v476_v11  ;;  %427 = vmatprep.subr.bf16.mxu0 %v477_v12  ;;  %v15_v32 = vld [vmem:[%s634_s0] sm:$0xff]  ;;  %v16_v33 = vld [vmem:[%s634_s0 + $0x8] sm:$0xff] }
   0xe   :  { %449 = vmatprep.subr.bf16.mxu1 %v478_v13  ;;  %v385_v34 = vcombine.low %v15_v32, %v15_v32  ;;  %v386_v35 = vcombine.high %v15_v32, %v15_v32  ;;  %v387_v36 = vcombine.low %v16_v33, %v16_v33  ;;  %v388_v37 = vcombine.high %v16_v33, %v16_v33  ;;  %v384_v40 = vld [vmem:[%s635_s2] ss:$0 sm:$0xff] }
  0x10   :  { %428 = vmatpush3.bf16.msra.mxu0 %v479_v14  ;;  %326 = vmatprep.mubr.bf16.mxu0 %v386_v35 }
  0x11   :  { %450 = vmatpush3.bf16.msra.mxu1 %v480_v15  ;;  %429 = vmatprep.subr.bf16.mxu0 %v481_v16 }
  0x12   :  { %451 = vmatprep.subr.bf16.mxu1 %v482_v17  ;;  %366 = vmatprep.mubr.bf16.mxu1 %v388_v37 }
  0x14   :  { %430 = vmatpush3.bf16.msra.mxu0 %v483_v18 }
  0x15   :  { %452 = vmatpush3.bf16.msra.mxu1 %v484_v19  ;;  %431 = vmatprep.subr.bf16.mxu0 %v485_v20 }
  0x16   :  { %453 = vmatprep.subr.bf16.mxu1 %v486_v21 }
  0x18   :  { %432 = vmatpush3.bf16.msra.mxu0 %v487_v22 }
  0x19   :  { %454 = vmatpush3.bf16.msra.mxu1 %v488_v23  ;;  %433 = vmatprep.subr.bf16.mxu0 %v489_v24 }
  0x1a   :  { %455 = vmatprep.subr.bf16.mxu1 %v490_v25 }
  0x1c   :  { %434 = vmatpush3.bf16.msra.mxu0 %v491_v26 }
  0x1d   :  { %456 = vmatpush3.bf16.msra.mxu1 %v492_v27  ;;  %435 = vmatprep.subr.bf16.mxu0 %v493_v28 }
  0x1e   :  { %457 = vmatprep.subr.bf16.mxu1 %v494_v29 }
  0x20   :  { %436 = vmatpush3.bf16.msra.mxu0 %v495_v30 }
  0x21   :  { %458 = vmatpush3.bf16.msra.mxu1 %v496_v31 }
  0x23   :  { %327 = vmatmul.mubr.bf16.vlgmr.msra.gmra.mxu0 %v385_v34 }
  0x24   :  { %367 = vmatmul.mubr.bf16.vlgmr.msra.gmra.mxu1 %v387_v36 }
  0xe3   :  { %v437_v38 = vpop.f32.mrf.mxu0 }
  0xe4   :  { %v459_v39 = vpop.f32.mrf.mxu1 }
  0xe5   :  { %v438_v41 = vpop.f32.mrf.mxu0 }
  0xe6   :  { %v460_v42 = vpop.f32.mrf.mxu1  ;;  %v439_v43 = vadd.f32 %v438_v41, %v437_v38 }
  0xe7   :  { %v440_v44 = vpop.f32.mrf.mxu0  ;;  %v461_v47 = vadd.f32 %v460_v42, %v459_v39 }
  0xe8   :  { %v462_v45 = vpop.f32.mrf.mxu1  ;;  %v329_v46 = vadd.f32 %v439_v43, %v384_v40 }
  0xe9   :  { %v441_v48 = vpop.f32.mrf.mxu0 }
  0xea   :  { %v463_v49 = vpop.f32.mrf.mxu1  ;;  %v369_v50 = vadd.f32 %v461_v47, %v329_v46 }
  0xec   :  { %v374_v51 = vsub.f32 0.0, %v369_v50 }
  0xee   :  { %v375_v52 = vmul.f32 1.442695, %v374_v51 }
  0xf0   :  { %501 = vpow2.f32 %v375_v52 }
  0xfd   :  { %v502_v53 = vpop.eup %501 }
  0xfe   :  { %v377_v54 = vadd.f32 1.0, %v502_v53 }
 0x100   :  { %503 = vrcp.f32 %v377_v54 }
 0x10d   :  { %v504_v55 = vpop.eup %503 }
 0x10e   :  { %379 = vst [vmem:[%s636_s3] sm:$0xff] %v504_v55 }

// kernel: discriminator_forward.10
= control target key start
LH: loop header
LB: loop body
LE: loop exit
PB: predicated region body
PF: predicated region fallthrough
CT: control target
= control target key end

     0   :  { %s4062_s1 = inlined_call_operand.vmem [shape: bf16[1152,512], index: 1, kind: input, shape index: {}]   ;;  %s4063_s0 = inlined_call_operand.vmem [shape: bf16[8,1152], index: 0, kind: input, shape index: {}]   ;;  %s4064_s2 = inlined_call_operand.vmem [shape: f32[1,512], index: 2, kind: input, shape index: {}]   ;;  %s4065_s3 = inlined_call_operand.vmem [shape: f32[1,512], index: 3, kind: input, shape index: {}]   ;;  %s4066_s4 = inlined_call_operand.vmem [shape: f32[1,512], index: 4, kind: input, shape index: {}]   ;;  %s4067_s5 = inlined_call_operand.vmem [shape: bf16[8,512], index: 5, kind: output, shape index: {}]  }
   0x1   :  { %v2606_v0 = vld [vmem:[%s4062_s1 + $0xe4] ss:$16 sps:$4 sm:$0xff]   ;;  %v2610_v2 = vld [vmem:[%s4062_s1 + $0xe0] ss:$16 sps:$4 sm:$0xff]   ;;  %v22_v48 = vld [vmem:[%s4063_s0 + $0x8] sm:$0xff] }
   0x2   :  { %v2608_v1 = vld [vmem:[%s4062_s1 + $0x2e4] ss:$16 sps:$4 sm:$0xff]   ;;  %1808 = vmatprep.subr.bf16.mxu0 %v2606_v0  ;;  %v2611_v3 = vld [vmem:[%s4062_s1 + $0x2e0] ss:$16 sps:$4 sm:$0xff]   ;;  %v3230_v51 = vcombine.high %v22_v48, %v22_v48 }
   0x3   :  { %1849 = vmatprep.subr.bf16.mxu1 %v2608_v1  ;;  %v2612_v4 = vld [vmem:[%s4062_s1 + $0xc4] ss:$16 sps:$4 sm:$0xff]   ;;  %1809 = vmatpush1.bf16.msra.mxu0 %v2610_v2  ;;  %v2616_v6 = vld [vmem:[%s4062_s1 + $0xc0] ss:$16 sps:$4 sm:$0xff]  }
   0x4   :  { %1850 = vmatpush1.bf16.msra.mxu1 %v2611_v3  ;;  %v2614_v5 = vld [vmem:[%s4062_s1 + $0x2c4] ss:$16 sps:$4 sm:$0xff]   ;;  %1810 = vmatprep.subr.bf16.mxu0 %v2612_v4  ;;  %v2617_v7 = vld [vmem:[%s4062_s1 + $0x2c0] ss:$16 sps:$4 sm:$0xff]  }
   0x5   :  { %1851 = vmatprep.subr.bf16.mxu1 %v2614_v5  ;;  %v2618_v8 = vld [vmem:[%s4062_s1 + $0xa4] ss:$16 sps:$4 sm:$0xff]   ;;  %v2622_v10 = vld [vmem:[%s4062_s1 + $0xa0] ss:$16 sps:$4 sm:$0xff]   ;;  %1881 = vmatprep.mubr.bf16.mxu1 %v3230_v51 }
   0x6   :  { %v2620_v9 = vld [vmem:[%s4062_s1 + $0x2a4] ss:$16 sps:$4 sm:$0xff]   ;;  %v2623_v11 = vld [vmem:[%s4062_s1 + $0x2a0] ss:$16 sps:$4 sm:$0xff]  }
   0x7   :  { %1811 = vmatpush1.bf16.msra.mxu0 %v2616_v6  ;;  %v2624_v12 = vld [vmem:[%s4062_s1 + $0x84] ss:$16 sps:$4 sm:$0xff]   ;;  %v2628_v14 = vld [vmem:[%s4062_s1 + $0x80] ss:$16 sps:$4 sm:$0xff]  }
   0x8   :  { %1852 = vmatpush1.bf16.msra.mxu1 %v2617_v7  ;;  %1812 = vmatprep.subr.bf16.mxu0 %v2618_v8  ;;  %v2626_v13 = vld [vmem:[%s4062_s1 + $0x284] ss:$16 sps:$4 sm:$0xff]   ;;  %v2629_v15 = vld [vmem:[%s4062_s1 + $0x280] ss:$16 sps:$4 sm:$0xff]   ;;  %v3290_v7 = vcombine.low %v22_v48, %v22_v48 }
   0x9   :  { %1853 = vmatprep.subr.bf16.mxu1 %v2620_v9  ;;  %v2630_v16 = vld [vmem:[%s4062_s1 + $0x64] ss:$16 sps:$4 sm:$0xff]   ;;  %v2634_v18 = vld [vmem:[%s4062_s1 + $0x60] ss:$16 sps:$4 sm:$0xff]  }
   0xa   :  { %v2632_v17 = vld [vmem:[%s4062_s1 + $0x264] ss:$16 sps:$4 sm:$0xff]   ;;  %v2635_v19 = vld [vmem:[%s4062_s1 + $0x260] ss:$16 sps:$4 sm:$0xff]  }
   0xb   :  { %1813 = vmatpush1.bf16.msra.mxu0 %v2622_v10  ;;  %v2636_v20 = vld [vmem:[%s4062_s1 + $0x44] ss:$16 sps:$4 sm:$0xff]   ;;  %v2640_v22 = vld [vmem:[%s4062_s1 + $0x40] ss:$16 sps:$4 sm:$0xff]  }
   0xc   :  { %1854 = vmatpush1.bf16.msra.mxu1 %v2623_v11  ;;  %1814 = vmatprep.subr.bf16.mxu0 %v2624_v12  ;;  %v2638_v21 = vld [vmem:[%s4062_s1 + $0x244] ss:$16 sps:$4 sm:$0xff]   ;;  %v2641_v23 = vld [vmem:[%s4062_s1 + $0x240] ss:$16 sps:$4 sm:$0xff]  }
   0xd   :  { %1855 = vmatprep.subr.bf16.mxu1 %v2626_v13  ;;  %v2642_v24 = vld [vmem:[%s4062_s1 + $0x24] ss:$16 sps:$4 sm:$0xff]   ;;  %v2646_v26 = vld [vmem:[%s4062_s1 + $0x20] ss:$16 sps:$4 sm:$0xff]  }
   0xe   :  { %v2644_v25 = vld [vmem:[%s4062_s1 + $0x224] ss:$16 sps:$4 sm:$0xff]   ;;  %v2647_v27 = vld [vmem:[%s4062_s1 + $0x220] ss:$16 sps:$4 sm:$0xff]  }
   0xf   :  { %1815 = vmatpush1.bf16.msra.mxu0 %v2628_v14  ;;  %v2648_v28 = vld [vmem:[%s4062_s1 + $0x4] ss:$16 sps:$4 sm:$0xff]   ;;  %v2652_v30 = vld [vmem:[%s4062_s1] ss:$16 sps:$4 sm:$0xff]  }
  0x10   :  { %1856 = vmatpush1.bf16.msra.mxu1 %v2629_v15  ;;  %1816 = vmatprep.subr.bf16.mxu0 %v2630_v16  ;;  %v2650_v29 = vld [vmem:[%s4062_s1 + $0x204] ss:$16 sps:$4 sm:$0xff]   ;;  %v2653_v31 = vld [vmem:[%s4062_s1 + $0x200] ss:$16 sps:$4 sm:$0xff]  }
  0x11   :  { %1857 = vmatprep.subr.bf16.mxu1 %v2632_v17  ;;  %v2654_v32 = vld [vmem:[%s4062_s1 + $0x1e4] ss:$16 sps:$4 sm:$0xff]   ;;  %v2658_v34 = vld [vmem:[%s4062_s1 + $0x1e0] ss:$16 sps:$4 sm:$0xff]  }
  0x12   :  { %v2656_v33 = vld [vmem:[%s4062_s1 + $0x3e4] ss:$16 sps:$4 sm:$0xff]   ;;  %v2659_v35 = vld [vmem:[%s4062_s1 + $0x3e0] ss:$16 sps:$4 sm:$0xff]  }
  0x13   :  { %1817 = vmatpush1.bf16.msra.mxu0 %v2634_v18  ;;  %v2660_v36 = vld [vmem:[%s4062_s1 + $0x1c4] ss:$16 sps:$4 sm:$0xff]   ;;  %v2664_v38 = vld [vmem:[%s4062_s1 + $0x1c0] ss:$16 sps:$4 sm:$0xff]  }
  0x14   :  { %1858 = vmatpush1.bf16.msra.mxu1 %v2635_v19  ;;  %1818 = vmatprep.subr.bf16.mxu0 %v2636_v20  ;;  %v2662_v37 = vld [vmem:[%s4062_s1 + $0x3c4] ss:$16 sps:$4 sm:$0xff]   ;;  %v2665_v39 = vld [vmem:[%s4062_s1 + $0x3c0] ss:$16 sps:$4 sm:$0xff]  }
  0x15   :  { %1859 = vmatprep.subr.bf16.mxu1 %v2638_v21  ;;  %v2666_v40 = vld [vmem:[%s4062_s1 + $0x1a4] ss:$16 sps:$4 sm:$0xff]   ;;  %v2670_v42 = vld [vmem:[%s4062_s1 + $0x1a0] ss:$16 sps:$4 sm:$0xff]  }
  0x16   :  { %v2668_v41 = vld [vmem:[%s4062_s1 + $0x3a4] ss:$16 sps:$4 sm:$0xff]   ;;  %v2671_v43 = vld [vmem:[%s4062_s1 + $0x3a0] ss:$16 sps:$4 sm:$0xff]  }
  0x17   :  { %1819 = vmatpush1.bf16.msra.mxu0 %v2640_v22  ;;  %v2672_v44 = vld [vmem:[%s4062_s1 + $0x184] ss:$16 sps:$4 sm:$0xff]   ;;  %v2676_v49 = vld [vmem:[%s4062_s1 + $0x180] ss:$16 sps:$4 sm:$0xff]  }
  0x18   :  { %1860 = vmatpush1.bf16.msra.mxu1 %v2641_v23  ;;  %1820 = vmatprep.subr.bf16.mxu0 %v2642_v24  ;;  %v2674_v45 = vld [vmem:[%s4062_s1 + $0x384] ss:$16 sps:$4 sm:$0xff]   ;;  %v2677_v50 = vld [vmem:[%s4062_s1 + $0x380] ss:$16 sps:$4 sm:$0xff]  }
  0x19   :  { %1861 = vmatprep.subr.bf16.mxu1 %v2644_v25  ;;  %v21_v46 = vld [vmem:[%s4063_s0] sm:$0xff] }
  0x1a   :  { %v3219_v47 = vcombine.high %v21_v46, %v21_v46  ;;  %v2678_v52 = vld [vmem:[%s4062_s1 + $0x164] ss:$16 sps:$4 sm:$0xff]   ;;  %v2682_v54 = vld [vmem:[%s4062_s1 + $0x160] ss:$16 sps:$4 sm:$0xff]   ;;  %v3288_v6 = vcombine.low %v21_v46, %v21_v46 }
  0x1b   :  { %1821 = vmatpush1.bf16.msra.mxu0 %v2646_v26  ;;  %v2680_v53 = vld [vmem:[%s4062_s1 + $0x364] ss:$16 sps:$4 sm:$0xff]   ;;  %v2683_v55 = vld [vmem:[%s4062_s1 + $0x360] ss:$16 sps:$4 sm:$0xff]  }
  0x1c   :  { %1862 = vmatpush1.bf16.msra.mxu1 %v2647_v27  ;;  %1822 = vmatprep.subr.bf16.mxu0 %v2648_v28  ;;  %v2684_v56 = vld [vmem:[%s4062_s1 + $0x144] ss:$16 sps:$4 sm:$0xff]   ;;  %v2688_v58 = vld [vmem:[%s4062_s1 + $0x140] ss:$16 sps:$4 sm:$0xff]  }
  0x1d   :  { %1863 = vmatprep.subr.bf16.mxu1 %v2650_v29  ;;  %1840 = vmatprep.mubr.bf16.mxu0 %v3219_v47  ;;  %v2686_v57 = vld [vmem:[%s4062_s1 + $0x344] ss:$16 sps:$4 sm:$0xff]   ;;  %v2689_v59 = vld [vmem:[%s4062_s1 + $0x340] ss:$16 sps:$4 sm:$0xff]  }
  0x1e   :  { %v2690_v60 = vld [vmem:[%s4062_s1 + $0x124] ss:$16 sps:$4 sm:$0xff]   ;;  %v2694_v62 = vld [vmem:[%s4062_s1 + $0x120] ss:$16 sps:$4 sm:$0xff]  }
  0x1f   :  { %1823 = vmatpush1.bf16.msra.mxu0 %v2652_v30  ;;  %v2692_v61 = vld [vmem:[%s4062_s1 + $0x324] ss:$16 sps:$4 sm:$0xff]   ;;  %v2695_v63 = vld [vmem:[%s4062_s1 + $0x320] ss:$16 sps:$4 sm:$0xff]  }
  0x20   :  { %1864 = vmatpush1.bf16.msra.mxu1 %v2653_v31  ;;  %1824 = vmatprep.subr.bf16.mxu0 %v2654_v32  ;;  %v2696_v0 = vld [vmem:[%s4062_s1 + $0x104] ss:$16 sps:$4 sm:$0xff]   ;;  %v2700_v2 = vld [vmem:[%s4062_s1 + $0x100] ss:$16 sps:$4 sm:$0xff]  }
  0x21   :  { %1865 = vmatprep.subr.bf16.mxu1 %v2656_v33  ;;  %v2698_v1 = vld [vmem:[%s4062_s1 + $0x304] ss:$16 sps:$4 sm:$0xff]   ;;  %v2701_v3 = vld [vmem:[%s4062_s1 + $0x300] ss:$16 sps:$4 sm:$0xff]   ;;  %v3374_v33 = vld [vmem:[%s4063_s0 + $0x18] sm:$0xff] }
  0x22   :  { %v2708_v4 = vld [vmem:[%s4062_s1 + $0x4e4] ss:$16 sps:$4 sm:$0xff]   ;;  %v2706_v8 = vld [vmem:[%s4062_s1 + $0x4e0] ss:$16 sps:$4 sm:$0xff]  }
  0x23   :  { %1825 = vmatpush2.bf16.msra.mxu0 %v2658_v34  ;;  %v2711_v5 = vld [vmem:[%s4062_s1 + $0x6e4] ss:$16 sps:$4 sm:$0xff]   ;;  %v2709_v9 = vld [vmem:[%s4062_s1 + $0x6e0] ss:$16 sps:$4 sm:$0xff]  }
  0x24   :  { %1866 = vmatpush2.bf16.msra.mxu1 %v2659_v35  ;;  %1826 = vmatprep.subr.bf16.mxu0 %v2660_v36  ;;  %v2714_v10 = vld [vmem:[%s4062_s1 + $0x4c4] ss:$16 sps:$4 sm:$0xff]   ;;  %v2712_v12 = vld [vmem:[%s4062_s1 + $0x4c0] ss:$16 sps:$4 sm:$0xff]  }
  0x25   :  { %1867 = vmatprep.subr.bf16.mxu1 %v2662_v37  ;;  %v2717_v11 = vld [vmem:[%s4062_s1 + $0x6c4] ss:$16 sps:$4 sm:$0xff]   ;;  %v2715_v13 = vld [vmem:[%s4062_s1 + $0x6c0] ss:$16 sps:$4 sm:$0xff]   ;;  %v3388_v37 = vcombine.high %v3374_v33, %v3374_v33 }
  0x26   :  { %v2720_v14 = vld [vmem:[%s4062_s1 + $0x4a4] ss:$16 sps:$4 sm:$0xff]   ;;  %v2718_v16 = vld [vmem:[%s4062_s1 + $0x4a0] ss:$16 sps:$4 sm:$0xff]  }
  0x27   :  { %1827 = vmatpush2.bf16.msra.mxu0 %v2664_v38  ;;  %v2723_v15 = vld [vmem:[%s4062_s1 + $0x6a4] ss:$16 sps:$4 sm:$0xff]   ;;  %v2721_v17 = vld [vmem:[%s4062_s1 + $0x6a0] ss:$16 sps:$4 sm:$0xff]  }
  0x28   :  { %1868 = vmatpush2.bf16.msra.mxu1 %v2665_v39  ;;  %1828 = vmatprep.subr.bf16.mxu0 %v2666_v40  ;;  %v2726_v18 = vld [vmem:[%s4062_s1 + $0x484] ss:$16 sps:$4 sm:$0xff]   ;;  %v2724_v20 = vld [vmem:[%s4062_s1 + $0x480] ss:$16 sps:$4 sm:$0xff]  }
  0x29   :  { %1869 = vmatprep.subr.bf16.mxu1 %v2668_v41  ;;  %v2729_v19 = vld [vmem:[%s4062_s1 + $0x684] ss:$16 sps:$4 sm:$0xff]   ;;  %v2727_v21 = vld [vmem:[%s4062_s1 + $0x680] ss:$16 sps:$4 sm:$0xff]  }
  0x2a   :  { %v2732_v22 = vld [vmem:[%s4062_s1 + $0x464] ss:$16 sps:$4 sm:$0xff]   ;;  %v2730_v24 = vld [vmem:[%s4062_s1 + $0x460] ss:$16 sps:$4 sm:$0xff]  }
  0x2b   :  { %1829 = vmatpush2.bf16.msra.mxu0 %v2670_v42  ;;  %v2735_v23 = vld [vmem:[%s4062_s1 + $0x664] ss:$16 sps:$4 sm:$0xff]   ;;  %v2733_v25 = vld [vmem:[%s4062_s1 + $0x660] ss:$16 sps:$4 sm:$0xff]  }
  0x2c   :  { %1870 = vmatpush2.bf16.msra.mxu1 %v2671_v43  ;;  %1830 = vmatprep.subr.bf16.mxu0 %v2672_v44  ;;  %v2738_v26 = vld [vmem:[%s4062_s1 + $0x444] ss:$16 sps:$4 sm:$0xff]   ;;  %v2736_v28 = vld [vmem:[%s4062_s1 + $0x440] ss:$16 sps:$4 sm:$0xff]  }
  0x2d   :  { %1871 = vmatprep.subr.bf16.mxu1 %v2674_v45  ;;  %v2741_v27 = vld [vmem:[%s4062_s1 + $0x644] ss:$16 sps:$4 sm:$0xff]   ;;  %v2739_v29 = vld [vmem:[%s4062_s1 + $0x640] ss:$16 sps:$4 sm:$0xff]  }
  0x2e   :  { %v2744_v30 = vld [vmem:[%s4062_s1 + $0x424] ss:$16 sps:$4 sm:$0xff]   ;;  %v2742_v34 = vld [vmem:[%s4062_s1 + $0x420] ss:$16 sps:$4 sm:$0xff]  }
  0x2f   :  { %1831 = vmatpush2.bf16.msra.mxu0 %v2676_v49  ;;  %v2747_v31 = vld [vmem:[%s4062_s1 + $0x624] ss:$16 sps:$4 sm:$0xff]   ;;  %v2745_v35 = vld [vmem:[%s4062_s1 + $0x620] ss:$16 sps:$4 sm:$0xff]  }
  0x30   :  { %1872 = vmatpush2.bf16.msra.mxu1 %v2677_v50  ;;  %1832 = vmatprep.subr.bf16.mxu0 %v2678_v52  ;;  %v3369_v32 = vld [vmem:[%s4063_s0 + $0x10] sm:$0xff] }
  0x31   :  { %1873 = vmatprep.subr.bf16.mxu1 %v2680_v53  ;;  %v3384_v36 = vcombine.high %v3369_v32, %v3369_v32  ;;  %v2750_v38 = vld [vmem:[%s4062_s1 + $0x404] ss:$16 sps:$4 sm:$0xff]   ;;  %v2748_v40 = vld [vmem:[%s4062_s1 + $0x400] ss:$16 sps:$4 sm:$0xff]  }
  0x32   :  { %v2753_v39 = vld [vmem:[%s4062_s1 + $0x604] ss:$16 sps:$4 sm:$0xff]   ;;  %v2751_v41 = vld [vmem:[%s4062_s1 + $0x600] ss:$16 sps:$4 sm:$0xff]  }
  0x33   :  { %1833 = vmatpush2.bf16.msra.mxu0 %v2682_v54  ;;  %v2756_v42 = vld [vmem:[%s4062_s1 + $0x5e4] ss:$16 sps:$4 sm:$0xff]   ;;  %v2754_v44 = vld [vmem:[%s4062_s1 + $0x5e0] ss:$16 sps:$4 sm:$0xff]  }
  0x34   :  { %1874 = vmatpush2.bf16.msra.mxu1 %v2683_v55  ;;  %1834 = vmatprep.subr.bf16.mxu0 %v2684_v56  ;;  %v2759_v43 = vld [vmem:[%s4062_s1 + $0x7e4] ss:$16 sps:$4 sm:$0xff]   ;;  %v2757_v45 = vld [vmem:[%s4062_s1 + $0x7e0] ss:$16 sps:$4 sm:$0xff]  }
  0x35   :  { %1875 = vmatprep.subr.bf16.mxu1 %v2686_v57  ;;  %v2762_v46 = vld [vmem:[%s4062_s1 + $0x5c4] ss:$16 sps:$4 sm:$0xff]   ;;  %v2760_v49 = vld [vmem:[%s4062_s1 + $0x5c0] ss:$16 sps:$4 sm:$0xff]  }
  0x36   :  { %v2765_v48 = vld [vmem:[%s4062_s1 + $0x7c4] ss:$16 sps:$4 sm:$0xff]   ;;  %v2763_v50 = vld [vmem:[%s4062_s1 + $0x7c0] ss:$16 sps:$4 sm:$0xff]  }
  0x37   :  { %1835 = vmatpush2.bf16.msra.mxu0 %v2688_v58  ;;  %v2768_v52 = vld [vmem:[%s4062_s1 + $0x5a4] ss:$16 sps:$4 sm:$0xff]   ;;  %v2766_v54 = vld [vmem:[%s4062_s1 + $0x5a0] ss:$16 sps:$4 sm:$0xff]  }
  0x38   :  { %1876 = vmatpush2.bf16.msra.mxu1 %v2689_v59  ;;  %1836 = vmatprep.subr.bf16.mxu0 %v2690_v60  ;;  %v2771_v53 = vld [vmem:[%s4062_s1 + $0x7a4] ss:$16 sps:$4 sm:$0xff]   ;;  %v2769_v55 = vld [vmem:[%s4062_s1 + $0x7a0] ss:$16 sps:$4 sm:$0xff]  }
  0x39   :  { %1877 = vmatprep.subr.bf16.mxu1 %v2692_v61  ;;  %v2774_v56 = vld [vmem:[%s4062_s1 + $0x584] ss:$16 sps:$4 sm:$0xff]   ;;  %v2772_v58 = vld [vmem:[%s4062_s1 + $0x580] ss:$16 sps:$4 sm:$0xff]  }
  0x3a   :  { %v2777_v57 = vld [vmem:[%s4062_s1 + $0x784] ss:$16 sps:$4 sm:$0xff]   ;;  %v2775_v59 = vld [vmem:[%s4062_s1 + $0x780] ss:$16 sps:$4 sm:$0xff]  }
  0x3b   :  { %1837 = vmatpush2.bf16.msra.mxu0 %v2694_v62  ;;  %v2780_v60 = vld [vmem:[%s4062_s1 + $0x564] ss:$16 sps:$4 sm:$0xff]   ;;  %v2778_v62 = vld [vmem:[%s4062_s1 + $0x560] ss:$16 sps:$4 sm:$0xff]  }
  0x3c   :  { %1878 = vmatpush2.bf16.msra.mxu1 %v2695_v63  ;;  %1838 = vmatprep.subr.bf16.mxu0 %v2696_v0  ;;  %v2783_v61 = vld [vmem:[%s4062_s1 + $0x764] ss:$16 sps:$4 sm:$0xff]   ;;  %v2781_v63 = vld [vmem:[%s4062_s1 + $0x760] ss:$16 sps:$4 sm:$0xff]  }
  0x3d   :  { %1879 = vmatprep.subr.bf16.mxu1 %v2698_v1  ;;  %v2786_v0 = vld [vmem:[%s4062_s1 + $0x544] ss:$16 sps:$4 sm:$0xff]  }
  0x3e   :  { %v2789_v1 = vld [vmem:[%s4062_s1 + $0x744] ss:$16 sps:$4 sm:$0xff]  }
  0x3f   :  { %1839 = vmatpush2.bf16.msra.mxu0 %v2700_v2  ;;  %v2784_v2 = vld [vmem:[%s4062_s1 + $0x540] ss:$16 sps:$4 sm:$0xff]  }
  0x40   :  { %1880 = vmatpush2.bf16.msra.mxu1 %v2701_v3  ;;  %1890 = vmatprep.subr.bf16.mxu0 %v2708_v4  ;;  %v2787_v3 = vld [vmem:[%s4062_s1 + $0x740] ss:$16 sps:$4 sm:$0xff]   ;;  %v2792_v4 = vld [vmem:[%s4062_s1 + $0x524] ss:$16 sps:$4 sm:$0xff]  }
  0x41   :  { %1931 = vmatprep.subr.bf16.mxu1 %v2711_v5  ;;  %v2795_v5 = vld [vmem:[%s4062_s1 + $0x724] ss:$16 sps:$4 sm:$0xff]  }
  0x42   :  { %1841 = vmatmul.mubr.bf16.vlgmr.msra.gmra.mxu0 %v3288_v6 }
  0x43   :  { %1882 = vmatmul.mubr.bf16.vlgmr.msra.gmra.mxu1 %v3290_v7  ;;  %1891 = vmatpush1.bf16.msra.mxu0 %v2706_v8  ;;  %v2790_v8 = vld [vmem:[%s4062_s1 + $0x520] ss:$16 sps:$4 sm:$0xff]  }
  0x44   :  { %1932 = vmatpush1.bf16.msra.mxu1 %v2709_v9  ;;  %1892 = vmatprep.subr.bf16.mxu0 %v2714_v10  ;;  %v2793_v9 = vld [vmem:[%s4062_s1 + $0x720] ss:$16 sps:$4 sm:$0xff]   ;;  %v2798_v10 = vld [vmem:[%s4062_s1 + $0x504] ss:$16 sps:$4 sm:$0xff]  }
  0x45   :  { %1933 = vmatprep.subr.bf16.mxu1 %v2717_v11  ;;  %1922 = vmatprep.mubr.bf16.mxu0 %v3384_v36  ;;  %v2801_v11 = vld [vmem:[%s4062_s1 + $0x704] ss:$16 sps:$4 sm:$0xff]  }
  0x46   :  { %1963 = vmatprep.mubr.bf16.mxu1 %v3388_v37 }
  0x47   :  { %1893 = vmatpush1.bf16.msra.mxu0 %v2712_v12  ;;  %v2796_v12 = vld [vmem:[%s4062_s1 + $0x500] ss:$16 sps:$4 sm:$0xff]  }
  0x48   :  { %1934 = vmatpush1.bf16.msra.mxu1 %v2715_v13  ;;  %1894 = vmatprep.subr.bf16.mxu0 %v2720_v14  ;;  %v2799_v13 = vld [vmem:[%s4062_s1 + $0x700] ss:$16 sps:$4 sm:$0xff]   ;;  %v2808_v14 = vld [vmem:[%s4062_s1 + $0x8e4] ss:$16 sps:$4 sm:$0xff]  }
  0x49   :  { %1935 = vmatprep.subr.bf16.mxu1 %v2723_v15  ;;  %v2811_v15 = vld [vmem:[%s4062_s1 + $0xec] ss:$16 sps:$4 sm:$0xff]  }
  0x4b   :  { %1895 = vmatpush1.bf16.msra.mxu0 %v2718_v16  ;;  %v3508_v16 = vcombine.low %v3369_v32, %v3369_v32  ;;  %v2832_v32 = vld [vmem:[%s4062_s1 + $0x864] ss:$16 sps:$4 sm:$0xff]  }
  0x4c   :  { %1936 = vmatpush1.bf16.msra.mxu1 %v2721_v17  ;;  %1896 = vmatprep.subr.bf16.mxu0 %v2726_v18  ;;  %v3512_v17 = vcombine.low %v3374_v33, %v3374_v33  ;;  %v2806_v18 = vld [vmem:[%s4062_s1 + $0x8e0] ss:$16 sps:$4 sm:$0xff]   ;;  %v2835_v33 = vld [vmem:[%s4062_s1 + $0x6c] ss:$16 sps:$4 sm:$0xff]  }
  0x4d   :  { %1937 = vmatprep.subr.bf16.mxu1 %v2729_v19  ;;  %v2809_v19 = vld [vmem:[%s4062_s1 + $0xe8] ss:$16 sps:$4 sm:$0xff]  }
  0x4f   :  { %1897 = vmatpush1.bf16.msra.mxu0 %v2724_v20  ;;  %v2814_v20 = vld [vmem:[%s4062_s1 + $0x8c4] ss:$16 sps:$4 sm:$0xff]  }
  0x50   :  { %1938 = vmatpush1.bf16.msra.mxu1 %v2727_v21  ;;  %1898 = vmatprep.subr.bf16.mxu0 %v2732_v22  ;;  %v2817_v21 = vld [vmem:[%s4062_s1 + $0xcc] ss:$16 sps:$4 sm:$0xff]   ;;  %v2812_v22 = vld [vmem:[%s4062_s1 + $0x8c0] ss:$16 sps:$4 sm:$0xff]  }
  0x51   :  { %1939 = vmatprep.subr.bf16.mxu1 %v2735_v23  ;;  %v2815_v23 = vld [vmem:[%s4062_s1 + $0xc8] ss:$16 sps:$4 sm:$0xff]  }
  0x53   :  { %1899 = vmatpush1.bf16.msra.mxu0 %v2730_v24  ;;  %v2820_v24 = vld [vmem:[%s4062_s1 + $0x8a4] ss:$16 sps:$4 sm:$0xff]  }
  0x54   :  { %1940 = vmatpush1.bf16.msra.mxu1 %v2733_v25  ;;  %1900 = vmatprep.subr.bf16.mxu0 %v2738_v26  ;;  %v2823_v25 = vld [vmem:[%s4062_s1 + $0xac] ss:$16 sps:$4 sm:$0xff]   ;;  %v3047_v26 = vmov 0  }
  0x55   :  { %1941 = vmatprep.subr.bf16.mxu1 %v2741_v27  ;;  %v2818_v27 = vld [vmem:[%s4062_s1 + $0x8a0] ss:$16 sps:$4 sm:$0xff]  }
  0x57   :  { %1901 = vmatpush1.bf16.msra.mxu0 %v2736_v28  ;;  %v2821_v28 = vld [vmem:[%s4062_s1 + $0xa8] ss:$16 sps:$4 sm:$0xff]  }
  0x58   :  { %1942 = vmatpush1.bf16.msra.mxu1 %v2739_v29  ;;  %1902 = vmatprep.subr.bf16.mxu0 %v2744_v30  ;;  %v2826_v29 = vld [vmem:[%s4062_s1 + $0x884] ss:$16 sps:$4 sm:$0xff]   ;;  %v2824_v30 = vld [vmem:[%s4062_s1 + $0x880] ss:$16 sps:$4 sm:$0xff]  }
  0x59   :  { %1943 = vmatprep.subr.bf16.mxu1 %v2747_v31  ;;  %v2827_v31 = vld [vmem:[%s4062_s1 + $0x88] ss:$16 sps:$4 sm:$0xff]  }
  0x5b   :  { %1903 = vmatpush1.bf16.msra.mxu0 %v2742_v34  ;;  %v2830_v34 = vld [vmem:[%s4062_s1 + $0x860] ss:$16 sps:$4 sm:$0xff]  }
  0x5c   :  { %1944 = vmatpush1.bf16.msra.mxu1 %v2745_v35  ;;  %1904 = vmatprep.subr.bf16.mxu0 %v2750_v38  ;;  %v2833_v35 = vld [vmem:[%s4062_s1 + $0x68] ss:$16 sps:$4 sm:$0xff]   ;;  %v2838_v38 = vld [vmem:[%s4062_s1 + $0x844] ss:$16 sps:$4 sm:$0xff]  }
  0x5d   :  { %1945 = vmatprep.subr.bf16.mxu1 %v2753_v39  ;;  %v2841_v39 = vld [vmem:[%s4062_s1 + $0x4c] ss:$16 sps:$4 sm:$0xff]  }
  0x5f   :  { %1905 = vmatpush1.bf16.msra.mxu0 %v2748_v40  ;;  %v2836_v40 = vld [vmem:[%s4062_s1 + $0x840] ss:$16 sps:$4 sm:$0xff]  }
  0x60   :  { %1946 = vmatpush1.bf16.msra.mxu1 %v2751_v41  ;;  %1906 = vmatprep.subr.bf16.mxu0 %v2756_v42  ;;  %v2839_v41 = vld [vmem:[%s4062_s1 + $0x48] ss:$16 sps:$4 sm:$0xff]   ;;  %v2844_v42 = vld [vmem:[%s4062_s1 + $0x824] ss:$16 sps:$4 sm:$0xff]  }
  0x61   :  { %1947 = vmatprep.subr.bf16.mxu1 %v2759_v43  ;;  %v2847_v43 = vld [vmem:[%s4062_s1 + $0x2c] ss:$16 sps:$4 sm:$0xff]  }
  0x63   :  { %1907 = vmatpush2.bf16.msra.mxu0 %v2754_v44  ;;  %v2842_v44 = vld [vmem:[%s4062_s1 + $0x820] ss:$16 sps:$4 sm:$0xff]  }
  0x64   :  { %1948 = vmatpush2.bf16.msra.mxu1 %v2757_v45  ;;  %1908 = vmatprep.subr.bf16.mxu0 %v2762_v46  ;;  %v2845_v45 = vld [vmem:[%s4062_s1 + $0x28] ss:$16 sps:$4 sm:$0xff]   ;;  %v2850_v46 = vld [vmem:[%s4062_s1 + $0x804] ss:$16 sps:$4 sm:$0xff]  }
  0x65   :  { %1949 = vmatprep.subr.bf16.mxu1 %v2765_v48  ;;  %v2853_v48 = vld [vmem:[%s4062_s1 + $0xc] ss:$16 sps:$4 sm:$0xff]  }
  0x67   :  { %1909 = vmatpush2.bf16.msra.mxu0 %v2760_v49  ;;  %v2848_v49 = vld [vmem:[%s4062_s1 + $0x800] ss:$16 sps:$4 sm:$0xff]  }
  0x68   :  { %1950 = vmatpush2.bf16.msra.mxu1 %v2763_v50  ;;  %1910 = vmatprep.subr.bf16.mxu0 %v2768_v52  ;;  %v2851_v50 = vld [vmem:[%s4062_s1 + $0x8] ss:$16 sps:$4 sm:$0xff]   ;;  %v2857_v52 = vld [vmem:[%s4062_s1 + $0x1ec] ss:$16 sps:$4 sm:$0xff]  }
  0x69   :  { %1951 = vmatprep.subr.bf16.mxu1 %v2771_v53  ;;  %v2860_v53 = vld [vmem:[%s4062_s1 + $0x2ec] ss:$16 sps:$4 sm:$0xff]  }
  0x6b   :  { %1911 = vmatpush2.bf16.msra.mxu0 %v2766_v54  ;;  %v3617_v54 = vld [vmem:[%s4063_s0 + $0x20] ss:$0 sps:$4 sm:$0xff]  }
  0x6c   :  { %1952 = vmatpush2.bf16.msra.mxu1 %v2769_v55  ;;  %1912 = vmatprep.subr.bf16.mxu0 %v2774_v56  ;;  %v2855_v55 = vld [vmem:[%s4062_s1 + $0x1e8] ss:$16 sps:$4 sm:$0xff]  }
  0x6d   :  { %1953 = vmatprep.subr.bf16.mxu1 %v2777_v57  ;;  %v2858_v56 = vld [vmem:[%s4062_s1 + $0x2e8] ss:$16 sps:$4 sm:$0xff]   ;;  %v2863_v57 = vld [vmem:[%s4062_s1 + $0x1cc] ss:$16 sps:$4 sm:$0xff]  }
  0x6f   :  { %1913 = vmatpush2.bf16.msra.mxu0 %v2772_v58  ;;  %v2866_v58 = vld [vmem:[%s4062_s1 + $0x2cc] ss:$16 sps:$4 sm:$0xff]  }
  0x70   :  { %1954 = vmatpush2.bf16.msra.mxu1 %v2775_v59  ;;  %1914 = vmatprep.subr.bf16.mxu0 %v2780_v60  ;;  %v2861_v59 = vld [vmem:[%s4062_s1 + $0x1c8] ss:$16 sps:$4 sm:$0xff]  }
  0x71   :  { %1955 = vmatprep.subr.bf16.mxu1 %v2783_v61  ;;  %v2864_v60 = vld [vmem:[%s4062_s1 + $0x2c8] ss:$16 sps:$4 sm:$0xff]   ;;  %v2869_v61 = vld [vmem:[%s4062_s1 + $0x1ac] ss:$16 sps:$4 sm:$0xff]  }
  0x73   :  { %1915 = vmatpush2.bf16.msra.mxu0 %v2778_v62  ;;  %v2872_v62 = vld [vmem:[%s4062_s1 + $0x2ac] ss:$16 sps:$4 sm:$0xff]  }
  0x74   :  { %1956 = vmatpush2.bf16.msra.mxu1 %v2781_v63  ;;  %1916 = vmatprep.subr.bf16.mxu0 %v2786_v0  ;;  %v2867_v63 = vld [vmem:[%s4062_s1 + $0x1a8] ss:$16 sps:$4 sm:$0xff]  }
  0x75   :  { %1957 = vmatprep.subr.bf16.mxu1 %v2789_v1  ;;  %v2870_v0 = vld [vmem:[%s4062_s1 + $0x2a8] ss:$16 sps:$4 sm:$0xff]   ;;  %v2875_v1 = vld [vmem:[%s4062_s1 + $0x18c] ss:$16 sps:$4 sm:$0xff]  }
  0x77   :  { %1917 = vmatpush2.bf16.msra.mxu0 %v2784_v2  ;;  %v2873_v2 = vld [vmem:[%s4062_s1 + $0x188] ss:$16 sps:$4 sm:$0xff]  }
  0x78   :  { %1958 = vmatpush2.bf16.msra.mxu1 %v2787_v3  ;;  %1918 = vmatprep.subr.bf16.mxu0 %v2792_v4  ;;  %v2876_v3 = vld [vmem:[%s4062_s1 + $0x288] ss:$16 sps:$4 sm:$0xff]   ;;  %v2881_v4 = vld [vmem:[%s4062_s1 + $0x16c] ss:$16 sps:$4 sm:$0xff]  }
  0x79   :  { %1959 = vmatprep.subr.bf16.mxu1 %v2795_v5  ;;  %v2884_v5 = vld [vmem:[%s4062_s1 + $0x26c] ss:$16 sps:$4 sm:$0xff]  }
  0x7b   :  { %1919 = vmatpush2.bf16.msra.mxu0 %v2790_v8  ;;  %v2879_v8 = vld [vmem:[%s4062_s1 + $0x168] ss:$16 sps:$4 sm:$0xff]  }
  0x7c   :  { %1960 = vmatpush2.bf16.msra.mxu1 %v2793_v9  ;;  %1920 = vmatprep.subr.bf16.mxu0 %v2798_v10  ;;  %v2882_v9 = vld [vmem:[%s4062_s1 + $0x268] ss:$16 sps:$4 sm:$0xff]   ;;  %v2887_v10 = vld [vmem:[%s4062_s1 + $0x14c] ss:$16 sps:$4 sm:$0xff]  }
  0x7d   :  { %1961 = vmatprep.subr.bf16.mxu1 %v2801_v11  ;;  %v2890_v11 = vld [vmem:[%s4062_s1 + $0x24c] ss:$16 sps:$4 sm:$0xff]  }
  0x7f   :  { %1921 = vmatpush2.bf16.msra.mxu0 %v2796_v12  ;;  %v2885_v12 = vld [vmem:[%s4062_s1 + $0x148] ss:$16 sps:$4 sm:$0xff]  }
  0x80   :  { %1962 = vmatpush2.bf16.msra.mxu1 %v2799_v13  ;;  %1972 = vmatprep.subr.bf16.mxu0 %v2808_v14  ;;  %v2888_v13 = vld [vmem:[%s4062_s1 + $0x248] ss:$16 sps:$4 sm:$0xff]   ;;  %v2893_v14 = vld [vmem:[%s4062_s1 + $0x12c] ss:$16 sps:$4 sm:$0xff]  }
  0x81   :  { %2013 = vmatprep.subr.bf16.mxu1 %v2811_v15  ;;  %v2896_v15 = vld [vmem:[%s4062_s1 + $0x22c] ss:$16 sps:$4 sm:$0xff]  }
  0x82   :  { %1923 = vmatmul.mubr.bf16.vlgmr.msra.gmra.mxu0 %v3508_v16 }
  0x83   :  { %1964 = vmatmul.mubr.bf16.vlgmr.msra.gmra.mxu1 %v3512_v17  ;;  %1973 = vmatpush1.bf16.msra.mxu0 %v2806_v18  ;;  %v2891_v18 = vld [vmem:[%s4062_s1 + $0x128] ss:$16 sps:$4 sm:$0xff]  }
  0x84   :  { %2014 = vmatpush1.bf16.msra.mxu1 %v2809_v19  ;;  %1974 = vmatprep.subr.bf16.mxu0 %v2814_v20  ;;  %v2894_v19 = vld [vmem:[%s4062_s1 + $0x228] ss:$16 sps:$4 sm:$0xff]   ;;  %v2899_v20 = vld [vmem:[%s4062_s1 + $0x10c] ss:$16 sps:$4 sm:$0xff]  }
  0x85   :  { %2015 = vmatprep.subr.bf16.mxu1 %v2817_v21  ;;  %2004 = vmatprep.mubr.bf16.mxu0 %v3047_v26  ;;  %v2902_v21 = vld [vmem:[%s4062_s1 + $0x20c] ss:$16 sps:$4 sm:$0xff]  }
  0x86   :  { %2045 = vmatprep.mubr.bf16.mxu1 %v3219_v47  ;;  %v2829_v47 = vld [vmem:[%s4062_s1 + $0x8c] ss:$16 sps:$4 sm:$0xff]  }
  0x87   :  { %1975 = vmatpush1.bf16.msra.mxu0 %v2812_v22  ;;  %v2897_v22 = vld [vmem:[%s4062_s1 + $0x108] ss:$16 sps:$4 sm:$0xff]  }
  0x88   :  { %2016 = vmatpush1.bf16.msra.mxu1 %v2815_v23  ;;  %1976 = vmatprep.subr.bf16.mxu0 %v2820_v24  ;;  %v2900_v23 = vld [vmem:[%s4062_s1 + $0x208] ss:$16 sps:$4 sm:$0xff]   ;;  %v2905_v24 = vld [vmem:[%s4062_s1 + $0x3ec] ss:$16 sps:$4 sm:$0xff]  }
  0x89   :  { %2017 = vmatprep.subr.bf16.mxu1 %v2823_v25  ;;  %v2908_v25 = vld [vmem:[%s4062_s1 + $0x4ec] ss:$16 sps:$4 sm:$0xff]  }
  0x8b   :  { %1977 = vmatpush1.bf16.msra.mxu0 %v2818_v27  ;;  %v2903_v27 = vld [vmem:[%s4062_s1 + $0x3e8] ss:$16 sps:$4 sm:$0xff]  }
  0x8c   :  { %2018 = vmatpush1.bf16.msra.mxu1 %v2821_v28  ;;  %1978 = vmatprep.subr.bf16.mxu0 %v2826_v29  ;;  %v2906_v28 = vld [vmem:[%s4062_s1 + $0x4e8] ss:$16 sps:$4 sm:$0xff]   ;;  %v2911_v29 = vld [vmem:[%s4062_s1 + $0x3cc] ss:$16 sps:$4 sm:$0xff]  }
  0x8d   :  { %2019 = vmatprep.subr.bf16.mxu1 %v2829_v47  ;;  %v2914_v47 = vld [vmem:[%s4062_s1 + $0x4cc] ss:$16 sps:$4 sm:$0xff]  }
  0x8f   :  { %1979 = vmatpush1.bf16.msra.mxu0 %v2824_v30  ;;  %v2909_v30 = vld [vmem:[%s4062_s1 + $0x3c8] ss:$16 sps:$4 sm:$0xff]  }
  0x90   :  { %2020 = vmatpush1.bf16.msra.mxu1 %v2827_v31  ;;  %1980 = vmatprep.subr.bf16.mxu0 %v2832_v32  ;;  %v2912_v31 = vld [vmem:[%s4062_s1 + $0x4c8] ss:$16 sps:$4 sm:$0xff]   ;;  %v2917_v32 = vld [vmem:[%s4062_s1 + $0x3ac] ss:$16 sps:$4 sm:$0xff]  }
  0x91   :  { %2021 = vmatprep.subr.bf16.mxu1 %v2835_v33  ;;  %v2915_v33 = vld [vmem:[%s4062_s1 + $0x3a8] ss:$16 sps:$4 sm:$0xff]  }
  0x93   :  { %1981 = vmatpush1.bf16.msra.mxu0 %v2830_v34  ;;  %v2918_v34 = vld [vmem:[%s4062_s1 + $0x4a8] ss:$16 sps:$4 sm:$0xff]  }
  0x94   :  { %2022 = vmatpush1.bf16.msra.mxu1 %v2833_v35  ;;  %1982 = vmatprep.subr.bf16.mxu0 %v2838_v38  ;;  %v2923_v35 = vld [vmem:[%s4062_s1 + $0x38c] ss:$16 sps:$4 sm:$0xff]   ;;  %v2921_v38 = vld [vmem:[%s4062_s1 + $0x388] ss:$16 sps:$4 sm:$0xff]  }
  0x95   :  { %2023 = vmatprep.subr.bf16.mxu1 %v2841_v39  ;;  %v2924_v39 = vld [vmem:[%s4062_s1 + $0x488] ss:$16 sps:$4 sm:$0xff]  }
  0x97   :  { %1983 = vmatpush1.bf16.msra.mxu0 %v2836_v40  ;;  %v2929_v40 = vld [vmem:[%s4062_s1 + $0x36c] ss:$16 sps:$4 sm:$0xff]  }
  0x98   :  { %2024 = vmatpush1.bf16.msra.mxu1 %v2839_v41  ;;  %1984 = vmatprep.subr.bf16.mxu0 %v2844_v42  ;;  %v2932_v41 = vld [vmem:[%s4062_s1 + $0x46c] ss:$16 sps:$4 sm:$0xff]   ;;  %v2927_v42 = vld [vmem:[%s4062_s1 + $0x368] ss:$16 sps:$4 sm:$0xff]  }
  0x99   :  { %2025 = vmatprep.subr.bf16.mxu1 %v2847_v43  ;;  %v2930_v43 = vld [vmem:[%s4062_s1 + $0x468] ss:$16 sps:$4 sm:$0xff]  }
  0x9b   :  { %1985 = vmatpush1.bf16.msra.mxu0 %v2842_v44  ;;  %v2935_v44 = vld [vmem:[%s4062_s1 + $0x34c] ss:$16 sps:$4 sm:$0xff]  }
  0x9c   :  { %2026 = vmatpush1.bf16.msra.mxu1 %v2845_v45  ;;  %1986 = vmatprep.subr.bf16.mxu0 %v2850_v46  ;;  %v2938_v45 = vld [vmem:[%s4062_s1 + $0x44c] ss:$16 sps:$4 sm:$0xff]   ;;  %v2933_v46 = vld [vmem:[%s4062_s1 + $0x348] ss:$16 sps:$4 sm:$0xff]  }
  0x9d   :  { %2027 = vmatprep.subr.bf16.mxu1 %v2853_v48  ;;  %v2936_v48 = vld [vmem:[%s4062_s1 + $0x448] ss:$16 sps:$4 sm:$0xff]  }
  0x9f   :  { %1987 = vmatpush1.bf16.msra.mxu0 %v2848_v49  ;;  %v2941_v49 = vld [vmem:[%s4062_s1 + $0x32c] ss:$16 sps:$4 sm:$0xff]  }
  0xa0   :  { %2028 = vmatpush1.bf16.msra.mxu1 %v2851_v50  ;;  %2054 = vmatprep.subr.bf16.mxu0 %v2860_v53  ;;  %v2944_v50 = vld [vmem:[%s4062_s1 + $0x42c] ss:$16 sps:$4 sm:$0xff]   ;;  %v2942_v53 = vld [vmem:[%s4062_s1 + $0x428] ss:$16 sps:$4 sm:$0xff]  }
  0xa1   :  { %2029 = vmatprep.subr.bf16.mxu1 %v2857_v52  ;;  %v2939_v52 = vld [vmem:[%s4062_s1 + $0x328] ss:$16 sps:$4 sm:$0xff]  }
  0xa2   :  { %2005 = vmatmul.mubr.bf16.vlgmr.msra.gmra.mxu0 %v3617_v54 }
  0xa3   :  { %2055 = vmatpush1.bf16.msra.mxu0 %v2858_v56  ;;  %2086 = vmatprep.mubr.bf16.mxu0 %v3230_v51  ;;  %v2878_v51 = vld [vmem:[%s4062_s1 + $0x28c] ss:$16 sps:$4 sm:$0xff]  }
  0xa4   :  { %2030 = vmatpush2.bf16.msra.mxu1 %v2855_v55  ;;  %2056 = vmatprep.subr.bf16.mxu0 %v2866_v58  ;;  %v2947_v55 = vld [vmem:[%s4062_s1 + $0x30c] ss:$16 sps:$4 sm:$0xff]   ;;  %v2948_v58 = vld [vmem:[%s4062_s1 + $0x408] ss:$16 sps:$4 sm:$0xff]  }
  0xa5   :  { %2031 = vmatprep.subr.bf16.mxu1 %v2863_v57  ;;  %v2950_v56 = vld [vmem:[%s4062_s1 + $0x40c] ss:$16 sps:$4 sm:$0xff]   ;;  %v2945_v57 = vld [vmem:[%s4062_s1 + $0x308] ss:$16 sps:$4 sm:$0xff]  }
  0xa7   :  { %2057 = vmatpush1.bf16.msra.mxu0 %v2864_v60  ;;  %v2956_v60 = vld [vmem:[%s4062_s1 + $0x6ec] ss:$16 sps:$4 sm:$0xff]  }
  0xa8   :  { %2032 = vmatpush2.bf16.msra.mxu1 %v2861_v59  ;;  %2058 = vmatprep.subr.bf16.mxu0 %v2872_v62  ;;  %v2953_v59 = vld [vmem:[%s4062_s1 + $0x5ec] ss:$16 sps:$4 sm:$0xff]   ;;  %v2954_v62 = vld [vmem:[%s4062_s1 + $0x6e8] ss:$16 sps:$4 sm:$0xff]  }
  0xa9   :  { %2033 = vmatprep.subr.bf16.mxu1 %v2869_v61  ;;  %v2951_v61 = vld [vmem:[%s4062_s1 + $0x5e8] ss:$16 sps:$4 sm:$0xff]  }
  0xab   :  { %2059 = vmatpush1.bf16.msra.mxu0 %v2870_v0  ;;  %v2962_v0 = vld [vmem:[%s4062_s1 + $0x6cc] ss:$16 sps:$4 sm:$0xff]  }
  0xac   :  { %2034 = vmatpush2.bf16.msra.mxu1 %v2867_v63  ;;  %2060 = vmatprep.subr.bf16.mxu0 %v2878_v51  ;;  %v2959_v63 = vld [vmem:[%s4062_s1 + $0x5cc] ss:$16 sps:$4 sm:$0xff]   ;;  %v2960_v51 = vld [vmem:[%s4062_s1 + $0x6c8] ss:$16 sps:$4 sm:$0xff]  }
  0xad   :  { %2035 = vmatprep.subr.bf16.mxu1 %v2875_v1  ;;  %v2957_v1 = vld [vmem:[%s4062_s1 + $0x5c8] ss:$16 sps:$4 sm:$0xff]  }
  0xaf   :  { %2061 = vmatpush1.bf16.msra.mxu0 %v2876_v3  ;;  %v2963_v3 = vld [vmem:[%s4062_s1 + $0x5a8] ss:$16 sps:$4 sm:$0xff]  }
  0xb0   :  { %2036 = vmatpush2.bf16.msra.mxu1 %v2873_v2  ;;  %2062 = vmatprep.subr.bf16.mxu0 %v2884_v5  ;;  %v2965_v2 = vld [vmem:[%s4062_s1 + $0x5ac] ss:$16 sps:$4 sm:$0xff]  }
  0xb1   :  { %2037 = vmatprep.subr.bf16.mxu1 %v2881_v4  ;;  %v2966_v4 = vld [vmem:[%s4062_s1 + $0x6a8] ss:$16 sps:$4 sm:$0xff]   ;;  %v2971_v5 = vld [vmem:[%s4062_s1 + $0x58c] ss:$16 sps:$4 sm:$0xff]  }
  0xb3   :  { %2063 = vmatpush1.bf16.msra.mxu0 %v2882_v9  ;;  %v2972_v9 = vld [vmem:[%s4062_s1 + $0x688] ss:$16 sps:$4 sm:$0xff]  }
  0xb4   :  { %2038 = vmatpush2.bf16.msra.mxu1 %v2879_v8  ;;  %2064 = vmatprep.subr.bf16.mxu0 %v2890_v11  ;;  %v2969_v8 = vld [vmem:[%s4062_s1 + $0x588] ss:$16 sps:$4 sm:$0xff]   ;;  %v2980_v11 = vld [vmem:[%s4062_s1 + $0x66c] ss:$16 sps:$4 sm:$0xff]  }
  0xb5   :  { %2039 = vmatprep.subr.bf16.mxu1 %v2887_v10  ;;  %v2977_v10 = vld [vmem:[%s4062_s1 + $0x56c] ss:$16 sps:$4 sm:$0xff]  }
  0xb7   :  { %2065 = vmatpush1.bf16.msra.mxu0 %v2888_v13  ;;  %v2978_v13 = vld [vmem:[%s4062_s1 + $0x668] ss:$16 sps:$4 sm:$0xff]  }
  0xb8   :  { %2040 = vmatpush2.bf16.msra.mxu1 %v2885_v12  ;;  %2066 = vmatprep.subr.bf16.mxu0 %v2896_v15  ;;  %v2975_v12 = vld [vmem:[%s4062_s1 + $0x568] ss:$16 sps:$4 sm:$0xff]   ;;  %v2986_v15 = vld [vmem:[%s4062_s1 + $0x64c] ss:$16 sps:$4 sm:$0xff]  }
  0xb9   :  { %2041 = vmatprep.subr.bf16.mxu1 %v2893_v14  ;;  %v2983_v14 = vld [vmem:[%s4062_s1 + $0x54c] ss:$16 sps:$4 sm:$0xff]  }
  0xbb   :  { %2067 = vmatpush1.bf16.msra.mxu0 %v2894_v19  ;;  %v2984_v19 = vld [vmem:[%s4062_s1 + $0x648] ss:$16 sps:$4 sm:$0xff]  }
  0xbc   :  { %2042 = vmatpush2.bf16.msra.mxu1 %v2891_v18  ;;  %2068 = vmatprep.subr.bf16.mxu0 %v2902_v21  ;;  %v2981_v18 = vld [vmem:[%s4062_s1 + $0x548] ss:$16 sps:$4 sm:$0xff]   ;;  %v2989_v21 = vld [vmem:[%s4062_s1 + $0x52c] ss:$16 sps:$4 sm:$0xff]  }
  0xbd   :  { %2043 = vmatprep.subr.bf16.mxu1 %v2899_v20  ;;  %v316_v20 = vlaneseq }
  0xbf   :  { %2069 = vmatpush1.bf16.msra.mxu0 %v2900_v23  ;;  %v2987_v23 = vld [vmem:[%s4062_s1 + $0x528] ss:$16 sps:$4 sm:$0xff]  }
  0xc0   :  { %2044 = vmatpush2.bf16.msra.mxu1 %v2897_v22  ;;  %2070 = vmatprep.subr.bf16.mxu0 %v2905_v24  ;;  %v2992_v22 = vld [vmem:[%s4062_s1 + $0x62c] ss:$16 sps:$4 sm:$0xff]   ;;  %v2990_v24 = vld [vmem:[%s4062_s1 + $0x628] ss:$16 sps:$4 sm:$0xff]  }
  0xc1   :  { %2095 = vmatprep.subr.bf16.mxu1 %v2908_v25  ;;  %v3895_v25 = vshrl.u32 %v316_v20, 7 }
  0xc3   :  { %2046 = vmatmul.mubr.bf16.vlgmr.msra.gmra.mxu1 %v3288_v6  ;;  %2071 = vmatpush2.bf16.msra.mxu0 %v2903_v27  ;;  %v2920_v6 = vld [vmem:[%s4062_s1 + $0x4ac] ss:$16 sps:$4 sm:$0xff]  }
  0xc4   :  { %2096 = vmatpush1.bf16.msra.mxu1 %v2906_v28  ;;  %2072 = vmatprep.subr.bf16.mxu0 %v2911_v29  ;;  %v2995_v27 = vld [vmem:[%s4062_s1 + $0x50c] ss:$16 sps:$4 sm:$0xff]   ;;  %v2993_v29 = vld [vmem:[%s4062_s1 + $0x508] ss:$16 sps:$4 sm:$0xff]  }
  0xc5   :  { %2097 = vmatprep.subr.bf16.mxu1 %v2914_v47  ;;  %2127 = vmatprep.mubr.bf16.mxu1 %v3384_v36  ;;  %v2926_v36 = vld [vmem:[%s4062_s1 + $0x48c] ss:$16 sps:$4 sm:$0xff]   ;;  %v2996_v47 = vld [vmem:[%s4062_s1 + $0x608] ss:$16 sps:$4 sm:$0xff]  }
  0xc6   :  { %v2998_v28 = vld [vmem:[%s4062_s1 + $0x60c] ss:$16 sps:$4 sm:$0xff]  }
  0xc7   :  { %2073 = vmatpush2.bf16.msra.mxu0 %v2909_v30  ;;  %v3910_v30 = vsub.s32 0, %v3895_v25 }
  0xc8   :  { %2098 = vmatpush1.bf16.msra.mxu1 %v2912_v31  ;;  %2074 = vmatprep.subr.bf16.mxu0 %v2917_v32  ;;  %v3915_v31 = vld [vmem:[%s4064_s2] sm:$0xf]  ;;  %v3001_v32 = vld [vmem:[%s4062_s1 + $0x7ec] ss:$16 sps:$4 sm:$0xff]  }
  0xc9   :  { %2099 = vmatprep.subr.bf16.mxu1 %v2920_v6  ;;  %v3004_v6 = vld [vmem:[%s4062_s1 + $0x8ec] ss:$16 sps:$4 sm:$0xff]  }
  0xcb   :  { %2075 = vmatpush2.bf16.msra.mxu0 %v2915_v33  ;;  %v3924_v33 = vsub.s32 1, %v3895_v25 }
  0xcc   :  { %2100 = vmatpush1.bf16.msra.mxu1 %v2918_v34  ;;  %2076 = vmatprep.subr.bf16.mxu0 %v2923_v35  ;;  %v319_v34 = vrot.slane %v3915_v31, %v3910_v30  ;;  %v2999_v35 = vld [vmem:[%s4062_s1 + $0x7e8] ss:$16 sps:$4 sm:$0xff]  }
  0xcd   :  { %2101 = vmatprep.subr.bf16.mxu1 %v2926_v36  ;;  %v3002_v36 = vld [vmem:[%s4062_s1 + $0x8e8] ss:$16 sps:$4 sm:$0xff]  }
  0xcf   :  { %2077 = vmatpush2.bf16.msra.mxu0 %v2921_v38  ;;  %v3007_v38 = vld [vmem:[%s4062_s1 + $0x7cc] ss:$16 sps:$4 sm:$0xff]  }
  0xd0   :  { %2102 = vmatpush1.bf16.msra.mxu1 %v2924_v39  ;;  %2078 = vmatprep.subr.bf16.mxu0 %v2929_v40  ;;  %v3010_v39 = vld [vmem:[%s4062_s1 + $0x8cc] ss:$16 sps:$4 sm:$0xff]   ;;  %v323_v40 = vrot.slane %v3915_v31, %v3924_v33 }
  0xd1   :  { %2103 = vmatprep.subr.bf16.mxu1 %v2932_v41 }
  0xd3   :  { %2079 = vmatpush2.bf16.msra.mxu0 %v2927_v42 }
  0xd4   :  { %2104 = vmatpush1.bf16.msra.mxu1 %v2930_v43  ;;  %2080 = vmatprep.subr.bf16.mxu0 %v2935_v44  ;;  %v3005_v44 = vld [vmem:[%s4062_s1 + $0x7c8] ss:$16 sps:$4 sm:$0xff]  }
  0xd5   :  { %2105 = vmatprep.subr.bf16.mxu1 %v2938_v45  ;;  %v3008_v45 = vld [vmem:[%s4062_s1 + $0x8c8] ss:$16 sps:$4 sm:$0xff]  }
  0xd7   :  { %2081 = vmatpush2.bf16.msra.mxu0 %v2933_v46 }
  0xd8   :  { %2106 = vmatpush1.bf16.msra.mxu1 %v2936_v48  ;;  %2082 = vmatprep.subr.bf16.mxu0 %v2941_v49  ;;  %v3013_v49 = vld [vmem:[%s4062_s1 + $0x7ac] ss:$16 sps:$4 sm:$0xff]  }
  0xd9   :  { %2107 = vmatprep.subr.bf16.mxu1 %v2944_v50 }
  0xdb   :  { %2083 = vmatpush2.bf16.msra.mxu0 %v2939_v52 }
  0xdc   :  { %2108 = vmatpush1.bf16.msra.mxu1 %v2942_v53  ;;  %2084 = vmatprep.subr.bf16.mxu0 %v2947_v55 }
  0xdd   :  { %2109 = vmatprep.subr.bf16.mxu1 %v2950_v56 }
  0xdf   :  { %2085 = vmatpush2.bf16.msra.mxu0 %v2945_v57  ;;  %v3011_v57 = vld [vmem:[%s4062_s1 + $0x7a8] ss:$16 sps:$4 sm:$0xff]  }
  0xe0   :  { %2110 = vmatpush1.bf16.msra.mxu1 %v2948_v58  ;;  %2136 = vmatprep.subr.bf16.mxu0 %v2956_v60  ;;  %v3014_v58 = vld [vmem:[%s4062_s1 + $0x8a8] ss:$16 sps:$4 sm:$0xff]  }
  0xe1   :  { %2111 = vmatprep.subr.bf16.mxu1 %v2953_v59 }
  0xe2   :  { %2087 = vmatmul.mubr.bf16.vlgmr.msra.gmra.mxu0 %v3290_v7  ;;  %v2968_v7 = vld [vmem:[%s4062_s1 + $0x6ac] ss:$16 sps:$4 sm:$0xff]  }
  0xe3   :  { %2137 = vmatpush1.bf16.msra.mxu0 %v2954_v62  ;;  %2168 = vmatprep.mubr.bf16.mxu0 %v3388_v37  ;;  %v2974_v37 = vld [vmem:[%s4062_s1 + $0x68c] ss:$16 sps:$4 sm:$0xff]   ;;  %v3017_v62 = vld [vmem:[%s4062_s1 + $0x788] ss:$16 sps:$4 sm:$0xff]  }
  0xe4   :  { %2112 = vmatpush2.bf16.msra.mxu1 %v2951_v61  ;;  %2138 = vmatprep.subr.bf16.mxu0 %v2962_v0  ;;  %v3022_v61 = vld [vmem:[%s4062_s1 + $0x88c] ss:$16 sps:$4 sm:$0xff]  }
  0xe5   :  { %2113 = vmatprep.subr.bf16.mxu1 %v2959_v63  ;;  %v3020_v63 = vld [vmem:[%s4062_s1 + $0x888] ss:$16 sps:$4 sm:$0xff]   ;;  %v3025_v0 = vld [vmem:[%s4062_s1 + $0x76c] ss:$16 sps:$4 sm:$0xff]  }
  0xe7   :  { %2139 = vmatpush1.bf16.msra.mxu0 %v2960_v51  ;;  %v3023_v51 = vld [vmem:[%s4062_s1 + $0x768] ss:$16 sps:$4 sm:$0xff]  }
  0xe8   :  { %2114 = vmatpush2.bf16.msra.mxu1 %v2957_v1  ;;  %2140 = vmatprep.subr.bf16.mxu0 %v2968_v7  ;;  %v3028_v1 = vld [vmem:[%s4062_s1 + $0x86c] ss:$16 sps:$4 sm:$0xff]  }
  0xe9   :  { %2115 = vmatprep.subr.bf16.mxu1 %v2965_v2  ;;  %v3026_v2 = vld [vmem:[%s4062_s1 + $0x868] ss:$16 sps:$4 sm:$0xff]   ;;  %v3031_v7 = vld [vmem:[%s4062_s1 + $0x74c] ss:$16 sps:$4 sm:$0xff]  }
  0xeb   :  { %2141 = vmatpush1.bf16.msra.mxu0 %v2966_v4  ;;  %v3029_v4 = vld [vmem:[%s4062_s1 + $0x748] ss:$16 sps:$4 sm:$0xff]  }
  0xec   :  { %2116 = vmatpush2.bf16.msra.mxu1 %v2963_v3  ;;  %2142 = vmatprep.subr.bf16.mxu0 %v2974_v37  ;;  %v3034_v3 = vld [vmem:[%s4062_s1 + $0x84c] ss:$16 sps:$4 sm:$0xff]  }
  0xed   :  { %2117 = vmatprep.subr.bf16.mxu1 %v2971_v5  ;;  %v3032_v5 = vld [vmem:[%s4062_s1 + $0x848] ss:$16 sps:$4 sm:$0xff]   ;;  %v3037_v37 = vld [vmem:[%s4062_s1 + $0x72c] ss:$16 sps:$4 sm:$0xff]  }
  0xef   :  { %2143 = vmatpush1.bf16.msra.mxu0 %v2972_v9  ;;  %v3035_v9 = vld [vmem:[%s4062_s1 + $0x728] ss:$16 sps:$4 sm:$0xff]  }
  0xf0   :  { %2118 = vmatpush2.bf16.msra.mxu1 %v2969_v8  ;;  %2144 = vmatprep.subr.bf16.mxu0 %v2980_v11  ;;  %v3040_v8 = vld [vmem:[%s4062_s1 + $0x82c] ss:$16 sps:$4 sm:$0xff]  }
  0xf1   :  { %2119 = vmatprep.subr.bf16.mxu1 %v2977_v10  ;;  %v3038_v10 = vld [vmem:[%s4062_s1 + $0x828] ss:$16 sps:$4 sm:$0xff]   ;;  %v3043_v11 = vld [vmem:[%s4062_s1 + $0x70c] ss:$16 sps:$4 sm:$0xff]  }
  0xf3   :  { %2145 = vmatpush1.bf16.msra.mxu0 %v2978_v13  ;;  %v3041_v13 = vld [vmem:[%s4062_s1 + $0x708] ss:$16 sps:$4 sm:$0xff]  }
  0xf4   :  { %2120 = vmatpush2.bf16.msra.mxu1 %v2975_v12  ;;  %2146 = vmatprep.subr.bf16.mxu0 %v2986_v15  ;;  %v3046_v12 = vld [vmem:[%s4062_s1 + $0x80c] ss:$16 sps:$4 sm:$0xff]  }
  0xf5   :  { %2121 = vmatprep.subr.bf16.mxu1 %v2983_v14  ;;  %v3044_v14 = vld [vmem:[%s4062_s1 + $0x808] ss:$16 sps:$4 sm:$0xff]  }
  0xf7   :  { %2147 = vmatpush1.bf16.msra.mxu0 %v2984_v19 }
  0xf8   :  { %2122 = vmatpush2.bf16.msra.mxu1 %v2981_v18  ;;  %2148 = vmatprep.subr.bf16.mxu0 %v2992_v22 }
  0xf9   :  { %2123 = vmatprep.subr.bf16.mxu1 %v2989_v21 }
  0xfb   :  { %2149 = vmatpush1.bf16.msra.mxu0 %v2990_v24 }
  0xfc   :  { %2124 = vmatpush2.bf16.msra.mxu1 %v2987_v23  ;;  %2150 = vmatprep.subr.bf16.mxu0 %v2998_v28 }
  0xfd   :  { %2125 = vmatprep.subr.bf16.mxu1 %v2995_v27 }
  0xff   :  { %2151 = vmatpush1.bf16.msra.mxu0 %v2996_v47  ;;  %v4033_v47 = vld [vmem:[%s4065_s3] sm:$0xf] }
 0x100   :  { %2126 = vmatpush2.bf16.msra.mxu1 %v2993_v29  ;;  %2152 = vmatprep.subr.bf16.mxu0 %v3001_v32 }
 0x101   :  { %2177 = vmatprep.subr.bf16.mxu1 %v3004_v6  ;;  %v2235_v6 = vrot.slane %v4033_v47, %v3910_v30 }
 0x102   :  { %v1842_v41 = vpop.f32.mrf.mxu0 }
 0x103   :  { %v1883_v42 = vpop.f32.mrf.mxu1  ;;  %2128 = vmatmul.mubr.bf16.vlgmr.msra.gmra.mxu1 %v3508_v16  ;;  %v1843_v43 = vadd.f32 %v1842_v41, %v319_v34  ;;  %2153 = vmatpush2.bf16.msra.mxu0 %v2999_v35  ;;  %v3016_v16 = vld [vmem:[%s4062_s1 + $0x8ac] ss:$16 sps:$4 sm:$0xff]  }
 0x104   :  { %2178 = vmatpush1.bf16.msra.mxu1 %v3002_v36  ;;  %v1844_v46 = vpop.f32.mrf.mxu0  ;;  %2154 = vmatprep.subr.bf16.mxu0 %v3007_v38  ;;  %v4040_v36 = vld [vmem:[%s4066_s4] sm:$0xf] }
 0x105   :  { %v1885_v48 = vpop.f32.mrf.mxu1  ;;  %2179 = vmatprep.subr.bf16.mxu1 %v3010_v39  ;;  %v3955_v50 = vadd.f32 %v1883_v42, %v1843_v43  ;;  %v1845_v52 = vadd.f32 %v1844_v46, %v323_v40  ;;  %2209 = vmatprep.mubr.bf16.mxu1 %v3047_v26  ;;  %v3019_v26 = vld [vmem:[%s4062_s1 + $0x78c] ss:$16 sps:$4 sm:$0xff]   ;;  %v2239_v39 = vrot.slane %v4033_v47, %v3924_v33 }
 0x106   :  { %v1846_v53 = vpop.f32.mrf.mxu0 }
 0x107   :  { %v1887_v55 = vpop.f32.mrf.mxu1  ;;  %v3958_v56 = vadd.f32 %v1885_v48, %v1845_v52  ;;  %2155 = vmatpush2.bf16.msra.mxu0 %v3005_v44  ;;  %v2261_v44 = vrot.slane %v4040_v36, %v3910_v30 }
 0x108   :  { %2180 = vmatpush1.bf16.msra.mxu1 %v3008_v45  ;;  %v1847_v59 = vpop.f32.mrf.mxu0  ;;  %2156 = vmatprep.subr.bf16.mxu0 %v3013_v49  ;;  %v2265_v45 = vrot.slane %v4040_v36, %v3924_v33 }
 0x109   :  { %v1888_v60 = vpop.f32.mrf.mxu1  ;;  %2181 = vmatprep.subr.bf16.mxu1 %v3016_v16 }
 0x10b   :  { %2157 = vmatpush2.bf16.msra.mxu0 %v3011_v57 }
 0x10c   :  { %2182 = vmatpush1.bf16.msra.mxu1 %v3014_v58  ;;  %2158 = vmatprep.subr.bf16.mxu0 %v3019_v26 }
 0x10d   :  { %2183 = vmatprep.subr.bf16.mxu1 %v3022_v61 }
 0x10f   :  { %2159 = vmatpush2.bf16.msra.mxu0 %v3017_v62 }
 0x110   :  { %2184 = vmatpush1.bf16.msra.mxu1 %v3020_v63  ;;  %2160 = vmatprep.subr.bf16.mxu0 %v3025_v0  ;;  %v326_v63 = vsub.s32 2, %v3895_v25  ;;  %v330_v0 = vsub.s32 3, %v3895_v25 }
 0x111   :  { %2185 = vmatprep.subr.bf16.mxu1 %v3028_v1 }
 0x112   :  { %v327_v1 = vrot.slane %v3915_v31, %v326_v63 }
 0x113   :  { %2161 = vmatpush2.bf16.msra.mxu0 %v3023_v51  ;;  %v331_v51 = vrot.slane %v3915_v31, %v330_v0 }
 0x114   :  { %2186 = vmatpush1.bf16.msra.mxu1 %v3026_v2  ;;  %2162 = vmatprep.subr.bf16.mxu0 %v3031_v7 }
 0x115   :  { %2187 = vmatprep.subr.bf16.mxu1 %v3034_v3 }
 0x117   :  { %2163 = vmatpush2.bf16.msra.mxu0 %v3029_v4 }
 0x118   :  { %2188 = vmatpush1.bf16.msra.mxu1 %v3032_v5  ;;  %2164 = vmatprep.subr.bf16.mxu0 %v3037_v37 }
 0x119   :  { %2189 = vmatprep.subr.bf16.mxu1 %v3040_v8 }
 0x11b   :  { %2165 = vmatpush2.bf16.msra.mxu0 %v3035_v9 }
 0x11c   :  { %2190 = vmatpush1.bf16.msra.mxu1 %v3038_v10  ;;  %2166 = vmatprep.subr.bf16.mxu0 %v3043_v11 }
 0x11d   :  { %2191 = vmatprep.subr.bf16.mxu1 %v3046_v12 }
 0x11f   :  { %2167 = vmatpush2.bf16.msra.mxu0 %v3041_v13 }
 0x120   :  { %2192 = vmatpush1.bf16.msra.mxu1 %v3044_v14 }
 0x122   :  { %2169 = vmatmul.mubr.bf16.vlgmr.msra.gmra.mxu0 %v3512_v17 }
 0x123   :  { %2210 = vmatmul.mubr.bf16.vlgmr.msra.gmra.mxu1 %v3617_v54 }
 0x142   :  { %v1924_v15 = vpop.f32.mrf.mxu0 }
 0x143   :  { %v1965_v18 = vpop.f32.mrf.mxu1  ;;  %v1925_v27 = vadd.f32 %v1924_v15, %v3955_v50  ;;  %v2243_v15 = vrot.slane %v4033_v47, %v326_v63 }
 0x144   :  { %v1926_v19 = vpop.f32.mrf.mxu0 }
 0x145   :  { %v1967_v20 = vpop.f32.mrf.mxu1  ;;  %v1927_v28 = vadd.f32 %v1926_v19, %v3958_v56  ;;  %v1966_v29 = vadd.f32 %v1965_v18, %v1925_v27 }
 0x146   :  { %v1928_v21 = vpop.f32.mrf.mxu0 }
 0x147   :  { %v1969_v22 = vpop.f32.mrf.mxu1  ;;  %v1968_v54 = vadd.f32 %v1967_v20, %v1927_v28  ;;  %v2247_v20 = vrot.slane %v4033_v47, %v330_v0  ;;  %v2269_v28 = vrot.slane %v4040_v36, %v326_v63 }
 0x148   :  { %v1929_v23 = vpop.f32.mrf.mxu0 }
 0x149   :  { %v1970_v24 = vpop.f32.mrf.mxu1 }
 0x162   :  { %v2006_v17 = vpop.f32.mrf.mxu0 }
 0x163   :  { %v2007_v32 = vadd.f32 %v2006_v17, %v1966_v29  ;;  %v2273_v29 = vrot.slane %v4040_v36, %v330_v0 }
 0x164   :  { %v2008_v34 = vpop.f32.mrf.mxu0 }
 0x165   :  { %vm2218_vm0 = vcmp.ge.f32.partialorder %v2007_v32, 0.0  ;;  %v2222_v35 = vmul.f32 0.2, %v2007_v32  ;;  %v2009_v38 = vadd.f32 %v2008_v34, %v1968_v54 }
 0x166   :  { %v2010_v40 = vpop.f32.mrf.mxu0 }
 0x167   :  { %v2226_v41 = vsel %vm2218_vm0, %v2007_v32, %v2222_v35  ;;  %vm2219_vm1 = vcmp.ge.f32.partialorder %v2009_v38, 0.0  ;;  %v2223_v42 = vmul.f32 0.2, %v2009_v38 }
 0x168   :  { %v2252_v43 = vmul.f32 %v2235_v6, %v2226_v41  ;;  %v2011_v46 = vpop.f32.mrf.mxu0 }
 0x169   :  { %v2227_v48 = vsel %vm2219_vm1, %v2009_v38, %v2223_v42 }
 0x16a   :  { %v2253_v49 = vmul.f32 %v2239_v39, %v2227_v48  ;;  %v2278_v16 = vadd.f32 %v2261_v44, %v2252_v43 }
 0x16c   :  { %v2279_v50 = vadd.f32 %v2265_v45, %v2253_v49 }
 0x16e   :  { %v2603_v52 = vpack.c.bf16 %v2279_v50, %v2278_v16 }
 0x170   :  { %2298 = vst [vmem:[%s4067_s5] sm:$0xff] %v2603_v52 }
 0x183   :  { %v2047_v53 = vpop.f32.mrf.mxu1 }
 0x184   :  { %v2048_v2 = vadd.f32 %v2047_v53, %v327_v1 }
 0x185   :  { %v2049_v55 = vpop.f32.mrf.mxu1 }
 0x186   :  { %v2050_v7 = vadd.f32 %v2049_v55, %v331_v51 }
 0x187   :  { %v2051_v56 = vpop.f32.mrf.mxu1 }
 0x189   :  { %v2052_v57 = vpop.f32.mrf.mxu1 }
 0x1a2   :  { %v2088_v58 = vpop.f32.mrf.mxu0 }
 0x1a3   :  { %v2089_v3 = vadd.f32 %v2088_v58, %v2048_v2 }
 0x1a4   :  { %v2090_v59 = vpop.f32.mrf.mxu0 }
 0x1a5   :  { %v2091_v4 = vadd.f32 %v2090_v59, %v2050_v7 }
 0x1a6   :  { %v2092_v30 = vpop.f32.mrf.mxu0 }
 0x1a8   :  { %v2093_v60 = vpop.f32.mrf.mxu0 }
 0x1c3   :  { %v2129_v26 = vpop.f32.mrf.mxu1 }
 0x1c4   :  { %v2130_v5 = vadd.f32 %v2129_v26, %v2089_v3 }
 0x1c5   :  { %v2131_v33 = vpop.f32.mrf.mxu1 }
 0x1c6   :  { %v2132_v9 = vadd.f32 %v2131_v33, %v2091_v4 }
 0x1c7   :  { %v2133_v61 = vpop.f32.mrf.mxu1 }
 0x1c9   :  { %v2134_v62 = vpop.f32.mrf.mxu1 }
 0x1e2   :  { %v2170_v37 = vpop.f32.mrf.mxu0 }
 0x1e3   :  { %v2211_v8 = vpop.f32.mrf.mxu1  ;;  %v2171_v10 = vadd.f32 %v2170_v37, %v2130_v5 }
 0x1e4   :  { %v2172_v11 = vpop.f32.mrf.mxu0 }
 0x1e5   :  { %v2213_v12 = vpop.f32.mrf.mxu1  ;;  %v2212_v13 = vadd.f32 %v2211_v8, %v2171_v10  ;;  %v2173_v14 = vadd.f32 %v2172_v11, %v2132_v9 }
 0x1e6   :  { %v2174_v25 = vpop.f32.mrf.mxu0 }
 0x1e7   :  { %v2215_v18 = vpop.f32.mrf.mxu1  ;;  %vm2220_vm2 = vcmp.ge.f32.partialorder %v2212_v13, 0.0  ;;  %v2224_v19 = vmul.f32 0.2, %v2212_v13  ;;  %v2214_v31 = vadd.f32 %v2213_v12, %v2173_v14 }
 0x1e8   :  { %v2175_v21 = vpop.f32.mrf.mxu0 }
 0x1e9   :  { %v2216_v22 = vpop.f32.mrf.mxu1  ;;  %v2228_v23 = vsel %vm2220_vm2, %v2212_v13, %v2224_v19  ;;  %vm2221_vm3 = vcmp.ge.f32.partialorder %v2214_v31, 0.0  ;;  %v2225_v24 = vmul.f32 0.2, %v2214_v31 }
 0x1ea   :  { %v2254_v27 = vmul.f32 %v2243_v15, %v2228_v23 }
 0x1eb   :  { %v2229_v17 = vsel %vm2221_vm3, %v2214_v31, %v2225_v24 }
 0x1ec   :  { %v2255_v54 = vmul.f32 %v2247_v20, %v2229_v17  ;;  %v2280_v32 = vadd.f32 %v2269_v28, %v2254_v27 }
 0x1ee   :  { %v2281_v6 = vadd.f32 %v2273_v29, %v2255_v54 }
 0x1f0   :  { %v2604_v34 = vpack.c.bf16 %v2281_v6, %v2280_v32 }
 0x1f2   :  { %2299 = vst [vmem:[%s4067_s5 + $0x8] sm:$0xff] %v2604_v34 }

</bundles_post_ra>
